<compile_context>
chip_gen: v7x
topology: tpu7x:2x2x1
jax: 0.10.0
libtpu: 0.0.40
codegen_flags: <defaults>
</compile_context>

<pallas_src>
import functools

import jax
import jax.numpy as jnp
from jax.experimental import pallas as pl
from jax.experimental.pallas import tpu as pltpu


# ----------------------------- Pallas kernel ------------------------------ #
def gru_kernel(num_layers, hidden, gi0_ref, whh0_ref, *args):
    """Inputs (packed in the wrapper):
      gi0_ref : (S, B, 4H)  layer-0 x-projection + all layer-0 biases,
                            gate columns [gi_n | gh_n | s_r | s_z]
      whh0_ref: (H, 4H)     layer-0 recurrent weights, cols [0 | w_hn^T | w_hr^T | w_hz^T]
      then for every layer l >= 1:
        W_l   : (2H, 4H)    rows [inp ; h_prev], cols [gi_n | gh_n | s_r | s_z]
        b_l   : (1, 4H)     [b_in | b_hn | b_ir+b_hr | b_iz+b_hz]
      fc_wT   : (H, 128)    zero-padded to a lane-dense output width
      fc_b    : (1, 128)
      out_ref : (B, 128)
    """
    H = hidden
    L = num_layers
    n_mid = 2 * (L - 1)
    W_refs = args[0:n_mid:2]
    b_refs = args[1:n_mid:2]
    fc_w_ref, fc_b_ref, out_ref = args[n_mid:]
    S, B = gi0_ref.shape[0], gi0_ref.shape[1]

    # ---- Hoist every weight / bias load (and the bias broadcast) out of the loops.
    whh0 = whh0_ref[...]                                     # (H, 4H)
    Wm = [w[...] for w in W_refs]                            # each (2H, 4H)
    bm = [jnp.broadcast_to(b[...], (B, 4 * H)) for b in b_refs]
    fc_w = fc_w_ref[...]
    fc_b = fc_b_ref[...]

    def gate_update(g, h_prev):
        # g columns: [gi_n | gh_n | s_r | s_z]; one EUP sigmoid over the full vreg
        # (the wasted n-lanes are free — same vreg, single push).
        sg = jax.nn.sigmoid(g)
        r = sg[:, 2 * H:3 * H]
        z = sg[:, 3 * H:4 * H]
        n = jnp.tanh(g[:, 0:H] + r * g[:, H:2 * H])
        return n + z * (h_prev - n)                          # 3-op update

    def cell0(t, h_prev):
        # Layer 0: x projection + biases already folded into gi0 -> one K=H dot + add.
        g = gi0_ref[t] + jnp.dot(h_prev, whh0,
                                 preferred_element_type=jnp.float32,
                                 precision=jax.lax.Precision.DEFAULT)
        return gate_update(g, h_prev)

    def cell(l, inp, h_prev):
        # Layers >= 1: ONE packed K=2H dot produces all four gate blocks at once.
        lhs = jnp.concatenate([inp, h_prev], axis=1)         # (B, 2H)
        g = jnp.dot(lhs, Wm[l - 1],
                    preferred_element_type=jnp.float32,
                    precision=jax.lax.Precision.DEFAULT) + bm[l - 1]
        return gate_update(g, h_prev)

    # h_0 = 0 (PyTorch default); state carried in vregs.
    hs = tuple(jnp.zeros((B, H), jnp.float32) for _ in range(L))

    # ---- Wavefront (layer-skewed) schedule: wave w runs layer l at step t = w - l.
    # Every layer in a wave reads only state carried from the previous wave, so the
    # per-wave dots are mutually independent.

    # Prologue waves 0 .. L-2 (static): only layers 0..w are active yet.
    for w in range(L - 1):
        new = list(hs)
        new[0] = cell0(w, hs[0])
        for l in range(1, w + 1):
            new[l] = cell(l, hs[l - 1], hs[l])
        hs = tuple(new)

    # Steady-state waves L-1 .. S-1: all layers active.  Fully unrolled so the
    # scheduler can pipeline consecutive waves where data allows.
    def wave(w, carry):
        new = [cell0(w, carry[0])]
        for l in range(1, L):
            new.append(cell(l, carry[l - 1], carry[l]))
        return tuple(new)

    hs = jax.lax.fori_loop(L - 1, S, wave, hs, unroll=True)

    # Epilogue waves S .. S+L-2: drain the deeper layers.
    for w in range(S, S + L - 1):
        new = list(hs)
        for l in range(max(1, w - S + 1), L):
            new[l] = cell(l, hs[l - 1], hs[l])
        hs = tuple(new)

    # fc head on the last hidden state of the top layer; 128-lane padded output
    # -> full-width, unmasked store.
    out_ref[...] = jnp.dot(hs[-1], fc_w,
                           preferred_element_type=jnp.float32,
                           precision=jax.lax.Precision.DEFAULT) + fc_b


# ------------------------------- Wrapper ---------------------------------- #
def gru_forward_pallas(x, params, *, hidden_size, num_layers, output_size):
    """x: (B, S) float32. Returns squeezed (B,) when output_size == 1."""
    B, S = x.shape
    H = hidden_size
    FC_PAD = 128
    f32 = jnp.float32

    def split_gates(w):                    # PyTorch row blocks [r; z; n]
        return w[:H], w[H:2 * H], w[2 * H:]

    # ---- Layer 0: fold the K=1 input projection and ALL layer-0 biases into a
    # precomputed (S, B, 4H) tensor in the 4-gate [gi_n | gh_n | s_r | s_z] layout.
    w_ih0, w_hh0, b_ih0, b_hh0 = params["layers"][0]
    w_ir0, w_iz0, w_in0 = split_gates(w_ih0)               # each (H, 1)
    w_hr0, w_hz0, w_hn0 = split_gates(w_hh0)               # each (H, H)
    b_ir0, b_iz0, b_in0 = split_gates(b_ih0)
    b_hr0, b_hz0, b_hn0 = split_gates(b_hh0)

    w_x = jnp.concatenate([w_in0[:, 0], jnp.zeros((H,), f32),
                           w_ir0[:, 0], w_iz0[:, 0]])                      # (4H,)
    b_x = jnp.concatenate([b_in0, b_hn0, b_ir0 + b_hr0, b_iz0 + b_hz0])    # (4H,)
    x_tm = jnp.transpose(x).astype(f32)                                    # (S, B)
    gi0 = x_tm[:, :, None] * w_x[None, None, :] + b_x[None, None, :]       # (S, B, 4H)

    # Layer-0 recurrent weights packed to the same 4-gate column layout.
    whh0 = jnp.concatenate([jnp.zeros((H, H), f32),
                            w_hn0.T, w_hr0.T, w_hz0.T], axis=1)            # (H, 4H)

    inputs = [gi0, whh0]

    # ---- Layers >= 1: merged (2H, 4H) weight + (1, 4H) bias per layer.
    for l in range(1, num_layers):
        w_ih, w_hh, b_ih, b_hh = params["layers"][l]
        w_ir, w_iz, w_in = split_gates(w_ih)               # each (H, H)
        w_hr, w_hz, w_hn = split_gates(w_hh)
        b_ir, b_iz, b_in = split_gates(b_ih)
        b_hr, b_hz, b_hn = split_gates(b_hh)
        top = jnp.concatenate([w_in.T, jnp.zeros((H, H), f32), w_ir.T, w_iz.T], axis=1)
        bot = jnp.concatenate([jnp.zeros((H, H), f32), w_hn.T, w_hr.T, w_hz.T], axis=1)
        W_l = jnp.concatenate([top, bot], axis=0)          # (2H, 4H)
        b_l = jnp.concatenate([b_in, b_hn, b_ir + b_hr, b_iz + b_hz])[None, :]  # (1, 4H)
        inputs += [W_l, b_l]

    fc_w, fc_b = params["fc"]
    fc_wT_pad = jnp.zeros((H, FC_PAD), f32).at[:, :output_size].set(fc_w.T)
    fc_b_pad = jnp.zeros((1, FC_PAD), f32).at[0, :output_size].set(fc_b)
    inputs += [fc_wT_pad, fc_b_pad]

    out = pl.pallas_call(
        functools.partial(gru_kernel, num_layers, H),
        out_shape=jax.ShapeDtypeStruct((B, FC_PAD), jnp.float32),
        in_specs=[pl.BlockSpec(memory_space=pltpu.MemorySpace.VMEM)] * len(inputs),
        out_specs=pl.BlockSpec(memory_space=pltpu.MemorySpace.VMEM),
    )(*inputs)
    # NOTE: for B >= 16 on v7x, add a leading batch grid axis with
    # dimension_semantics=("parallel",) so each TensorCore runs an independent
    # batch shard of the recurrence; at B=8 (one sublane tile) the chain is
    # latency-bound and there is nothing to split.
    return jnp.squeeze(out[:, :output_size])  # mirrors torch `.squeeze()`


# ----------------------- Pure-JAX reference (check) ------------------------ #
def gru_forward_ref(x, params, *, hidden_size, num_layers):
    B, S = x.shape
    H = hidden_size
    inp_seq = x[..., None].astype(jnp.float32)  # (B, S, 1)
    for l in range(num_layers):
        w_ih, w_hh, b_ih, b_hh = params["layers"][l]
        h = jnp.zeros((B, H), jnp.float32)
        outs = []
        for t in range(S):
            xt = inp_seq[:, t, :]
            gi = xt @ w_ih.T + b_ih
            gh = h @ w_hh.T + b_hh
            r = jax.nn.sigmoid(gi[:, :H] + gh[:, :H])
            z = jax.nn.sigmoid(gi[:, H:2 * H] + gh[:, H:2 * H])
            n = jnp.tanh(gi[:, 2 * H:] + r * gh[:, 2 * H:])
            h = (1.0 - z) * n + z * h
            outs.append(h)
        inp_seq = jnp.stack(outs, axis=1)
    fc_w, fc_b = params["fc"]
    out = inp_seq[:, -1, :] @ fc_w.T + fc_b
    return jnp.squeeze(out)


# ----------------------------- Param init ---------------------------------- #
def init_params(key, *, input_size, hidden_size, output_size, num_layers):
    H = hidden_size
    k_gru = 1.0 / jnp.sqrt(jnp.float32(H))
    layers = []
    for l in range(num_layers):
        in_size = input_size if l == 0 else H
        key, k1, k2, k3, k4 = jax.random.split(key, 5)
        w_ih = jax.random.uniform(k1, (3 * H, in_size), jnp.float32, -k_gru, k_gru)
        w_hh = jax.random.uniform(k2, (3 * H, H), jnp.float32, -k_gru, k_gru)
        b_ih = jax.random.uniform(k3, (3 * H,), jnp.float32, -k_gru, k_gru)
        b_hh = jax.random.uniform(k4, (3 * H,), jnp.float32, -k_gru, k_gru)
        layers.append((w_ih, w_hh, b_ih, b_hh))
    key, k5, k6 = jax.random.split(key, 3)
    k_fc = 1.0 / jnp.sqrt(jnp.float32(H))
    fc_w = jax.random.uniform(k5, (output_size, H), jnp.float32, -k_fc, k_fc)
    fc_b = jax.random.uniform(k6, (output_size,), jnp.float32, -k_fc, k_fc)
    return {"layers": layers, "fc": (fc_w, fc_b)}


# --------------------------------- Main ------------------------------------ #
if __name__ == "__main__":
    # Small shapes implied by the module: x.view(B, S, 1) => input_size = 1.
    B, S = 8, 16
    INPUT_SIZE, HIDDEN, OUTPUT_SIZE, NUM_LAYERS = 1, 32, 1, 2

    key = jax.random.PRNGKey(0)
    key, kx = jax.random.split(key)
    x = jax.random.normal(kx, (B, S), jnp.float32)

    params = init_params(
        key,
        input_size=INPUT_SIZE,
        hidden_size=HIDDEN,
        output_size=OUTPUT_SIZE,
        num_layers=NUM_LAYERS,
    )

    out = gru_forward_pallas(
        x, params, hidden_size=HIDDEN, num_layers=NUM_LAYERS, output_size=OUTPUT_SIZE
    )
    out = jax.block_until_ready(out)

    ref = gru_forward_ref(x, params, hidden_size=HIDDEN, num_layers=NUM_LAYERS)
    assert out.shape == ref.shape == (B,)
    assert jnp.allclose(out, ref, rtol=1e-3, atol=1e-3), (out, ref)

    print("KERNEL_OK")
</pallas_src>

<mosaic_0001>
module attributes {stable_mosaic.version = 11 : i64} {
  func.func @gru_kernel(%arg0: memref<16x8x128xf32, #tpu.memory_space<vmem>>, %arg1: memref<32x128xf32, #tpu.memory_space<vmem>>, %arg2: memref<64x128xf32, #tpu.memory_space<vmem>>, %arg3: memref<1x128xf32, #tpu.memory_space<vmem>>, %arg4: memref<32x128xf32, #tpu.memory_space<vmem>>, %arg5: memref<1x128xf32, #tpu.memory_space<vmem>>, %arg6: memref<8x128xf32, #tpu.memory_space<vmem>>) attributes {dimension_semantics = [], scalar_prefetch = 0 : i64, scratch_operands = 0 : i64, tpu.core_type = #tpu.core_type<tc>} {
    %c0 = arith.constant 0 : index
    %c0_0 = arith.constant 0 : index
    %0 = vector.load %arg1[%c0, %c0_0] : memref<32x128xf32, #tpu.memory_space<vmem>>, vector<32x128xf32>
    %c0_1 = arith.constant 0 : index
    %c0_2 = arith.constant 0 : index
    %1 = vector.load %arg2[%c0_1, %c0_2] : memref<64x128xf32, #tpu.memory_space<vmem>>, vector<64x128xf32>
    %c0_3 = arith.constant 0 : index
    %c0_4 = arith.constant 0 : index
    %2 = vector.load %arg3[%c0_3, %c0_4] : memref<1x128xf32, #tpu.memory_space<vmem>>, vector<1x128xf32>
    %3 = vector.shape_cast %2 : vector<1x128xf32> to vector<1x128xf32>
    %4 = vector.broadcast %3 : vector<1x128xf32> to vector<8x128xf32>
    %c0_5 = arith.constant 0 : index
    %c0_6 = arith.constant 0 : index
    %5 = vector.load %arg4[%c0_5, %c0_6] : memref<32x128xf32, #tpu.memory_space<vmem>>, vector<32x128xf32>
    %c0_7 = arith.constant 0 : index
    %c0_8 = arith.constant 0 : index
    %6 = vector.load %arg5[%c0_7, %c0_8] : memref<1x128xf32, #tpu.memory_space<vmem>>, vector<1x128xf32>
    %cst = arith.constant 0.000000e+00 : f32
    %7 = vector.broadcast %cst : f32 to vector<8x32xf32>
    %cst_9 = arith.constant 0.000000e+00 : f32
    %8 = vector.broadcast %cst_9 : f32 to vector<8x32xf32>
    %c0_10 = arith.constant 0 : index
    %c0_11 = arith.constant 0 : index
    %c0_12 = arith.constant 0 : index
    %9 = vector.load %arg0[%c0_10, %c0_11, %c0_12] : memref<16x8x128xf32, #tpu.memory_space<vmem>>, vector<1x8x128xf32>
    %10 = vector.shape_cast %9 : vector<1x8x128xf32> to vector<8x128xf32>
    %cst_13 = arith.constant dense<0.000000e+00> : vector<8x128xf32>
    %11 = tpu.matmul %7, %0, %cst_13 {dimension_numbers = #tpu.dot_dimension_numbers<[1], [0], [0], [1], [0, 0, 1, 1], [], []>} : vector<8x32xf32>, vector<32x128xf32>, vector<8x128xf32> -> vector<8x128xf32>
    %12 = arith.addf %10, %11 : vector<8x128xf32>
    %13 = arith.negf %12 : vector<8x128xf32>
    %14 = math.exp %13 : vector<8x128xf32>
    %cst_14 = arith.constant 1.000000e+00 : f32
    %15 = vector.broadcast %cst_14 : f32 to vector<8x128xf32>
    %16 = arith.addf %15, %14 : vector<8x128xf32>
    %17 = arith.divf %15, %16 : vector<8x128xf32>
    %18 = vector.extract_strided_slice %17 {offsets = [0, 64], sizes = [8, 32], strides = [1, 1]} : vector<8x128xf32> to vector<8x32xf32>
    %19 = vector.extract_strided_slice %17 {offsets = [0, 96], sizes = [8, 32], strides = [1, 1]} : vector<8x128xf32> to vector<8x32xf32>
    %20 = vector.extract_strided_slice %12 {offsets = [0, 0], sizes = [8, 32], strides = [1, 1]} : vector<8x128xf32> to vector<8x32xf32>
    %21 = vector.extract_strided_slice %12 {offsets = [0, 32], sizes = [8, 32], strides = [1, 1]} : vector<8x128xf32> to vector<8x32xf32>
    %22 = arith.mulf %18, %21 : vector<8x32xf32>
    %23 = arith.addf %20, %22 : vector<8x32xf32>
    %24 = math.tanh %23 : vector<8x32xf32>
    %25 = arith.subf %7, %24 : vector<8x32xf32>
    %26 = arith.mulf %19, %25 : vector<8x32xf32>
    %27 = arith.addf %24, %26 : vector<8x32xf32>
    %c1_i32 = arith.constant 1 : i32
    %28 = arith.index_cast %c1_i32 : i32 to index
    %c0_15 = arith.constant 0 : index
    %c0_16 = arith.constant 0 : index
    %29 = vector.load %arg0[%28, %c0_15, %c0_16] : memref<16x8x128xf32, #tpu.memory_space<vmem>>, vector<1x8x128xf32>
    %30 = vector.shape_cast %29 : vector<1x8x128xf32> to vector<8x128xf32>
    %cst_17 = arith.constant dense<0.000000e+00> : vector<8x128xf32>
    %31 = tpu.matmul %27, %0, %cst_17 {dimension_numbers = #tpu.dot_dimension_numbers<[1], [0], [0], [1], [0, 0, 1, 1], [], []>} : vector<8x32xf32>, vector<32x128xf32>, vector<8x128xf32> -> vector<8x128xf32>
    %32 = arith.addf %30, %31 : vector<8x128xf32>
    %33 = arith.negf %32 : vector<8x128xf32>
    %34 = math.exp %33 : vector<8x128xf32>
    %cst_18 = arith.constant 1.000000e+00 : f32
    %35 = vector.broadcast %cst_18 : f32 to vector<8x128xf32>
    %36 = arith.addf %35, %34 : vector<8x128xf32>
    %37 = arith.divf %35, %36 : vector<8x128xf32>
    %38 = vector.extract_strided_slice %37 {offsets = [0, 64], sizes = [8, 32], strides = [1, 1]} : vector<8x128xf32> to vector<8x32xf32>
    %39 = vector.extract_strided_slice %37 {offsets = [0, 96], sizes = [8, 32], strides = [1, 1]} : vector<8x128xf32> to vector<8x32xf32>
    %40 = vector.extract_strided_slice %32 {offsets = [0, 0], sizes = [8, 32], strides = [1, 1]} : vector<8x128xf32> to vector<8x32xf32>
    %41 = vector.extract_strided_slice %32 {offsets = [0, 32], sizes = [8, 32], strides = [1, 1]} : vector<8x128xf32> to vector<8x32xf32>
    %42 = arith.mulf %38, %41 : vector<8x32xf32>
    %43 = arith.addf %40, %42 : vector<8x32xf32>
    %44 = math.tanh %43 : vector<8x32xf32>
    %45 = arith.subf %27, %44 : vector<8x32xf32>
    %46 = arith.mulf %39, %45 : vector<8x32xf32>
    %47 = arith.addf %44, %46 : vector<8x32xf32>
    %48 = tpu.concatenate %27, %8 in 1 : vector<8x32xf32>, vector<8x32xf32> -> vector<8x64xf32>
    %cst_19 = arith.constant dense<0.000000e+00> : vector<8x128xf32>
    %49 = tpu.matmul %48, %1, %cst_19 {dimension_numbers = #tpu.dot_dimension_numbers<[1], [0], [0], [1], [0, 0, 1, 1], [], []>} : vector<8x64xf32>, vector<64x128xf32>, vector<8x128xf32> -> vector<8x128xf32>
    %50 = arith.addf %49, %4 : vector<8x128xf32>
    %51 = arith.negf %50 : vector<8x128xf32>
    %52 = math.exp %51 : vector<8x128xf32>
    %cst_20 = arith.constant 1.000000e+00 : f32
    %53 = vector.broadcast %cst_20 : f32 to vector<8x128xf32>
    %54 = arith.addf %53, %52 : vector<8x128xf32>
    %55 = arith.divf %53, %54 : vector<8x128xf32>
    %56 = vector.extract_strided_slice %55 {offsets = [0, 64], sizes = [8, 32], strides = [1, 1]} : vector<8x128xf32> to vector<8x32xf32>
    %57 = vector.extract_strided_slice %55 {offsets = [0, 96], sizes = [8, 32], strides = [1, 1]} : vector<8x128xf32> to vector<8x32xf32>
    %58 = vector.extract_strided_slice %50 {offsets = [0, 0], sizes = [8, 32], strides = [1, 1]} : vector<8x128xf32> to vector<8x32xf32>
    %59 = vector.extract_strided_slice %50 {offsets = [0, 32], sizes = [8, 32], strides = [1, 1]} : vector<8x128xf32> to vector<8x32xf32>
    %60 = arith.mulf %56, %59 : vector<8x32xf32>
    %61 = arith.addf %58, %60 : vector<8x32xf32>
    %62 = math.tanh %61 : vector<8x32xf32>
    %63 = arith.subf %8, %62 : vector<8x32xf32>
    %64 = arith.mulf %57, %63 : vector<8x32xf32>
    %65 = arith.addf %62, %64 : vector<8x32xf32>
    %c2_i32 = arith.constant 2 : i32
    %66 = arith.index_cast %c2_i32 : i32 to index
    %c0_21 = arith.constant 0 : index
    %c0_22 = arith.constant 0 : index
    %67 = vector.load %arg0[%66, %c0_21, %c0_22] : memref<16x8x128xf32, #tpu.memory_space<vmem>>, vector<1x8x128xf32>
    %68 = vector.shape_cast %67 : vector<1x8x128xf32> to vector<8x128xf32>
    %cst_23 = arith.constant dense<0.000000e+00> : vector<8x128xf32>
    %69 = tpu.matmul %47, %0, %cst_23 {dimension_numbers = #tpu.dot_dimension_numbers<[1], [0], [0], [1], [0, 0, 1, 1], [], []>} : vector<8x32xf32>, vector<32x128xf32>, vector<8x128xf32> -> vector<8x128xf32>
    %70 = arith.addf %68, %69 : vector<8x128xf32>
    %71 = arith.negf %70 : vector<8x128xf32>
    %72 = math.exp %71 : vector<8x128xf32>
    %cst_24 = arith.constant 1.000000e+00 : f32
    %73 = vector.broadcast %cst_24 : f32 to vector<8x128xf32>
    %74 = arith.addf %73, %72 : vector<8x128xf32>
    %75 = arith.divf %73, %74 : vector<8x128xf32>
    %76 = vector.extract_strided_slice %75 {offsets = [0, 64], sizes = [8, 32], strides = [1, 1]} : vector<8x128xf32> to vector<8x32xf32>
    %77 = vector.extract_strided_slice %75 {offsets = [0, 96], sizes = [8, 32], strides = [1, 1]} : vector<8x128xf32> to vector<8x32xf32>
    %78 = vector.extract_strided_slice %70 {offsets = [0, 0], sizes = [8, 32], strides = [1, 1]} : vector<8x128xf32> to vector<8x32xf32>
    %79 = vector.extract_strided_slice %70 {offsets = [0, 32], sizes = [8, 32], strides = [1, 1]} : vector<8x128xf32> to vector<8x32xf32>
    %80 = arith.mulf %76, %79 : vector<8x32xf32>
    %81 = arith.addf %78, %80 : vector<8x32xf32>
    %82 = math.tanh %81 : vector<8x32xf32>
    %83 = arith.subf %47, %82 : vector<8x32xf32>
    %84 = arith.mulf %77, %83 : vector<8x32xf32>
    %85 = arith.addf %82, %84 : vector<8x32xf32>
    %86 = tpu.concatenate %47, %65 in 1 : vector<8x32xf32>, vector<8x32xf32> -> vector<8x64xf32>
    %cst_25 = arith.constant dense<0.000000e+00> : vector<8x128xf32>
    %87 = tpu.matmul %86, %1, %cst_25 {dimension_numbers = #tpu.dot_dimension_numbers<[1], [0], [0], [1], [0, 0, 1, 1], [], []>} : vector<8x64xf32>, vector<64x128xf32>, vector<8x128xf32> -> vector<8x128xf32>
    %88 = arith.addf %87, %4 : vector<8x128xf32>
    %89 = arith.negf %88 : vector<8x128xf32>
    %90 = math.exp %89 : vector<8x128xf32>
    %cst_26 = arith.constant 1.000000e+00 : f32
    %91 = vector.broadcast %cst_26 : f32 to vector<8x128xf32>
    %92 = arith.addf %91, %90 : vector<8x128xf32>
    %93 = arith.divf %91, %92 : vector<8x128xf32>
    %94 = vector.extract_strided_slice %93 {offsets = [0, 64], sizes = [8, 32], strides = [1, 1]} : vector<8x128xf32> to vector<8x32xf32>
    %95 = vector.extract_strided_slice %93 {offsets = [0, 96], sizes = [8, 32], strides = [1, 1]} : vector<8x128xf32> to vector<8x32xf32>
    %96 = vector.extract_strided_slice %88 {offsets = [0, 0], sizes = [8, 32], strides = [1, 1]} : vector<8x128xf32> to vector<8x32xf32>
    %97 = vector.extract_strided_slice %88 {offsets = [0, 32], sizes = [8, 32], strides = [1, 1]} : vector<8x128xf32> to vector<8x32xf32>
    %98 = arith.mulf %94, %97 : vector<8x32xf32>
    %99 = arith.addf %96, %98 : vector<8x32xf32>
    %100 = math.tanh %99 : vector<8x32xf32>
    %101 = arith.subf %65, %100 : vector<8x32xf32>
    %102 = arith.mulf %95, %101 : vector<8x32xf32>
    %103 = arith.addf %100, %102 : vector<8x32xf32>
    %c3_i32 = arith.constant 3 : i32
    %104 = arith.index_cast %c3_i32 : i32 to index
    %c0_27 = arith.constant 0 : index
    %c0_28 = arith.constant 0 : index
    %105 = vector.load %arg0[%104, %c0_27, %c0_28] : memref<16x8x128xf32, #tpu.memory_space<vmem>>, vector<1x8x128xf32>
    %106 = vector.shape_cast %105 : vector<1x8x128xf32> to vector<8x128xf32>
    %cst_29 = arith.constant dense<0.000000e+00> : vector<8x128xf32>
    %107 = tpu.matmul %85, %0, %cst_29 {dimension_numbers = #tpu.dot_dimension_numbers<[1], [0], [0], [1], [0, 0, 1, 1], [], []>} : vector<8x32xf32>, vector<32x128xf32>, vector<8x128xf32> -> vector<8x128xf32>
    %108 = arith.addf %106, %107 : vector<8x128xf32>
    %109 = arith.negf %108 : vector<8x128xf32>
    %110 = math.exp %109 : vector<8x128xf32>
    %cst_30 = arith.constant 1.000000e+00 : f32
    %111 = vector.broadcast %cst_30 : f32 to vector<8x128xf32>
    %112 = arith.addf %111, %110 : vector<8x128xf32>
    %113 = arith.divf %111, %112 : vector<8x128xf32>
    %114 = vector.extract_strided_slice %113 {offsets = [0, 64], sizes = [8, 32], strides = [1, 1]} : vector<8x128xf32> to vector<8x32xf32>
    %115 = vector.extract_strided_slice %113 {offsets = [0, 96], sizes = [8, 32], strides = [1, 1]} : vector<8x128xf32> to vector<8x32xf32>
    %116 = vector.extract_strided_slice %108 {offsets = [0, 0], sizes = [8, 32], strides = [1, 1]} : vector<8x128xf32> to vector<8x32xf32>
    %117 = vector.extract_strided_slice %108 {offsets = [0, 32], sizes = [8, 32], strides = [1, 1]} : vector<8x128xf32> to vector<8x32xf32>
    %118 = arith.mulf %114, %117 : vector<8x32xf32>
    %119 = arith.addf %116, %118 : vector<8x32xf32>
    %120 = math.tanh %119 : vector<8x32xf32>
    %121 = arith.subf %85, %120 : vector<8x32xf32>
    %122 = arith.mulf %115, %121 : vector<8x32xf32>
    %123 = arith.addf %120, %122 : vector<8x32xf32>
    %124 = tpu.concatenate %85, %103 in 1 : vector<8x32xf32>, vector<8x32xf32> -> vector<8x64xf32>
    %cst_31 = arith.constant dense<0.000000e+00> : vector<8x128xf32>
    %125 = tpu.matmul %124, %1, %cst_31 {dimension_numbers = #tpu.dot_dimension_numbers<[1], [0], [0], [1], [0, 0, 1, 1], [], []>} : vector<8x64xf32>, vector<64x128xf32>, vector<8x128xf32> -> vector<8x128xf32>
    %126 = arith.addf %125, %4 : vector<8x128xf32>
    %127 = arith.negf %126 : vector<8x128xf32>
    %128 = math.exp %127 : vector<8x128xf32>
    %cst_32 = arith.constant 1.000000e+00 : f32
    %129 = vector.broadcast %cst_32 : f32 to vector<8x128xf32>
    %130 = arith.addf %129, %128 : vector<8x128xf32>
    %131 = arith.divf %129, %130 : vector<8x128xf32>
    %132 = vector.extract_strided_slice %131 {offsets = [0, 64], sizes = [8, 32], strides = [1, 1]} : vector<8x128xf32> to vector<8x32xf32>
    %133 = vector.extract_strided_slice %131 {offsets = [0, 96], sizes = [8, 32], strides = [1, 1]} : vector<8x128xf32> to vector<8x32xf32>
    %134 = vector.extract_strided_slice %126 {offsets = [0, 0], sizes = [8, 32], strides = [1, 1]} : vector<8x128xf32> to vector<8x32xf32>
    %135 = vector.extract_strided_slice %126 {offsets = [0, 32], sizes = [8, 32], strides = [1, 1]} : vector<8x128xf32> to vector<8x32xf32>
    %136 = arith.mulf %132, %135 : vector<8x32xf32>
    %137 = arith.addf %134, %136 : vector<8x32xf32>
    %138 = math.tanh %137 : vector<8x32xf32>
    %139 = arith.subf %103, %138 : vector<8x32xf32>
    %140 = arith.mulf %133, %139 : vector<8x32xf32>
    %141 = arith.addf %138, %140 : vector<8x32xf32>
    %c4_i32 = arith.constant 4 : i32
    %142 = arith.index_cast %c4_i32 : i32 to index
    %c0_33 = arith.constant 0 : index
    %c0_34 = arith.constant 0 : index
    %143 = vector.load %arg0[%142, %c0_33, %c0_34] : memref<16x8x128xf32, #tpu.memory_space<vmem>>, vector<1x8x128xf32>
    %144 = vector.shape_cast %143 : vector<1x8x128xf32> to vector<8x128xf32>
    %cst_35 = arith.constant dense<0.000000e+00> : vector<8x128xf32>
    %145 = tpu.matmul %123, %0, %cst_35 {dimension_numbers = #tpu.dot_dimension_numbers<[1], [0], [0], [1], [0, 0, 1, 1], [], []>} : vector<8x32xf32>, vector<32x128xf32>, vector<8x128xf32> -> vector<8x128xf32>
    %146 = arith.addf %144, %145 : vector<8x128xf32>
    %147 = arith.negf %146 : vector<8x128xf32>
    %148 = math.exp %147 : vector<8x128xf32>
    %cst_36 = arith.constant 1.000000e+00 : f32
    %149 = vector.broadcast %cst_36 : f32 to vector<8x128xf32>
    %150 = arith.addf %149, %148 : vector<8x128xf32>
    %151 = arith.divf %149, %150 : vector<8x128xf32>
    %152 = vector.extract_strided_slice %151 {offsets = [0, 64], sizes = [8, 32], strides = [1, 1]} : vector<8x128xf32> to vector<8x32xf32>
    %153 = vector.extract_strided_slice %151 {offsets = [0, 96], sizes = [8, 32], strides = [1, 1]} : vector<8x128xf32> to vector<8x32xf32>
    %154 = vector.extract_strided_slice %146 {offsets = [0, 0], sizes = [8, 32], strides = [1, 1]} : vector<8x128xf32> to vector<8x32xf32>
    %155 = vector.extract_strided_slice %146 {offsets = [0, 32], sizes = [8, 32], strides = [1, 1]} : vector<8x128xf32> to vector<8x32xf32>
    %156 = arith.mulf %152, %155 : vector<8x32xf32>
    %157 = arith.addf %154, %156 : vector<8x32xf32>
    %158 = math.tanh %157 : vector<8x32xf32>
    %159 = arith.subf %123, %158 : vector<8x32xf32>
    %160 = arith.mulf %153, %159 : vector<8x32xf32>
    %161 = arith.addf %158, %160 : vector<8x32xf32>
    %162 = tpu.concatenate %123, %141 in 1 : vector<8x32xf32>, vector<8x32xf32> -> vector<8x64xf32>
    %cst_37 = arith.constant dense<0.000000e+00> : vector<8x128xf32>
    %163 = tpu.matmul %162, %1, %cst_37 {dimension_numbers = #tpu.dot_dimension_numbers<[1], [0], [0], [1], [0, 0, 1, 1], [], []>} : vector<8x64xf32>, vector<64x128xf32>, vector<8x128xf32> -> vector<8x128xf32>
    %164 = arith.addf %163, %4 : vector<8x128xf32>
    %165 = arith.negf %164 : vector<8x128xf32>
    %166 = math.exp %165 : vector<8x128xf32>
    %cst_38 = arith.constant 1.000000e+00 : f32
    %167 = vector.broadcast %cst_38 : f32 to vector<8x128xf32>
    %168 = arith.addf %167, %166 : vector<8x128xf32>
    %169 = arith.divf %167, %168 : vector<8x128xf32>
    %170 = vector.extract_strided_slice %169 {offsets = [0, 64], sizes = [8, 32], strides = [1, 1]} : vector<8x128xf32> to vector<8x32xf32>
    %171 = vector.extract_strided_slice %169 {offsets = [0, 96], sizes = [8, 32], strides = [1, 1]} : vector<8x128xf32> to vector<8x32xf32>
    %172 = vector.extract_strided_slice %164 {offsets = [0, 0], sizes = [8, 32], strides = [1, 1]} : vector<8x128xf32> to vector<8x32xf32>
    %173 = vector.extract_strided_slice %164 {offsets = [0, 32], sizes = [8, 32], strides = [1, 1]} : vector<8x128xf32> to vector<8x32xf32>
    %174 = arith.mulf %170, %173 : vector<8x32xf32>
    %175 = arith.addf %172, %174 : vector<8x32xf32>
    %176 = math.tanh %175 : vector<8x32xf32>
    %177 = arith.subf %141, %176 : vector<8x32xf32>
    %178 = arith.mulf %171, %177 : vector<8x32xf32>
    %179 = arith.addf %176, %178 : vector<8x32xf32>
    %c5_i32 = arith.constant 5 : i32
    %180 = arith.index_cast %c5_i32 : i32 to index
    %c0_39 = arith.constant 0 : index
    %c0_40 = arith.constant 0 : index
    %181 = vector.load %arg0[%180, %c0_39, %c0_40] : memref<16x8x128xf32, #tpu.memory_space<vmem>>, vector<1x8x128xf32>
    %182 = vector.shape_cast %181 : vector<1x8x128xf32> to vector<8x128xf32>
    %cst_41 = arith.constant dense<0.000000e+00> : vector<8x128xf32>
    %183 = tpu.matmul %161, %0, %cst_41 {dimension_numbers = #tpu.dot_dimension_numbers<[1], [0], [0], [1], [0, 0, 1, 1], [], []>} : vector<8x32xf32>, vector<32x128xf32>, vector<8x128xf32> -> vector<8x128xf32>
    %184 = arith.addf %182, %183 : vector<8x128xf32>
    %185 = arith.negf %184 : vector<8x128xf32>
    %186 = math.exp %185 : vector<8x128xf32>
    %cst_42 = arith.constant 1.000000e+00 : f32
    %187 = vector.broadcast %cst_42 : f32 to vector<8x128xf32>
    %188 = arith.addf %187, %186 : vector<8x128xf32>
    %189 = arith.divf %187, %188 : vector<8x128xf32>
    %190 = vector.extract_strided_slice %189 {offsets = [0, 64], sizes = [8, 32], strides = [1, 1]} : vector<8x128xf32> to vector<8x32xf32>
    %191 = vector.extract_strided_slice %189 {offsets = [0, 96], sizes = [8, 32], strides = [1, 1]} : vector<8x128xf32> to vector<8x32xf32>
    %192 = vector.extract_strided_slice %184 {offsets = [0, 0], sizes = [8, 32], strides = [1, 1]} : vector<8x128xf32> to vector<8x32xf32>
    %193 = vector.extract_strided_slice %184 {offsets = [0, 32], sizes = [8, 32], strides = [1, 1]} : vector<8x128xf32> to vector<8x32xf32>
    %194 = arith.mulf %190, %193 : vector<8x32xf32>
    %195 = arith.addf %192, %194 : vector<8x32xf32>
    %196 = math.tanh %195 : vector<8x32xf32>
    %197 = arith.subf %161, %196 : vector<8x32xf32>
    %198 = arith.mulf %191, %197 : vector<8x32xf32>
    %199 = arith.addf %196, %198 : vector<8x32xf32>
    %200 = tpu.concatenate %161, %179 in 1 : vector<8x32xf32>, vector<8x32xf32> -> vector<8x64xf32>
    %cst_43 = arith.constant dense<0.000000e+00> : vector<8x128xf32>
    %201 = tpu.matmul %200, %1, %cst_43 {dimension_numbers = #tpu.dot_dimension_numbers<[1], [0], [0], [1], [0, 0, 1, 1], [], []>} : vector<8x64xf32>, vector<64x128xf32>, vector<8x128xf32> -> vector<8x128xf32>
    %202 = arith.addf %201, %4 : vector<8x128xf32>
    %203 = arith.negf %202 : vector<8x128xf32>
    %204 = math.exp %203 : vector<8x128xf32>
    %cst_44 = arith.constant 1.000000e+00 : f32
    %205 = vector.broadcast %cst_44 : f32 to vector<8x128xf32>
    %206 = arith.addf %205, %204 : vector<8x128xf32>
    %207 = arith.divf %205, %206 : vector<8x128xf32>
    %208 = vector.extract_strided_slice %207 {offsets = [0, 64], sizes = [8, 32], strides = [1, 1]} : vector<8x128xf32> to vector<8x32xf32>
    %209 = vector.extract_strided_slice %207 {offsets = [0, 96], sizes = [8, 32], strides = [1, 1]} : vector<8x128xf32> to vector<8x32xf32>
    %210 = vector.extract_strided_slice %202 {offsets = [0, 0], sizes = [8, 32], strides = [1, 1]} : vector<8x128xf32> to vector<8x32xf32>
    %211 = vector.extract_strided_slice %202 {offsets = [0, 32], sizes = [8, 32], strides = [1, 1]} : vector<8x128xf32> to vector<8x32xf32>
    %212 = arith.mulf %208, %211 : vector<8x32xf32>
    %213 = arith.addf %210, %212 : vector<8x32xf32>
    %214 = math.tanh %213 : vector<8x32xf32>
    %215 = arith.subf %179, %214 : vector<8x32xf32>
    %216 = arith.mulf %209, %215 : vector<8x32xf32>
    %217 = arith.addf %214, %216 : vector<8x32xf32>
    %c6_i32 = arith.constant 6 : i32
    %218 = arith.index_cast %c6_i32 : i32 to index
    %c0_45 = arith.constant 0 : index
    %c0_46 = arith.constant 0 : index
    %219 = vector.load %arg0[%218, %c0_45, %c0_46] : memref<16x8x128xf32, #tpu.memory_space<vmem>>, vector<1x8x128xf32>
    %220 = vector.shape_cast %219 : vector<1x8x128xf32> to vector<8x128xf32>
    %cst_47 = arith.constant dense<0.000000e+00> : vector<8x128xf32>
    %221 = tpu.matmul %199, %0, %cst_47 {dimension_numbers = #tpu.dot_dimension_numbers<[1], [0], [0], [1], [0, 0, 1, 1], [], []>} : vector<8x32xf32>, vector<32x128xf32>, vector<8x128xf32> -> vector<8x128xf32>
    %222 = arith.addf %220, %221 : vector<8x128xf32>
    %223 = arith.negf %222 : vector<8x128xf32>
    %224 = math.exp %223 : vector<8x128xf32>
    %cst_48 = arith.constant 1.000000e+00 : f32
    %225 = vector.broadcast %cst_48 : f32 to vector<8x128xf32>
    %226 = arith.addf %225, %224 : vector<8x128xf32>
    %227 = arith.divf %225, %226 : vector<8x128xf32>
    %228 = vector.extract_strided_slice %227 {offsets = [0, 64], sizes = [8, 32], strides = [1, 1]} : vector<8x128xf32> to vector<8x32xf32>
    %229 = vector.extract_strided_slice %227 {offsets = [0, 96], sizes = [8, 32], strides = [1, 1]} : vector<8x128xf32> to vector<8x32xf32>
    %230 = vector.extract_strided_slice %222 {offsets = [0, 0], sizes = [8, 32], strides = [1, 1]} : vector<8x128xf32> to vector<8x32xf32>
    %231 = vector.extract_strided_slice %222 {offsets = [0, 32], sizes = [8, 32], strides = [1, 1]} : vector<8x128xf32> to vector<8x32xf32>
    %232 = arith.mulf %228, %231 : vector<8x32xf32>
    %233 = arith.addf %230, %232 : vector<8x32xf32>
    %234 = math.tanh %233 : vector<8x32xf32>
    %235 = arith.subf %199, %234 : vector<8x32xf32>
    %236 = arith.mulf %229, %235 : vector<8x32xf32>
    %237 = arith.addf %234, %236 : vector<8x32xf32>
    %238 = tpu.concatenate %199, %217 in 1 : vector<8x32xf32>, vector<8x32xf32> -> vector<8x64xf32>
    %cst_49 = arith.constant dense<0.000000e+00> : vector<8x128xf32>
    %239 = tpu.matmul %238, %1, %cst_49 {dimension_numbers = #tpu.dot_dimension_numbers<[1], [0], [0], [1], [0, 0, 1, 1], [], []>} : vector<8x64xf32>, vector<64x128xf32>, vector<8x128xf32> -> vector<8x128xf32>
    %240 = arith.addf %239, %4 : vector<8x128xf32>
    %241 = arith.negf %240 : vector<8x128xf32>
    %242 = math.exp %241 : vector<8x128xf32>
    %cst_50 = arith.constant 1.000000e+00 : f32
    %243 = vector.broadcast %cst_50 : f32 to vector<8x128xf32>
    %244 = arith.addf %243, %242 : vector<8x128xf32>
    %245 = arith.divf %243, %244 : vector<8x128xf32>
    %246 = vector.extract_strided_slice %245 {offsets = [0, 64], sizes = [8, 32], strides = [1, 1]} : vector<8x128xf32> to vector<8x32xf32>
    %247 = vector.extract_strided_slice %245 {offsets = [0, 96], sizes = [8, 32], strides = [1, 1]} : vector<8x128xf32> to vector<8x32xf32>
    %248 = vector.extract_strided_slice %240 {offsets = [0, 0], sizes = [8, 32], strides = [1, 1]} : vector<8x128xf32> to vector<8x32xf32>
    %249 = vector.extract_strided_slice %240 {offsets = [0, 32], sizes = [8, 32], strides = [1, 1]} : vector<8x128xf32> to vector<8x32xf32>
    %250 = arith.mulf %246, %249 : vector<8x32xf32>
    %251 = arith.addf %248, %250 : vector<8x32xf32>
    %252 = math.tanh %251 : vector<8x32xf32>
    %253 = arith.subf %217, %252 : vector<8x32xf32>
    %254 = arith.mulf %247, %253 : vector<8x32xf32>
    %255 = arith.addf %252, %254 : vector<8x32xf32>
    %c7_i32 = arith.constant 7 : i32
    %256 = arith.index_cast %c7_i32 : i32 to index
    %c0_51 = arith.constant 0 : index
    %c0_52 = arith.constant 0 : index
    %257 = vector.load %arg0[%256, %c0_51, %c0_52] : memref<16x8x128xf32, #tpu.memory_space<vmem>>, vector<1x8x128xf32>
    %258 = vector.shape_cast %257 : vector<1x8x128xf32> to vector<8x128xf32>
    %cst_53 = arith.constant dense<0.000000e+00> : vector<8x128xf32>
    %259 = tpu.matmul %237, %0, %cst_53 {dimension_numbers = #tpu.dot_dimension_numbers<[1], [0], [0], [1], [0, 0, 1, 1], [], []>} : vector<8x32xf32>, vector<32x128xf32>, vector<8x128xf32> -> vector<8x128xf32>
    %260 = arith.addf %258, %259 : vector<8x128xf32>
    %261 = arith.negf %260 : vector<8x128xf32>
    %262 = math.exp %261 : vector<8x128xf32>
    %cst_54 = arith.constant 1.000000e+00 : f32
    %263 = vector.broadcast %cst_54 : f32 to vector<8x128xf32>
    %264 = arith.addf %263, %262 : vector<8x128xf32>
    %265 = arith.divf %263, %264 : vector<8x128xf32>
    %266 = vector.extract_strided_slice %265 {offsets = [0, 64], sizes = [8, 32], strides = [1, 1]} : vector<8x128xf32> to vector<8x32xf32>
    %267 = vector.extract_strided_slice %265 {offsets = [0, 96], sizes = [8, 32], strides = [1, 1]} : vector<8x128xf32> to vector<8x32xf32>
    %268 = vector.extract_strided_slice %260 {offsets = [0, 0], sizes = [8, 32], strides = [1, 1]} : vector<8x128xf32> to vector<8x32xf32>
    %269 = vector.extract_strided_slice %260 {offsets = [0, 32], sizes = [8, 32], strides = [1, 1]} : vector<8x128xf32> to vector<8x32xf32>
    %270 = arith.mulf %266, %269 : vector<8x32xf32>
    %271 = arith.addf %268, %270 : vector<8x32xf32>
    %272 = math.tanh %271 : vector<8x32xf32>
    %273 = arith.subf %237, %272 : vector<8x32xf32>
    %274 = arith.mulf %267, %273 : vector<8x32xf32>
    %275 = arith.addf %272, %274 : vector<8x32xf32>
    %276 = tpu.concatenate %237, %255 in 1 : vector<8x32xf32>, vector<8x32xf32> -> vector<8x64xf32>
    %cst_55 = arith.constant dense<0.000000e+00> : vector<8x128xf32>
    %277 = tpu.matmul %276, %1, %cst_55 {dimension_numbers = #tpu.dot_dimension_numbers<[1], [0], [0], [1], [0, 0, 1, 1], [], []>} : vector<8x64xf32>, vector<64x128xf32>, vector<8x128xf32> -> vector<8x128xf32>
    %278 = arith.addf %277, %4 : vector<8x128xf32>
    %279 = arith.negf %278 : vector<8x128xf32>
    %280 = math.exp %279 : vector<8x128xf32>
    %cst_56 = arith.constant 1.000000e+00 : f32
    %281 = vector.broadcast %cst_56 : f32 to vector<8x128xf32>
    %282 = arith.addf %281, %280 : vector<8x128xf32>
    %283 = arith.divf %281, %282 : vector<8x128xf32>
    %284 = vector.extract_strided_slice %283 {offsets = [0, 64], sizes = [8, 32], strides = [1, 1]} : vector<8x128xf32> to vector<8x32xf32>
    %285 = vector.extract_strided_slice %283 {offsets = [0, 96], sizes = [8, 32], strides = [1, 1]} : vector<8x128xf32> to vector<8x32xf32>
    %286 = vector.extract_strided_slice %278 {offsets = [0, 0], sizes = [8, 32], strides = [1, 1]} : vector<8x128xf32> to vector<8x32xf32>
    %287 = vector.extract_strided_slice %278 {offsets = [0, 32], sizes = [8, 32], strides = [1, 1]} : vector<8x128xf32> to vector<8x32xf32>
    %288 = arith.mulf %284, %287 : vector<8x32xf32>
    %289 = arith.addf %286, %288 : vector<8x32xf32>
    %290 = math.tanh %289 : vector<8x32xf32>
    %291 = arith.subf %255, %290 : vector<8x32xf32>
    %292 = arith.mulf %285, %291 : vector<8x32xf32>
    %293 = arith.addf %290, %292 : vector<8x32xf32>
    %c8_i32 = arith.constant 8 : i32
    %294 = arith.index_cast %c8_i32 : i32 to index
    %c0_57 = arith.constant 0 : index
    %c0_58 = arith.constant 0 : index
    %295 = vector.load %arg0[%294, %c0_57, %c0_58] : memref<16x8x128xf32, #tpu.memory_space<vmem>>, vector<1x8x128xf32>
    %296 = vector.shape_cast %295 : vector<1x8x128xf32> to vector<8x128xf32>
    %cst_59 = arith.constant dense<0.000000e+00> : vector<8x128xf32>
    %297 = tpu.matmul %275, %0, %cst_59 {dimension_numbers = #tpu.dot_dimension_numbers<[1], [0], [0], [1], [0, 0, 1, 1], [], []>} : vector<8x32xf32>, vector<32x128xf32>, vector<8x128xf32> -> vector<8x128xf32>
    %298 = arith.addf %296, %297 : vector<8x128xf32>
    %299 = arith.negf %298 : vector<8x128xf32>
    %300 = math.exp %299 : vector<8x128xf32>
    %cst_60 = arith.constant 1.000000e+00 : f32
    %301 = vector.broadcast %cst_60 : f32 to vector<8x128xf32>
    %302 = arith.addf %301, %300 : vector<8x128xf32>
    %303 = arith.divf %301, %302 : vector<8x128xf32>
    %304 = vector.extract_strided_slice %303 {offsets = [0, 64], sizes = [8, 32], strides = [1, 1]} : vector<8x128xf32> to vector<8x32xf32>
    %305 = vector.extract_strided_slice %303 {offsets = [0, 96], sizes = [8, 32], strides = [1, 1]} : vector<8x128xf32> to vector<8x32xf32>
    %306 = vector.extract_strided_slice %298 {offsets = [0, 0], sizes = [8, 32], strides = [1, 1]} : vector<8x128xf32> to vector<8x32xf32>
    %307 = vector.extract_strided_slice %298 {offsets = [0, 32], sizes = [8, 32], strides = [1, 1]} : vector<8x128xf32> to vector<8x32xf32>
    %308 = arith.mulf %304, %307 : vector<8x32xf32>
    %309 = arith.addf %306, %308 : vector<8x32xf32>
    %310 = math.tanh %309 : vector<8x32xf32>
    %311 = arith.subf %275, %310 : vector<8x32xf32>
    %312 = arith.mulf %305, %311 : vector<8x32xf32>
    %313 = arith.addf %310, %312 : vector<8x32xf32>
    %314 = tpu.concatenate %275, %293 in 1 : vector<8x32xf32>, vector<8x32xf32> -> vector<8x64xf32>
    %cst_61 = arith.constant dense<0.000000e+00> : vector<8x128xf32>
    %315 = tpu.matmul %314, %1, %cst_61 {dimension_numbers = #tpu.dot_dimension_numbers<[1], [0], [0], [1], [0, 0, 1, 1], [], []>} : vector<8x64xf32>, vector<64x128xf32>, vector<8x128xf32> -> vector<8x128xf32>
    %316 = arith.addf %315, %4 : vector<8x128xf32>
    %317 = arith.negf %316 : vector<8x128xf32>
    %318 = math.exp %317 : vector<8x128xf32>
    %cst_62 = arith.constant 1.000000e+00 : f32
    %319 = vector.broadcast %cst_62 : f32 to vector<8x128xf32>
    %320 = arith.addf %319, %318 : vector<8x128xf32>
    %321 = arith.divf %319, %320 : vector<8x128xf32>
    %322 = vector.extract_strided_slice %321 {offsets = [0, 64], sizes = [8, 32], strides = [1, 1]} : vector<8x128xf32> to vector<8x32xf32>
    %323 = vector.extract_strided_slice %321 {offsets = [0, 96], sizes = [8, 32], strides = [1, 1]} : vector<8x128xf32> to vector<8x32xf32>
    %324 = vector.extract_strided_slice %316 {offsets = [0, 0], sizes = [8, 32], strides = [1, 1]} : vector<8x128xf32> to vector<8x32xf32>
    %325 = vector.extract_strided_slice %316 {offsets = [0, 32], sizes = [8, 32], strides = [1, 1]} : vector<8x128xf32> to vector<8x32xf32>
    %326 = arith.mulf %322, %325 : vector<8x32xf32>
    %327 = arith.addf %324, %326 : vector<8x32xf32>
    %328 = math.tanh %327 : vector<8x32xf32>
    %329 = arith.subf %293, %328 : vector<8x32xf32>
    %330 = arith.mulf %323, %329 : vector<8x32xf32>
    %331 = arith.addf %328, %330 : vector<8x32xf32>
    %c9_i32 = arith.constant 9 : i32
    %332 = arith.index_cast %c9_i32 : i32 to index
    %c0_63 = arith.constant 0 : index
    %c0_64 = arith.constant 0 : index
    %333 = vector.load %arg0[%332, %c0_63, %c0_64] : memref<16x8x128xf32, #tpu.memory_space<vmem>>, vector<1x8x128xf32>
    %334 = vector.shape_cast %333 : vector<1x8x128xf32> to vector<8x128xf32>
    %cst_65 = arith.constant dense<0.000000e+00> : vector<8x128xf32>
    %335 = tpu.matmul %313, %0, %cst_65 {dimension_numbers = #tpu.dot_dimension_numbers<[1], [0], [0], [1], [0, 0, 1, 1], [], []>} : vector<8x32xf32>, vector<32x128xf32>, vector<8x128xf32> -> vector<8x128xf32>
    %336 = arith.addf %334, %335 : vector<8x128xf32>
    %337 = arith.negf %336 : vector<8x128xf32>
    %338 = math.exp %337 : vector<8x128xf32>
    %cst_66 = arith.constant 1.000000e+00 : f32
    %339 = vector.broadcast %cst_66 : f32 to vector<8x128xf32>
    %340 = arith.addf %339, %338 : vector<8x128xf32>
    %341 = arith.divf %339, %340 : vector<8x128xf32>
    %342 = vector.extract_strided_slice %341 {offsets = [0, 64], sizes = [8, 32], strides = [1, 1]} : vector<8x128xf32> to vector<8x32xf32>
    %343 = vector.extract_strided_slice %341 {offsets = [0, 96], sizes = [8, 32], strides = [1, 1]} : vector<8x128xf32> to vector<8x32xf32>
    %344 = vector.extract_strided_slice %336 {offsets = [0, 0], sizes = [8, 32], strides = [1, 1]} : vector<8x128xf32> to vector<8x32xf32>
    %345 = vector.extract_strided_slice %336 {offsets = [0, 32], sizes = [8, 32], strides = [1, 1]} : vector<8x128xf32> to vector<8x32xf32>
    %346 = arith.mulf %342, %345 : vector<8x32xf32>
    %347 = arith.addf %344, %346 : vector<8x32xf32>
    %348 = math.tanh %347 : vector<8x32xf32>
    %349 = arith.subf %313, %348 : vector<8x32xf32>
    %350 = arith.mulf %343, %349 : vector<8x32xf32>
    %351 = arith.addf %348, %350 : vector<8x32xf32>
    %352 = tpu.concatenate %313, %331 in 1 : vector<8x32xf32>, vector<8x32xf32> -> vector<8x64xf32>
    %cst_67 = arith.constant dense<0.000000e+00> : vector<8x128xf32>
    %353 = tpu.matmul %352, %1, %cst_67 {dimension_numbers = #tpu.dot_dimension_numbers<[1], [0], [0], [1], [0, 0, 1, 1], [], []>} : vector<8x64xf32>, vector<64x128xf32>, vector<8x128xf32> -> vector<8x128xf32>
    %354 = arith.addf %353, %4 : vector<8x128xf32>
    %355 = arith.negf %354 : vector<8x128xf32>
    %356 = math.exp %355 : vector<8x128xf32>
    %cst_68 = arith.constant 1.000000e+00 : f32
    %357 = vector.broadcast %cst_68 : f32 to vector<8x128xf32>
    %358 = arith.addf %357, %356 : vector<8x128xf32>
    %359 = arith.divf %357, %358 : vector<8x128xf32>
    %360 = vector.extract_strided_slice %359 {offsets = [0, 64], sizes = [8, 32], strides = [1, 1]} : vector<8x128xf32> to vector<8x32xf32>
    %361 = vector.extract_strided_slice %359 {offsets = [0, 96], sizes = [8, 32], strides = [1, 1]} : vector<8x128xf32> to vector<8x32xf32>
    %362 = vector.extract_strided_slice %354 {offsets = [0, 0], sizes = [8, 32], strides = [1, 1]} : vector<8x128xf32> to vector<8x32xf32>
    %363 = vector.extract_strided_slice %354 {offsets = [0, 32], sizes = [8, 32], strides = [1, 1]} : vector<8x128xf32> to vector<8x32xf32>
    %364 = arith.mulf %360, %363 : vector<8x32xf32>
    %365 = arith.addf %362, %364 : vector<8x32xf32>
    %366 = math.tanh %365 : vector<8x32xf32>
    %367 = arith.subf %331, %366 : vector<8x32xf32>
    %368 = arith.mulf %361, %367 : vector<8x32xf32>
    %369 = arith.addf %366, %368 : vector<8x32xf32>
    %c10_i32 = arith.constant 10 : i32
    %370 = arith.index_cast %c10_i32 : i32 to index
    %c0_69 = arith.constant 0 : index
    %c0_70 = arith.constant 0 : index
    %371 = vector.load %arg0[%370, %c0_69, %c0_70] : memref<16x8x128xf32, #tpu.memory_space<vmem>>, vector<1x8x128xf32>
    %372 = vector.shape_cast %371 : vector<1x8x128xf32> to vector<8x128xf32>
    %cst_71 = arith.constant dense<0.000000e+00> : vector<8x128xf32>
    %373 = tpu.matmul %351, %0, %cst_71 {dimension_numbers = #tpu.dot_dimension_numbers<[1], [0], [0], [1], [0, 0, 1, 1], [], []>} : vector<8x32xf32>, vector<32x128xf32>, vector<8x128xf32> -> vector<8x128xf32>
    %374 = arith.addf %372, %373 : vector<8x128xf32>
    %375 = arith.negf %374 : vector<8x128xf32>
    %376 = math.exp %375 : vector<8x128xf32>
    %cst_72 = arith.constant 1.000000e+00 : f32
    %377 = vector.broadcast %cst_72 : f32 to vector<8x128xf32>
    %378 = arith.addf %377, %376 : vector<8x128xf32>
    %379 = arith.divf %377, %378 : vector<8x128xf32>
    %380 = vector.extract_strided_slice %379 {offsets = [0, 64], sizes = [8, 32], strides = [1, 1]} : vector<8x128xf32> to vector<8x32xf32>
    %381 = vector.extract_strided_slice %379 {offsets = [0, 96], sizes = [8, 32], strides = [1, 1]} : vector<8x128xf32> to vector<8x32xf32>
    %382 = vector.extract_strided_slice %374 {offsets = [0, 0], sizes = [8, 32], strides = [1, 1]} : vector<8x128xf32> to vector<8x32xf32>
    %383 = vector.extract_strided_slice %374 {offsets = [0, 32], sizes = [8, 32], strides = [1, 1]} : vector<8x128xf32> to vector<8x32xf32>
    %384 = arith.mulf %380, %383 : vector<8x32xf32>
    %385 = arith.addf %382, %384 : vector<8x32xf32>
    %386 = math.tanh %385 : vector<8x32xf32>
    %387 = arith.subf %351, %386 : vector<8x32xf32>
    %388 = arith.mulf %381, %387 : vector<8x32xf32>
    %389 = arith.addf %386, %388 : vector<8x32xf32>
    %390 = tpu.concatenate %351, %369 in 1 : vector<8x32xf32>, vector<8x32xf32> -> vector<8x64xf32>
    %cst_73 = arith.constant dense<0.000000e+00> : vector<8x128xf32>
    %391 = tpu.matmul %390, %1, %cst_73 {dimension_numbers = #tpu.dot_dimension_numbers<[1], [0], [0], [1], [0, 0, 1, 1], [], []>} : vector<8x64xf32>, vector<64x128xf32>, vector<8x128xf32> -> vector<8x128xf32>
    %392 = arith.addf %391, %4 : vector<8x128xf32>
    %393 = arith.negf %392 : vector<8x128xf32>
    %394 = math.exp %393 : vector<8x128xf32>
    %cst_74 = arith.constant 1.000000e+00 : f32
    %395 = vector.broadcast %cst_74 : f32 to vector<8x128xf32>
    %396 = arith.addf %395, %394 : vector<8x128xf32>
    %397 = arith.divf %395, %396 : vector<8x128xf32>
    %398 = vector.extract_strided_slice %397 {offsets = [0, 64], sizes = [8, 32], strides = [1, 1]} : vector<8x128xf32> to vector<8x32xf32>
    %399 = vector.extract_strided_slice %397 {offsets = [0, 96], sizes = [8, 32], strides = [1, 1]} : vector<8x128xf32> to vector<8x32xf32>
    %400 = vector.extract_strided_slice %392 {offsets = [0, 0], sizes = [8, 32], strides = [1, 1]} : vector<8x128xf32> to vector<8x32xf32>
    %401 = vector.extract_strided_slice %392 {offsets = [0, 32], sizes = [8, 32], strides = [1, 1]} : vector<8x128xf32> to vector<8x32xf32>
    %402 = arith.mulf %398, %401 : vector<8x32xf32>
    %403 = arith.addf %400, %402 : vector<8x32xf32>
    %404 = math.tanh %403 : vector<8x32xf32>
    %405 = arith.subf %369, %404 : vector<8x32xf32>
    %406 = arith.mulf %399, %405 : vector<8x32xf32>
    %407 = arith.addf %404, %406 : vector<8x32xf32>
    %c11_i32 = arith.constant 11 : i32
    %408 = arith.index_cast %c11_i32 : i32 to index
    %c0_75 = arith.constant 0 : index
    %c0_76 = arith.constant 0 : index
    %409 = vector.load %arg0[%408, %c0_75, %c0_76] : memref<16x8x128xf32, #tpu.memory_space<vmem>>, vector<1x8x128xf32>
    %410 = vector.shape_cast %409 : vector<1x8x128xf32> to vector<8x128xf32>
    %cst_77 = arith.constant dense<0.000000e+00> : vector<8x128xf32>
    %411 = tpu.matmul %389, %0, %cst_77 {dimension_numbers = #tpu.dot_dimension_numbers<[1], [0], [0], [1], [0, 0, 1, 1], [], []>} : vector<8x32xf32>, vector<32x128xf32>, vector<8x128xf32> -> vector<8x128xf32>
    %412 = arith.addf %410, %411 : vector<8x128xf32>
    %413 = arith.negf %412 : vector<8x128xf32>
    %414 = math.exp %413 : vector<8x128xf32>
    %cst_78 = arith.constant 1.000000e+00 : f32
    %415 = vector.broadcast %cst_78 : f32 to vector<8x128xf32>
    %416 = arith.addf %415, %414 : vector<8x128xf32>
    %417 = arith.divf %415, %416 : vector<8x128xf32>
    %418 = vector.extract_strided_slice %417 {offsets = [0, 64], sizes = [8, 32], strides = [1, 1]} : vector<8x128xf32> to vector<8x32xf32>
    %419 = vector.extract_strided_slice %417 {offsets = [0, 96], sizes = [8, 32], strides = [1, 1]} : vector<8x128xf32> to vector<8x32xf32>
    %420 = vector.extract_strided_slice %412 {offsets = [0, 0], sizes = [8, 32], strides = [1, 1]} : vector<8x128xf32> to vector<8x32xf32>
    %421 = vector.extract_strided_slice %412 {offsets = [0, 32], sizes = [8, 32], strides = [1, 1]} : vector<8x128xf32> to vector<8x32xf32>
    %422 = arith.mulf %418, %421 : vector<8x32xf32>
    %423 = arith.addf %420, %422 : vector<8x32xf32>
    %424 = math.tanh %423 : vector<8x32xf32>
    %425 = arith.subf %389, %424 : vector<8x32xf32>
    %426 = arith.mulf %419, %425 : vector<8x32xf32>
    %427 = arith.addf %424, %426 : vector<8x32xf32>
    %428 = tpu.concatenate %389, %407 in 1 : vector<8x32xf32>, vector<8x32xf32> -> vector<8x64xf32>
    %cst_79 = arith.constant dense<0.000000e+00> : vector<8x128xf32>
    %429 = tpu.matmul %428, %1, %cst_79 {dimension_numbers = #tpu.dot_dimension_numbers<[1], [0], [0], [1], [0, 0, 1, 1], [], []>} : vector<8x64xf32>, vector<64x128xf32>, vector<8x128xf32> -> vector<8x128xf32>
    %430 = arith.addf %429, %4 : vector<8x128xf32>
    %431 = arith.negf %430 : vector<8x128xf32>
    %432 = math.exp %431 : vector<8x128xf32>
    %cst_80 = arith.constant 1.000000e+00 : f32
    %433 = vector.broadcast %cst_80 : f32 to vector<8x128xf32>
    %434 = arith.addf %433, %432 : vector<8x128xf32>
    %435 = arith.divf %433, %434 : vector<8x128xf32>
    %436 = vector.extract_strided_slice %435 {offsets = [0, 64], sizes = [8, 32], strides = [1, 1]} : vector<8x128xf32> to vector<8x32xf32>
    %437 = vector.extract_strided_slice %435 {offsets = [0, 96], sizes = [8, 32], strides = [1, 1]} : vector<8x128xf32> to vector<8x32xf32>
    %438 = vector.extract_strided_slice %430 {offsets = [0, 0], sizes = [8, 32], strides = [1, 1]} : vector<8x128xf32> to vector<8x32xf32>
    %439 = vector.extract_strided_slice %430 {offsets = [0, 32], sizes = [8, 32], strides = [1, 1]} : vector<8x128xf32> to vector<8x32xf32>
    %440 = arith.mulf %436, %439 : vector<8x32xf32>
    %441 = arith.addf %438, %440 : vector<8x32xf32>
    %442 = math.tanh %441 : vector<8x32xf32>
    %443 = arith.subf %407, %442 : vector<8x32xf32>
    %444 = arith.mulf %437, %443 : vector<8x32xf32>
    %445 = arith.addf %442, %444 : vector<8x32xf32>
    %c12_i32 = arith.constant 12 : i32
    %446 = arith.index_cast %c12_i32 : i32 to index
    %c0_81 = arith.constant 0 : index
    %c0_82 = arith.constant 0 : index
    %447 = vector.load %arg0[%446, %c0_81, %c0_82] : memref<16x8x128xf32, #tpu.memory_space<vmem>>, vector<1x8x128xf32>
    %448 = vector.shape_cast %447 : vector<1x8x128xf32> to vector<8x128xf32>
    %cst_83 = arith.constant dense<0.000000e+00> : vector<8x128xf32>
    %449 = tpu.matmul %427, %0, %cst_83 {dimension_numbers = #tpu.dot_dimension_numbers<[1], [0], [0], [1], [0, 0, 1, 1], [], []>} : vector<8x32xf32>, vector<32x128xf32>, vector<8x128xf32> -> vector<8x128xf32>
    %450 = arith.addf %448, %449 : vector<8x128xf32>
    %451 = arith.negf %450 : vector<8x128xf32>
    %452 = math.exp %451 : vector<8x128xf32>
    %cst_84 = arith.constant 1.000000e+00 : f32
    %453 = vector.broadcast %cst_84 : f32 to vector<8x128xf32>
    %454 = arith.addf %453, %452 : vector<8x128xf32>
    %455 = arith.divf %453, %454 : vector<8x128xf32>
    %456 = vector.extract_strided_slice %455 {offsets = [0, 64], sizes = [8, 32], strides = [1, 1]} : vector<8x128xf32> to vector<8x32xf32>
    %457 = vector.extract_strided_slice %455 {offsets = [0, 96], sizes = [8, 32], strides = [1, 1]} : vector<8x128xf32> to vector<8x32xf32>
    %458 = vector.extract_strided_slice %450 {offsets = [0, 0], sizes = [8, 32], strides = [1, 1]} : vector<8x128xf32> to vector<8x32xf32>
    %459 = vector.extract_strided_slice %450 {offsets = [0, 32], sizes = [8, 32], strides = [1, 1]} : vector<8x128xf32> to vector<8x32xf32>
    %460 = arith.mulf %456, %459 : vector<8x32xf32>
    %461 = arith.addf %458, %460 : vector<8x32xf32>
    %462 = math.tanh %461 : vector<8x32xf32>
    %463 = arith.subf %427, %462 : vector<8x32xf32>
    %464 = arith.mulf %457, %463 : vector<8x32xf32>
    %465 = arith.addf %462, %464 : vector<8x32xf32>
    %466 = tpu.concatenate %427, %445 in 1 : vector<8x32xf32>, vector<8x32xf32> -> vector<8x64xf32>
    %cst_85 = arith.constant dense<0.000000e+00> : vector<8x128xf32>
    %467 = tpu.matmul %466, %1, %cst_85 {dimension_numbers = #tpu.dot_dimension_numbers<[1], [0], [0], [1], [0, 0, 1, 1], [], []>} : vector<8x64xf32>, vector<64x128xf32>, vector<8x128xf32> -> vector<8x128xf32>
    %468 = arith.addf %467, %4 : vector<8x128xf32>
    %469 = arith.negf %468 : vector<8x128xf32>
    %470 = math.exp %469 : vector<8x128xf32>
    %cst_86 = arith.constant 1.000000e+00 : f32
    %471 = vector.broadcast %cst_86 : f32 to vector<8x128xf32>
    %472 = arith.addf %471, %470 : vector<8x128xf32>
    %473 = arith.divf %471, %472 : vector<8x128xf32>
    %474 = vector.extract_strided_slice %473 {offsets = [0, 64], sizes = [8, 32], strides = [1, 1]} : vector<8x128xf32> to vector<8x32xf32>
    %475 = vector.extract_strided_slice %473 {offsets = [0, 96], sizes = [8, 32], strides = [1, 1]} : vector<8x128xf32> to vector<8x32xf32>
    %476 = vector.extract_strided_slice %468 {offsets = [0, 0], sizes = [8, 32], strides = [1, 1]} : vector<8x128xf32> to vector<8x32xf32>
    %477 = vector.extract_strided_slice %468 {offsets = [0, 32], sizes = [8, 32], strides = [1, 1]} : vector<8x128xf32> to vector<8x32xf32>
    %478 = arith.mulf %474, %477 : vector<8x32xf32>
    %479 = arith.addf %476, %478 : vector<8x32xf32>
    %480 = math.tanh %479 : vector<8x32xf32>
    %481 = arith.subf %445, %480 : vector<8x32xf32>
    %482 = arith.mulf %475, %481 : vector<8x32xf32>
    %483 = arith.addf %480, %482 : vector<8x32xf32>
    %c13_i32 = arith.constant 13 : i32
    %484 = arith.index_cast %c13_i32 : i32 to index
    %c0_87 = arith.constant 0 : index
    %c0_88 = arith.constant 0 : index
    %485 = vector.load %arg0[%484, %c0_87, %c0_88] : memref<16x8x128xf32, #tpu.memory_space<vmem>>, vector<1x8x128xf32>
    %486 = vector.shape_cast %485 : vector<1x8x128xf32> to vector<8x128xf32>
    %cst_89 = arith.constant dense<0.000000e+00> : vector<8x128xf32>
    %487 = tpu.matmul %465, %0, %cst_89 {dimension_numbers = #tpu.dot_dimension_numbers<[1], [0], [0], [1], [0, 0, 1, 1], [], []>} : vector<8x32xf32>, vector<32x128xf32>, vector<8x128xf32> -> vector<8x128xf32>
    %488 = arith.addf %486, %487 : vector<8x128xf32>
    %489 = arith.negf %488 : vector<8x128xf32>
    %490 = math.exp %489 : vector<8x128xf32>
    %cst_90 = arith.constant 1.000000e+00 : f32
    %491 = vector.broadcast %cst_90 : f32 to vector<8x128xf32>
    %492 = arith.addf %491, %490 : vector<8x128xf32>
    %493 = arith.divf %491, %492 : vector<8x128xf32>
    %494 = vector.extract_strided_slice %493 {offsets = [0, 64], sizes = [8, 32], strides = [1, 1]} : vector<8x128xf32> to vector<8x32xf32>
    %495 = vector.extract_strided_slice %493 {offsets = [0, 96], sizes = [8, 32], strides = [1, 1]} : vector<8x128xf32> to vector<8x32xf32>
    %496 = vector.extract_strided_slice %488 {offsets = [0, 0], sizes = [8, 32], strides = [1, 1]} : vector<8x128xf32> to vector<8x32xf32>
    %497 = vector.extract_strided_slice %488 {offsets = [0, 32], sizes = [8, 32], strides = [1, 1]} : vector<8x128xf32> to vector<8x32xf32>
    %498 = arith.mulf %494, %497 : vector<8x32xf32>
    %499 = arith.addf %496, %498 : vector<8x32xf32>
    %500 = math.tanh %499 : vector<8x32xf32>
    %501 = arith.subf %465, %500 : vector<8x32xf32>
    %502 = arith.mulf %495, %501 : vector<8x32xf32>
    %503 = arith.addf %500, %502 : vector<8x32xf32>
    %504 = tpu.concatenate %465, %483 in 1 : vector<8x32xf32>, vector<8x32xf32> -> vector<8x64xf32>
    %cst_91 = arith.constant dense<0.000000e+00> : vector<8x128xf32>
    %505 = tpu.matmul %504, %1, %cst_91 {dimension_numbers = #tpu.dot_dimension_numbers<[1], [0], [0], [1], [0, 0, 1, 1], [], []>} : vector<8x64xf32>, vector<64x128xf32>, vector<8x128xf32> -> vector<8x128xf32>
    %506 = arith.addf %505, %4 : vector<8x128xf32>
    %507 = arith.negf %506 : vector<8x128xf32>
    %508 = math.exp %507 : vector<8x128xf32>
    %cst_92 = arith.constant 1.000000e+00 : f32
    %509 = vector.broadcast %cst_92 : f32 to vector<8x128xf32>
    %510 = arith.addf %509, %508 : vector<8x128xf32>
    %511 = arith.divf %509, %510 : vector<8x128xf32>
    %512 = vector.extract_strided_slice %511 {offsets = [0, 64], sizes = [8, 32], strides = [1, 1]} : vector<8x128xf32> to vector<8x32xf32>
    %513 = vector.extract_strided_slice %511 {offsets = [0, 96], sizes = [8, 32], strides = [1, 1]} : vector<8x128xf32> to vector<8x32xf32>
    %514 = vector.extract_strided_slice %506 {offsets = [0, 0], sizes = [8, 32], strides = [1, 1]} : vector<8x128xf32> to vector<8x32xf32>
    %515 = vector.extract_strided_slice %506 {offsets = [0, 32], sizes = [8, 32], strides = [1, 1]} : vector<8x128xf32> to vector<8x32xf32>
    %516 = arith.mulf %512, %515 : vector<8x32xf32>
    %517 = arith.addf %514, %516 : vector<8x32xf32>
    %518 = math.tanh %517 : vector<8x32xf32>
    %519 = arith.subf %483, %518 : vector<8x32xf32>
    %520 = arith.mulf %513, %519 : vector<8x32xf32>
    %521 = arith.addf %518, %520 : vector<8x32xf32>
    %c14_i32 = arith.constant 14 : i32
    %522 = arith.index_cast %c14_i32 : i32 to index
    %c0_93 = arith.constant 0 : index
    %c0_94 = arith.constant 0 : index
    %523 = vector.load %arg0[%522, %c0_93, %c0_94] : memref<16x8x128xf32, #tpu.memory_space<vmem>>, vector<1x8x128xf32>
    %524 = vector.shape_cast %523 : vector<1x8x128xf32> to vector<8x128xf32>
    %cst_95 = arith.constant dense<0.000000e+00> : vector<8x128xf32>
    %525 = tpu.matmul %503, %0, %cst_95 {dimension_numbers = #tpu.dot_dimension_numbers<[1], [0], [0], [1], [0, 0, 1, 1], [], []>} : vector<8x32xf32>, vector<32x128xf32>, vector<8x128xf32> -> vector<8x128xf32>
    %526 = arith.addf %524, %525 : vector<8x128xf32>
    %527 = arith.negf %526 : vector<8x128xf32>
    %528 = math.exp %527 : vector<8x128xf32>
    %cst_96 = arith.constant 1.000000e+00 : f32
    %529 = vector.broadcast %cst_96 : f32 to vector<8x128xf32>
    %530 = arith.addf %529, %528 : vector<8x128xf32>
    %531 = arith.divf %529, %530 : vector<8x128xf32>
    %532 = vector.extract_strided_slice %531 {offsets = [0, 64], sizes = [8, 32], strides = [1, 1]} : vector<8x128xf32> to vector<8x32xf32>
    %533 = vector.extract_strided_slice %531 {offsets = [0, 96], sizes = [8, 32], strides = [1, 1]} : vector<8x128xf32> to vector<8x32xf32>
    %534 = vector.extract_strided_slice %526 {offsets = [0, 0], sizes = [8, 32], strides = [1, 1]} : vector<8x128xf32> to vector<8x32xf32>
    %535 = vector.extract_strided_slice %526 {offsets = [0, 32], sizes = [8, 32], strides = [1, 1]} : vector<8x128xf32> to vector<8x32xf32>
    %536 = arith.mulf %532, %535 : vector<8x32xf32>
    %537 = arith.addf %534, %536 : vector<8x32xf32>
    %538 = math.tanh %537 : vector<8x32xf32>
    %539 = arith.subf %503, %538 : vector<8x32xf32>
    %540 = arith.mulf %533, %539 : vector<8x32xf32>
    %541 = arith.addf %538, %540 : vector<8x32xf32>
    %542 = tpu.concatenate %503, %521 in 1 : vector<8x32xf32>, vector<8x32xf32> -> vector<8x64xf32>
    %cst_97 = arith.constant dense<0.000000e+00> : vector<8x128xf32>
    %543 = tpu.matmul %542, %1, %cst_97 {dimension_numbers = #tpu.dot_dimension_numbers<[1], [0], [0], [1], [0, 0, 1, 1], [], []>} : vector<8x64xf32>, vector<64x128xf32>, vector<8x128xf32> -> vector<8x128xf32>
    %544 = arith.addf %543, %4 : vector<8x128xf32>
    %545 = arith.negf %544 : vector<8x128xf32>
    %546 = math.exp %545 : vector<8x128xf32>
    %cst_98 = arith.constant 1.000000e+00 : f32
    %547 = vector.broadcast %cst_98 : f32 to vector<8x128xf32>
    %548 = arith.addf %547, %546 : vector<8x128xf32>
    %549 = arith.divf %547, %548 : vector<8x128xf32>
    %550 = vector.extract_strided_slice %549 {offsets = [0, 64], sizes = [8, 32], strides = [1, 1]} : vector<8x128xf32> to vector<8x32xf32>
    %551 = vector.extract_strided_slice %549 {offsets = [0, 96], sizes = [8, 32], strides = [1, 1]} : vector<8x128xf32> to vector<8x32xf32>
    %552 = vector.extract_strided_slice %544 {offsets = [0, 0], sizes = [8, 32], strides = [1, 1]} : vector<8x128xf32> to vector<8x32xf32>
    %553 = vector.extract_strided_slice %544 {offsets = [0, 32], sizes = [8, 32], strides = [1, 1]} : vector<8x128xf32> to vector<8x32xf32>
    %554 = arith.mulf %550, %553 : vector<8x32xf32>
    %555 = arith.addf %552, %554 : vector<8x32xf32>
    %556 = math.tanh %555 : vector<8x32xf32>
    %557 = arith.subf %521, %556 : vector<8x32xf32>
    %558 = arith.mulf %551, %557 : vector<8x32xf32>
    %559 = arith.addf %556, %558 : vector<8x32xf32>
    %c15_i32 = arith.constant 15 : i32
    %560 = arith.index_cast %c15_i32 : i32 to index
    %c0_99 = arith.constant 0 : index
    %c0_100 = arith.constant 0 : index
    %561 = vector.load %arg0[%560, %c0_99, %c0_100] : memref<16x8x128xf32, #tpu.memory_space<vmem>>, vector<1x8x128xf32>
    %562 = vector.shape_cast %561 : vector<1x8x128xf32> to vector<8x128xf32>
    %cst_101 = arith.constant dense<0.000000e+00> : vector<8x128xf32>
    %563 = tpu.matmul %541, %0, %cst_101 {dimension_numbers = #tpu.dot_dimension_numbers<[1], [0], [0], [1], [0, 0, 1, 1], [], []>} : vector<8x32xf32>, vector<32x128xf32>, vector<8x128xf32> -> vector<8x128xf32>
    %564 = arith.addf %562, %563 : vector<8x128xf32>
    %565 = arith.negf %564 : vector<8x128xf32>
    %566 = math.exp %565 : vector<8x128xf32>
    %cst_102 = arith.constant 1.000000e+00 : f32
    %567 = vector.broadcast %cst_102 : f32 to vector<8x128xf32>
    %568 = arith.addf %567, %566 : vector<8x128xf32>
    %569 = arith.divf %567, %568 : vector<8x128xf32>
    %570 = vector.extract_strided_slice %569 {offsets = [0, 64], sizes = [8, 32], strides = [1, 1]} : vector<8x128xf32> to vector<8x32xf32>
    %571 = vector.extract_strided_slice %569 {offsets = [0, 96], sizes = [8, 32], strides = [1, 1]} : vector<8x128xf32> to vector<8x32xf32>
    %572 = vector.extract_strided_slice %564 {offsets = [0, 0], sizes = [8, 32], strides = [1, 1]} : vector<8x128xf32> to vector<8x32xf32>
    %573 = vector.extract_strided_slice %564 {offsets = [0, 32], sizes = [8, 32], strides = [1, 1]} : vector<8x128xf32> to vector<8x32xf32>
    %574 = arith.mulf %570, %573 : vector<8x32xf32>
    %575 = arith.addf %572, %574 : vector<8x32xf32>
    %576 = math.tanh %575 : vector<8x32xf32>
    %577 = arith.subf %541, %576 : vector<8x32xf32>
    %578 = arith.mulf %571, %577 : vector<8x32xf32>
    %579 = arith.addf %576, %578 : vector<8x32xf32>
    %580 = tpu.concatenate %541, %559 in 1 : vector<8x32xf32>, vector<8x32xf32> -> vector<8x64xf32>
    %cst_103 = arith.constant dense<0.000000e+00> : vector<8x128xf32>
    %581 = tpu.matmul %580, %1, %cst_103 {dimension_numbers = #tpu.dot_dimension_numbers<[1], [0], [0], [1], [0, 0, 1, 1], [], []>} : vector<8x64xf32>, vector<64x128xf32>, vector<8x128xf32> -> vector<8x128xf32>
    %582 = arith.addf %581, %4 : vector<8x128xf32>
    %583 = arith.negf %582 : vector<8x128xf32>
    %584 = math.exp %583 : vector<8x128xf32>
    %cst_104 = arith.constant 1.000000e+00 : f32
    %585 = vector.broadcast %cst_104 : f32 to vector<8x128xf32>
    %586 = arith.addf %585, %584 : vector<8x128xf32>
    %587 = arith.divf %585, %586 : vector<8x128xf32>
    %588 = vector.extract_strided_slice %587 {offsets = [0, 64], sizes = [8, 32], strides = [1, 1]} : vector<8x128xf32> to vector<8x32xf32>
    %589 = vector.extract_strided_slice %587 {offsets = [0, 96], sizes = [8, 32], strides = [1, 1]} : vector<8x128xf32> to vector<8x32xf32>
    %590 = vector.extract_strided_slice %582 {offsets = [0, 0], sizes = [8, 32], strides = [1, 1]} : vector<8x128xf32> to vector<8x32xf32>
    %591 = vector.extract_strided_slice %582 {offsets = [0, 32], sizes = [8, 32], strides = [1, 1]} : vector<8x128xf32> to vector<8x32xf32>
    %592 = arith.mulf %588, %591 : vector<8x32xf32>
    %593 = arith.addf %590, %592 : vector<8x32xf32>
    %594 = math.tanh %593 : vector<8x32xf32>
    %595 = arith.subf %559, %594 : vector<8x32xf32>
    %596 = arith.mulf %589, %595 : vector<8x32xf32>
    %597 = arith.addf %594, %596 : vector<8x32xf32>
    %c15_i32_105 = arith.constant 15 : i32
    %598 = tpu.concatenate %579, %597 in 1 : vector<8x32xf32>, vector<8x32xf32> -> vector<8x64xf32>
    %cst_106 = arith.constant dense<0.000000e+00> : vector<8x128xf32>
    %599 = tpu.matmul %598, %1, %cst_106 {dimension_numbers = #tpu.dot_dimension_numbers<[1], [0], [0], [1], [0, 0, 1, 1], [], []>} : vector<8x64xf32>, vector<64x128xf32>, vector<8x128xf32> -> vector<8x128xf32>
    %600 = arith.addf %599, %4 : vector<8x128xf32>
    %601 = arith.negf %600 : vector<8x128xf32>
    %602 = math.exp %601 : vector<8x128xf32>
    %cst_107 = arith.constant 1.000000e+00 : f32
    %603 = vector.broadcast %cst_107 : f32 to vector<8x128xf32>
    %604 = arith.addf %603, %602 : vector<8x128xf32>
    %605 = arith.divf %603, %604 : vector<8x128xf32>
    %606 = vector.extract_strided_slice %605 {offsets = [0, 64], sizes = [8, 32], strides = [1, 1]} : vector<8x128xf32> to vector<8x32xf32>
    %607 = vector.extract_strided_slice %605 {offsets = [0, 96], sizes = [8, 32], strides = [1, 1]} : vector<8x128xf32> to vector<8x32xf32>
    %608 = vector.extract_strided_slice %600 {offsets = [0, 0], sizes = [8, 32], strides = [1, 1]} : vector<8x128xf32> to vector<8x32xf32>
    %609 = vector.extract_strided_slice %600 {offsets = [0, 32], sizes = [8, 32], strides = [1, 1]} : vector<8x128xf32> to vector<8x32xf32>
    %610 = arith.mulf %606, %609 : vector<8x32xf32>
    %611 = arith.addf %608, %610 : vector<8x32xf32>
    %612 = math.tanh %611 : vector<8x32xf32>
    %613 = arith.subf %597, %612 : vector<8x32xf32>
    %614 = arith.mulf %607, %613 : vector<8x32xf32>
    %615 = arith.addf %612, %614 : vector<8x32xf32>
    %cst_108 = arith.constant dense<0.000000e+00> : vector<8x128xf32>
    %616 = tpu.matmul %615, %5, %cst_108 {dimension_numbers = #tpu.dot_dimension_numbers<[1], [0], [0], [1], [0, 0, 1, 1], [], []>} : vector<8x32xf32>, vector<32x128xf32>, vector<8x128xf32> -> vector<8x128xf32>
    %617 = vector.broadcast %6 : vector<1x128xf32> to vector<8x128xf32>
    %618 = arith.addf %616, %617 : vector<8x128xf32>
    %c0_109 = arith.constant 0 : index
    %c0_110 = arith.constant 0 : index
    %619 = vector.load %arg6[%c0_109, %c0_110] : memref<8x128xf32, #tpu.memory_space<vmem>>, vector<8x128xf32>
    tpu.vector_store %arg6[%c0_109, %c0_110], %618 {strides = array<i32>} : memref<8x128xf32, #tpu.memory_space<vmem>>, vector<8x128xf32>,
    return
  }
}

</mosaic_0001>

<bundles_post_ra>
// kernel: tpu_custom_call.1
= control target key start
LH: loop header
LB: loop body
LE: loop exit
PB: predicated region body
PF: predicated region fallthrough
CT: control target
= control target key end

     0   :  { %11 = vsyncpa [#allocation3], 0  ;;  %s5592_s0 = inlined_call_operand.hbm [shape: f32[16,8,128], index: 0, kind: input, shape index: {}]   ;;  %s5593_s1 = inlined_call_operand.hbm [shape: f32[32,128], index: 1, kind: input, shape index: {}]   ;;  %s5594_s2 = inlined_call_operand.hbm [shape: f32[64,128], index: 2, kind: input, shape index: {}]   ;;  %s5595_s3 = inlined_call_operand.vmem [shape: f32[1,128], index: 3, kind: input, shape index: {}]   ;;  %s5596_s4 = inlined_call_operand.hbm [shape: f32[32,128], index: 4, kind: input, shape index: {}]   ;;  %s5597_s5 = inlined_call_operand.vmem [shape: f32[1,128], index: 5, kind: input, shape index: {}]   ;;  %s5598_s6 = inlined_call_operand.hbm [shape: f32[8,128], index: 6, kind: output, shape index: {}]  }
   0x1   :  { %12 = vsyncpa [#allocation6], 0 }
   0x2   :  { %13 = vsyncpa [#allocation9], 0 }
   0x3   :  { %14 = vsyncpa [#allocation4], 0  ;;  %s4961_s21 = smov [#allocation5]   ;;  %s4962_s23 = smov [#allocation2]  }
   0x4   :  { %s32_s22 = sshll.u32 %s4961_s21, 4  ;;  %s20_s24 = sshll.u32 %s4962_s23, 4  ;;  %s33_s22 = int_to_ptr.vmem [resolvable:$true] %s32_s22  ;;  %s5009_s24 = int_to_ptr.vmem [resolvable:$true] %s20_s24 }
   0x5   :  { %s4843_s27 = scalar_lea.hbm %s5593_s1, 512 }
   0x6   :  { %p4844_p0 = scmp.ne.s32.totalorder %s5593_s1, %s4843_s27  ;;  %p4847_p1 = scmp.lt.u32.totalorder %s4843_s27, %s5593_s1 }
   0x8   :  { %p4849_p2 = pnand %p4847_p1, %p4844_p0 }
   0xa   :  { %4852 = shalt.err (!%p4849_p2)
}
   0xb   :  { %s4853_s8 = scalar_lea.vmem %s33_s22, 512  ;;  %p4858_p4 = scmp.lt.s32.totalorder %s33_s22, %s33_s22 }
   0xc   :  { %p4854_p3 = scmp.ne.s32.totalorder %s33_s22, %s4853_s8  ;;  %p4859_p5 = scmp.lt.s32.totalorder %s4853_s8, %s4853_s8 }
   0xe   :  { %p4860_p6 = por %p4859_p5, %p4858_p4 }
  0x10   :  { %p4861_p7 = pnand %p4860_p6, %p4854_p3 }
  0x12   :  { %4864 = shalt.err (!%p4861_p7)
}
  0x13   :  { %s4963_s9 = smov 128   ;;  %s4964_s10 = smov 8  }
  0x14   :  { %38 = dma.hbm_to_vmem [thread:$0]  %s5593_s1, 512, %s33_s22, [#allocation6], %s4963_s9, %s4963_s9, %s4964_s10  }
  0x15   :  { %s4865_s15 = scalar_lea.hbm %s5592_s0, 2048 }
  0x16   :  { %p4866_p8 = scmp.ne.s32.totalorder %s5592_s0, %s4865_s15  ;;  %p4869_p9 = scmp.lt.u32.totalorder %s4865_s15, %s5592_s0 }
  0x18   :  { %p4871_p10 = pnand %p4869_p9, %p4866_p8 }
  0x1a   :  { %4874 = shalt.err (!%p4871_p10)
}
  0x1b   :  { %s4875_s20 = scalar_lea.vmem %s5009_s24, 2048  ;;  %p4880_p12 = scmp.lt.s32.totalorder %s5009_s24, %s5009_s24 }
  0x1c   :  { %p4876_p11 = scmp.ne.s32.totalorder %s5009_s24, %s4875_s20  ;;  %p4881_p13 = scmp.lt.s32.totalorder %s4875_s20, %s4875_s20 }
  0x1e   :  { %p4882_p0 = por %p4881_p13, %p4880_p12 }
  0x20   :  { %p4883_p1 = pnand %p4882_p0, %p4876_p11 }
  0x22   :  { %4886 = shalt.err (!%p4883_p1)
}
  0x23   :  { %26 = dma.hbm_to_vmem [thread:$0]  %s5592_s0, 2048, %s5009_s24, [#allocation3], %s4963_s9, %s4963_s9, %s4964_s10  }
  0x24   :  { %s4965_s22 = smov [#allocation7]   ;;  %s4966_s25 = smov [#allocation8]  }
  0x25   :  { %s44_s23 = sshll.u32 %s4965_s22, 4  ;;  %s58_s26 = sshll.u32 %s4966_s25, 4  ;;  %s45_s23 = int_to_ptr.vmem [resolvable:$true] %s44_s23  ;;  %s5046_s26 = int_to_ptr.vmem [resolvable:$true] %s58_s26 }
  0x26   :  { %s4887_s29 = scalar_lea.hbm %s5594_s2, 1024 }
  0x27   :  { %p4888_p2 = scmp.ne.s32.totalorder %s5594_s2, %s4887_s29  ;;  %p4891_p3 = scmp.lt.u32.totalorder %s4887_s29, %s5594_s2 }
  0x29   :  { %p4893_p4 = pnand %p4891_p3, %p4888_p2 }
  0x2b   :  { %4896 = shalt.err (!%p4893_p4)
}
  0x2c   :  { %s4897_s0 = scalar_lea.vmem %s45_s23, 1024  ;;  %p4902_p6 = scmp.lt.s32.totalorder %s45_s23, %s45_s23 }
  0x2d   :  { %p4898_p5 = scmp.ne.s32.totalorder %s45_s23, %s4897_s0  ;;  %p4903_p7 = scmp.lt.s32.totalorder %s4897_s0, %s4897_s0 }
  0x2f   :  { %p4904_p8 = por %p4903_p7, %p4902_p6 }
  0x31   :  { %p4905_p9 = pnand %p4904_p8, %p4898_p5 }
  0x33   :  { %4908 = shalt.err (!%p4905_p9)
}
  0x34   :  { %50 = dma.hbm_to_vmem [thread:$0]  %s5594_s2, 1024, %s45_s23, [#allocation6], %s4963_s9, %s4963_s9, %s4964_s10  }
  0x35   :  { %s4909_s15 = scalar_lea.hbm %s5596_s4, 512 }
  0x36   :  { %p4910_p10 = scmp.ne.s32.totalorder %s5596_s4, %s4909_s15  ;;  %p4913_p11 = scmp.lt.u32.totalorder %s4909_s15, %s5596_s4 }
  0x38   :  { %p4915_p12 = pnand %p4913_p11, %p4910_p10 }
  0x3a   :  { %4918 = shalt.err (!%p4915_p12)
}
  0x3b   :  { %s4919_s20 = scalar_lea.vmem %s5046_s26, 512  ;;  %p4924_p0 = scmp.lt.s32.totalorder %s5046_s26, %s5046_s26 }
  0x3c   :  { %p4920_p13 = scmp.ne.s32.totalorder %s5046_s26, %s4919_s20  ;;  %p4925_p1 = scmp.lt.s32.totalorder %s4919_s20, %s4919_s20 }
  0x3e   :  { %p4926_p2 = por %p4925_p1, %p4924_p0 }
  0x40   :  { %p4927_p3 = pnand %p4926_p2, %p4920_p13 }
  0x42   :  { %4930 = shalt.err (!%p4927_p3)
}
  0x43   :  { %64 = dma.hbm_to_vmem [thread:$0]  %s5596_s4, 512, %s5046_s26, [#allocation9], %s4963_s9, %s4963_s9, %s4964_s10  }
  0x44   :  { %4953 = dma.done.wait [#allocation3], 2048  }
  0x45   :  { %4954 = vsyncadd [#allocation3], 4294965248 }
  0x46   :  { %4955 = dma.done.wait [#allocation6], 1536  }
  0x47   :  { %4956 = vsyncadd [#allocation6], 4294965760 }
  0x48   :  { %4957 = dma.done.wait [#allocation9], 512  }
  0x49   :  { %4958 = vsyncadd [#allocation9], 4294966784  ;;  %v4967_v0 = vmov 0.0|0.0   ;;  %vm4968_vm0 = vmmov 0   ;;  %v4969_v1 = vmov 0.0   ;;  %v79_v2 = vld [vmem:[#allocation5] sm:$0xff] }
  0x4a   :  { %4343 = vmatprep.subr.bf16.mxu0 %v4967_v0  ;;  %3860 = vmatprep.mubr.msk.f32.mxu0 %vm4968_vm0, %v4969_v1  ;;  %v80_v3 = vld [vmem:[#allocation5 + $0x8] sm:$0xff]  ;;  %v81_v4 = vld [vmem:[#allocation5 + $0x10] sm:$0xff]  ;;  %v82_v6 = vld [vmem:[#allocation5 + $0x18] sm:$0xff]  ;;  %s4970_s4 = smov 32   ;;  %s4971_s9 = smov 64   ;;  %vm104_vm1 = vcmask 261120  }
  0x4b   :  { %4349 = vmatprep.subr.bf16.mxu1 %v4967_v0  ;;  %3871 = vmatprep.mubr.msk.f32.mxu1 %vm4968_vm0, %v4969_v1  ;;  %v5089_v5 = vpack.c.bf16 %v80_v3, %v79_v2  ;;  %v5092_v7 = vpack.c.bf16 %v82_v6, %v81_v4  ;;  %v103_v8 = vld [vmem:[#allocation2] sm:$0xff]  ;;  %v84_v21 = vld [vmem:[#allocation7 + $0x8] sm:$0xff]  ;;  %v85_v22 = vld [vmem:[#allocation7 + $0x10] sm:$0xff]  ;;  %s4972_s10 = smov 96   ;;  %vm312_vm2 = vcmask 523264   ;;  %s4973_s27 = smov [#allocation10]  }
  0x4c   :  { %v83_v20 = vld [vmem:[#allocation7] sm:$0xff]  ;;  %v86_v24 = vld [vmem:[#allocation7 + $0x18] sm:$0xff]  ;;  %v88_v27 = vld [vmem:[#allocation7 + $0x28] sm:$0xff]  ;;  %s3546_s28 = sshll.u32 %s4973_s27, 4  ;;  %s3547_s28 = int_to_ptr.vmem [resolvable:$true] %s3546_s28 }
  0x4d   :  { %4345 = vmatpush3.bf16.msra.mxu0 %v5089_v5  ;;  %4351 = vmatpush3.bf16.msra.mxu1 %v5089_v5  ;;  %v5106_v23 = vpack.c.bf16 %v84_v21, %v83_v20  ;;  %v5109_v25 = vpack.c.bf16 %v86_v24, %v85_v22  ;;  %v87_v26 = vld [vmem:[#allocation7 + $0x20] sm:$0xff]  ;;  %v89_v31 = vld [vmem:[#allocation7 + $0x30] sm:$0xff]  ;;  %v90_v32 = vld [vmem:[#allocation7 + $0x38] sm:$0xff]  ;;  %s4931_s29 = scalar_lea.vmem %s3547_s28, 128  ;;  %p4936_p5 = scmp.lt.s32.totalorder %s3547_s28, %s3547_s28 }
  0x4e   :  { %4346 = vmatprep.subr.bf16.mxu0 %v4967_v0  ;;  %4352 = vmatprep.subr.bf16.mxu1 %v4967_v0  ;;  %v5113_v28 = vpack.c.bf16 %v88_v27, %v87_v26  ;;  %v5119_v33 = vpack.c.bf16 %v90_v32, %v89_v31  ;;  %v208_v39 = vld [vmem:[#allocation2 + $0x8] sm:$0xff]  ;;  %v5142_v40 = vld [vmem:[%s5595_s3] ss:$0 sm:$0xff]  ;;  %p4932_p4 = scmp.ne.s32.totalorder %s3547_s28, %s4931_s29  ;;  %p4937_p6 = scmp.lt.s32.totalorder %s4931_s29, %s4931_s29 }
  0x50   :  { %p4938_p7 = por %p4937_p6, %p4936_p5 }
  0x51   :  { %4348 = vmatpush3.bf16.msra.mxu0 %v5092_v7  ;;  %4354 = vmatpush3.bf16.msra.mxu1 %v5092_v7 }
  0x52   :  { %4355 = vmatprep.subr.bf16.mxu0 %v4967_v0  ;;  %4367 = vmatprep.subr.bf16.mxu1 %v4967_v0  ;;  %p4939_p8 = pnand %p4938_p7, %p4932_p4 }
  0x54   :  { %3861 = vmatmul.mubr.f32.vlgmr.msra.gmra.mrb[0].mxu0 %v4969_v1 }
  0x55   :  { %3890 = vmatprep.mubr.msk.f32.mxu0 %vm4968_vm0, %v4969_v1  ;;  %4357 = vmatpush3.bf16.msra.mxu0 %v5106_v23 }
  0x56   :  { %4358 = vmatprep.subr.bf16.mxu0 %v4967_v0 }
  0x59   :  { %4360 = vmatpush3.bf16.msra.mxu0 %v5109_v25 }
  0x5a   :  { %4361 = vmatprep.subr.bf16.mxu0 %v4967_v0 }
  0x5d   :  { %4363 = vmatpush3.bf16.msra.mxu0 %v5113_v28 }
  0x5e   :  { %4364 = vmatprep.subr.bf16.mxu0 %v4967_v0 }
  0x61   :  { %4366 = vmatpush3.bf16.msra.mxu0 %v5119_v33 }
  0x62   :  { %4385 = vmatprep.subr.bf16.mxu0 %v4967_v0 }
 0x127   :  { %v174_v9 = vpop.f32.mrb[0].mxu0 }
 0x128   :  { %v178_v10 = vadd.f32 %v174_v9, %v103_v8  ;;  %v3862_v11 = vpop.f32.mrb[1].mxu0 }
 0x12a   :  { %186 = vrot.lane.b32.xlu0 %v178_v10, %s4970_s4  ;;  %v3558_v12 = vmul.f32 -1.442695, %v178_v10 }
 0x12c   :  { %4650 = vpow2.f32 %v3558_v12 }
 0x136   :  { %v4651_v13 = vpop.eup %4650 }
 0x137   :  { %v182_v14 = vadd.f32 1.0, %v4651_v13 }
 0x139   :  { %4652 = vrcp.f32 %v182_v14 }
 0x143   :  { %v4653_v15 = vpop.eup %4652 }
 0x19c   :  { %v187_v16 = vpop.permute.xlu0 %186 }
 0x19d   :  { %v189_v17 = vmul.f32 %v4653_v15, %v187_v16 }
 0x19f   :  { %191 = vrot.lane.b32.xlu0 %v189_v17, %s4971_s9  ;;  %v415_v17 = vld [vmem:[#allocation2 + $0x10] sm:$0xff] }
 0x211   :  { %v192_v18 = vpop.permute.xlu0 %191 }
 0x212   :  { %v194_v19 = vadd.f32 %v192_v18, %v178_v10 }
 0x214   :  { %4654 = vtanh.f32 %v194_v19 }
 0x21e   :  { %v4655_v29 = vpop.eup %4654 }
 0x21f   :  { %v196_v30 = vsub.f32 0.0, %v4655_v29 }
 0x221   :  { %198 = vrot.lane.b32.xlu1 %v196_v30, %s4972_s10 }
 0x293   :  { %v199_v34 = vpop.permute.xlu1 %198 }
 0x294   :  { %v201_v35 = vmul.f32 %v4653_v15, %v199_v34 }
 0x296   :  { %203 = vrot.lane.b32.xlu1 %v201_v35, %s4970_s4 }
 0x308   :  { %v204_v36 = vpop.permute.xlu1 %203 }
 0x309   :  { %v206_v37 = vadd.f32 %v4655_v29, %v204_v36 }
 0x30b   :  { %3872 = vmatmul.mubr.msk.f32.vlgmr.msra.gmra.mrb[0].mxu1 %vm104_vm1, %v206_v37  ;;  %v311_v38 = vsel %vm104_vm1, %v206_v37, 0.0 }
 0x30c   :  { %3891 = vmatmul.mubr.msk.f32.vlgmr.msra.gmra.mrb[2].mxu0 %vm312_vm2, %v311_v38  ;;  %4369 = vmatpush3.bf16.msra.mxu1 %v5089_v5 }
 0x30d   :  { %4370 = vmatprep.subr.bf16.mxu1 %v4967_v0  ;;  %3901 = vmatprep.mubr.msk.f32.mxu1 %vm4968_vm0, %v4969_v1 }
 0x30e   :  { %4387 = vmatpush3.bf16.msra.mxu0 %v5089_v5  ;;  %3931 = vmatprep.mubr.msk.f32.mxu0 %vm4968_vm0, %v4969_v1 }
 0x30f   :  { %4388 = vmatprep.subr.bf16.mxu0 %v4967_v0 }
 0x310   :  { %4372 = vmatpush3.bf16.msra.mxu1 %v5092_v7 }
 0x311   :  { %4373 = vmatprep.subr.bf16.mxu1 %v4967_v0 }
 0x312   :  { %4390 = vmatpush3.bf16.msra.mxu0 %v5092_v7 }
 0x313   :  { %4391 = vmatprep.subr.bf16.mxu0 %v4967_v0 }
 0x3de   :  { %v278_v41 = vpop.f32.mrb[0].mxu1 }
 0x3df   :  { %v282_v42 = vadd.f32 %v278_v41, %v208_v39  ;;  %v3873_v43 = vpop.f32.mrb[1].mxu1  ;;  %v382_v44 = vpop.f32.mrb[2].mxu0 }
 0x3e0   :  { %v383_v45 = vadd.f32 %v5142_v40, %v382_v44  ;;  %v3892_v46 = vpop.f32.mrb[3].mxu0 }
 0x3e1   :  { %290 = vrot.lane.b32.xlu1 %v282_v42, %s4970_s4  ;;  %v3560_v47 = vmul.f32 -1.442695, %v282_v42 }
 0x3e2   :  { %393 = vrot.lane.b32.xlu0 %v383_v45, %s4970_s4  ;;  %v3562_v48 = vmul.f32 -1.442695, %v383_v45 }
 0x3e3   :  { %4656 = vpow2.f32 %v3560_v47 }
 0x3e4   :  { %4658 = vpow2.f32 %v3562_v48 }
 0x3ed   :  { %v4657_v49 = vpop.eup %4656 }
 0x3ee   :  { %v4659_v50 = vpop.eup %4658  ;;  %v286_v51 = vadd.f32 1.0, %v4657_v49 }
 0x3ef   :  { %v389_v52 = vadd.f32 1.0, %v4659_v50 }
 0x3f0   :  { %4660 = vrcp.f32 %v286_v51 }
 0x3f1   :  { %4662 = vrcp.f32 %v389_v52 }
 0x3fa   :  { %v4661_v53 = vpop.eup %4660 }
 0x3fb   :  { %v4663_v55 = vpop.eup %4662 }
 0x453   :  { %v291_v54 = vpop.permute.xlu1 %290 }
 0x454   :  { %v293_v56 = vmul.f32 %v4661_v53, %v291_v54  ;;  %v394_v57 = vpop.permute.xlu0 %393 }
 0x455   :  { %v396_v58 = vmul.f32 %v4663_v55, %v394_v57  ;;  %v625_v57 = vld [vmem:[#allocation2 + $0x18] sm:$0xff] }
 0x456   :  { %295 = vrot.lane.b32.xlu1 %v293_v56, %s4971_s9 }
 0x457   :  { %398 = vrot.lane.b32.xlu0 %v396_v58, %s4971_s9 }
 0x4c8   :  { %v296_v59 = vpop.permute.xlu1 %295 }
 0x4c9   :  { %v298_v60 = vadd.f32 %v296_v59, %v282_v42  ;;  %v399_v61 = vpop.permute.xlu0 %398 }
 0x4ca   :  { %v401_v62 = vadd.f32 %v399_v61, %v383_v45 }
 0x4cb   :  { %4664 = vtanh.f32 %v298_v60 }
 0x4cc   :  { %4666 = vtanh.f32 %v401_v62 }
 0x4d5   :  { %v4665_v63 = vpop.eup %4664 }
 0x4d6   :  { %v4667_v2 = vpop.eup %4666  ;;  %v300_v3 = vsub.f32 %v206_v37, %v4665_v63 }
 0x4d7   :  { %v403_v4 = vsub.f32 0.0, %v4667_v2 }
 0x4d8   :  { %302 = vrot.lane.b32.xlu1 %v300_v3, %s4972_s10 }
 0x4d9   :  { %405 = vrot.lane.b32.xlu0 %v403_v4, %s4972_s10 }
 0x54a   :  { %v303_v6 = vpop.permute.xlu1 %302 }
 0x54b   :  { %v305_v8 = vmul.f32 %v4661_v53, %v303_v6  ;;  %v406_v9 = vpop.permute.xlu0 %405 }
 0x54c   :  { %v408_v10 = vmul.f32 %v4663_v55, %v406_v9 }
 0x54d   :  { %307 = vrot.lane.b32.xlu1 %v305_v8, %s4970_s4 }
 0x54e   :  { %410 = vrot.lane.b32.xlu0 %v408_v10, %s4970_s4 }
 0x5bf   :  { %v308_v11 = vpop.permute.xlu1 %307 }
 0x5c0   :  { %v310_v12 = vadd.f32 %v4665_v63, %v308_v11  ;;  %v411_v13 = vpop.permute.xlu0 %410 }
 0x5c1   :  { %v413_v14 = vadd.f32 %v4667_v2, %v411_v13 }
 0x5c2   :  { %3902 = vmatmul.mubr.msk.f32.vlgmr.msra.gmra.mrb[2].mxu1 %vm104_vm1, %v310_v12 }
 0x5c3   :  { %519 = vrot.lane.b32.xlu0 %v413_v14, %s4970_s4  ;;  %4375 = vmatpush3.bf16.msra.mxu1 %v5106_v23 }
 0x5c4   :  { %4376 = vmatprep.subr.bf16.mxu1 %v4967_v0  ;;  %3920 = vmatprep.mubr.msk.f32.mxu1 %vm4968_vm0, %v4969_v1 }
 0x5c7   :  { %4378 = vmatpush3.bf16.msra.mxu1 %v5109_v25 }
 0x5c8   :  { %4379 = vmatprep.subr.bf16.mxu1 %v4967_v0 }
 0x5cb   :  { %4381 = vmatpush3.bf16.msra.mxu1 %v5113_v28 }
 0x5cc   :  { %4382 = vmatprep.subr.bf16.mxu1 %v4967_v0 }
 0x5cf   :  { %4384 = vmatpush3.bf16.msra.mxu1 %v5119_v33 }
 0x5d0   :  { %4403 = vmatprep.subr.bf16.mxu1 %v4967_v0 }
 0x635   :  { %v520_v15 = vpop.permute.xlu0 %519 }
 0x636   :  { %v522_v16 = vsel %vm104_vm1, %v310_v12, %v520_v15 }
 0x637   :  { %3921 = vmatmul.mubr.msk.f32.vlgmr.msra.gmra.mrb[4].mxu1 %vm312_vm2, %v522_v16 }
 0x638   :  { %4405 = vmatpush3.bf16.msra.mxu1 %v5089_v5  ;;  %3961 = vmatprep.mubr.msk.f32.mxu1 %vm4968_vm0, %v4969_v1 }
 0x639   :  { %4406 = vmatprep.subr.bf16.mxu1 %v4967_v0 }
 0x63c   :  { %4408 = vmatpush3.bf16.msra.mxu1 %v5092_v7 }
 0x63d   :  { %4409 = vmatprep.subr.bf16.mxu1 %v4967_v0 }
 0x695   :  { %v485_v18 = vpop.f32.mrb[2].mxu1 }
 0x696   :  { %v489_v19 = vadd.f32 %v485_v18, %v415_v17  ;;  %v3903_v20 = vpop.f32.mrb[3].mxu1 }
 0x698   :  { %497 = vrot.lane.b32.xlu0 %v489_v19, %s4970_s4  ;;  %v3564_v21 = vmul.f32 -1.442695, %v489_v19 }
 0x69a   :  { %4668 = vpow2.f32 %v3564_v21 }
 0x6a4   :  { %v4669_v22 = vpop.eup %4668 }
 0x6a5   :  { %v493_v24 = vadd.f32 1.0, %v4669_v22 }
 0x6a7   :  { %4670 = vrcp.f32 %v493_v24 }
 0x6b1   :  { %v4671_v26 = vpop.eup %4670 }
 0x70a   :  { %v592_v27 = vpop.f32.mrb[4].mxu1  ;;  %v498_v29 = vpop.permute.xlu0 %497 }
 0x70b   :  { %v593_v30 = vadd.f32 %v5142_v40, %v592_v27  ;;  %v500_v31 = vmul.f32 %v4671_v26, %v498_v29  ;;  %v3922_v32 = vpop.f32.mrb[5].mxu1 }
 0x70d   :  { %603 = vrot.lane.b32.xlu1 %v593_v30, %s4970_s4  ;;  %502 = vrot.lane.b32.xlu0 %v500_v31, %s4971_s9  ;;  %v3566_v34 = vmul.f32 -1.442695, %v593_v30 }
 0x70f   :  { %4672 = vpow2.f32 %v3566_v34 }
 0x719   :  { %v4673_v35 = vpop.eup %4672 }
 0x71a   :  { %v599_v36 = vadd.f32 1.0, %v4673_v35 }
 0x71c   :  { %4674 = vrcp.f32 %v599_v36 }
 0x726   :  { %v4675_v37 = vpop.eup %4674 }
 0x77f   :  { %v604_v38 = vpop.permute.xlu1 %603  ;;  %v503_v39 = vpop.permute.xlu0 %502 }
 0x780   :  { %v606_v41 = vmul.f32 %v4675_v37, %v604_v38  ;;  %v505_v42 = vadd.f32 %v503_v39, %v489_v19 }
 0x782   :  { %4676 = vtanh.f32 %v505_v42  ;;  %608 = vrot.lane.b32.xlu1 %v606_v41, %s4971_s9  ;;  %v835_v41 = vld [vmem:[#allocation2 + $0x20] sm:$0xff] }
 0x78c   :  { %v4677_v43 = vpop.eup %4676 }
 0x78d   :  { %v507_v44 = vsub.f32 %v310_v12, %v4677_v43 }
 0x78f   :  { %509 = vrot.lane.b32.xlu0 %v507_v44, %s4972_s10 }
 0x7f4   :  { %v609_v45 = vpop.permute.xlu1 %608 }
 0x7f5   :  { %v611_v46 = vadd.f32 %v609_v45, %v593_v30 }
 0x7f7   :  { %4678 = vtanh.f32 %v611_v46 }
 0x801   :  { %v4679_v47 = vpop.eup %4678  ;;  %v510_v48 = vpop.permute.xlu0 %509 }
 0x802   :  { %v512_v49 = vmul.f32 %v4671_v26, %v510_v48  ;;  %v613_v50 = vsub.f32 %v413_v14, %v4679_v47 }
 0x804   :  { %615 = vrot.lane.b32.xlu1 %v613_v50, %s4972_s10  ;;  %514 = vrot.lane.b32.xlu0 %v512_v49, %s4970_s4 }
 0x876   :  { %v616_v51 = vpop.permute.xlu1 %615  ;;  %v515_v52 = vpop.permute.xlu0 %514 }
 0x877   :  { %v618_v53 = vmul.f32 %v4675_v37, %v616_v51  ;;  %v517_v54 = vadd.f32 %v4677_v43, %v515_v52 }
 0x879   :  { %620 = vrot.lane.b32.xlu1 %v618_v53, %s4970_s4  ;;  %3932 = vmatmul.mubr.msk.f32.vlgmr.msra.gmra.mrb[4].mxu0 %vm104_vm1, %v517_v54 }
 0x87a   :  { %4393 = vmatpush3.bf16.msra.mxu0 %v5106_v23  ;;  %3950 = vmatprep.mubr.msk.f32.mxu0 %vm4968_vm0, %v4969_v1 }
 0x87b   :  { %4394 = vmatprep.subr.bf16.mxu0 %v4967_v0 }
 0x87e   :  { %4396 = vmatpush3.bf16.msra.mxu0 %v5109_v25 }
 0x87f   :  { %4397 = vmatprep.subr.bf16.mxu0 %v4967_v0 }
 0x882   :  { %4399 = vmatpush3.bf16.msra.mxu0 %v5113_v28 }
 0x883   :  { %4400 = vmatprep.subr.bf16.mxu0 %v4967_v0 }
 0x886   :  { %4402 = vmatpush3.bf16.msra.mxu0 %v5119_v33 }
 0x887   :  { %4421 = vmatprep.subr.bf16.mxu0 %v4967_v0 }
 0x8eb   :  { %v621_v55 = vpop.permute.xlu1 %620 }
 0x8ec   :  { %v623_v56 = vadd.f32 %v4679_v47, %v621_v55 }
 0x8ee   :  { %729 = vrot.lane.b32.xlu1 %v623_v56, %s4970_s4 }
 0x94c   :  { %v695_v58 = vpop.f32.mrb[4].mxu0 }
 0x94d   :  { %v699_v59 = vadd.f32 %v695_v58, %v625_v57  ;;  %v3933_v60 = vpop.f32.mrb[5].mxu0 }
 0x94f   :  { %707 = vrot.lane.b32.xlu1 %v699_v59, %s4970_s4  ;;  %v3568_v63 = vmul.f32 -1.442695, %v699_v59 }
 0x951   :  { %4680 = vpow2.f32 %v3568_v63 }
 0x95b   :  { %v4681_v2 = vpop.eup %4680 }
 0x95c   :  { %v703_v3 = vadd.f32 1.0, %v4681_v2 }
 0x95e   :  { %4682 = vrcp.f32 %v703_v3 }
 0x960   :  { %v730_v61 = vpop.permute.xlu1 %729 }
 0x961   :  { %v732_v62 = vsel %vm104_vm1, %v517_v54, %v730_v61 }
 0x962   :  { %3951 = vmatmul.mubr.msk.f32.vlgmr.msra.gmra.mrb[6].mxu0 %vm312_vm2, %v732_v62 }
 0x963   :  { %4423 = vmatpush3.bf16.msra.mxu0 %v5089_v5  ;;  %3991 = vmatprep.mubr.msk.f32.mxu0 %vm4968_vm0, %v4969_v1 }
 0x964   :  { %4424 = vmatprep.subr.bf16.mxu0 %v4967_v0 }
 0x967   :  { %4426 = vmatpush3.bf16.msra.mxu0 %v5092_v7 }
 0x968   :  { %4427 = vmatprep.subr.bf16.mxu0 %v4967_v0  ;;  %v4683_v4 = vpop.eup %4682 }
 0x9c1   :  { %v708_v6 = vpop.permute.xlu1 %707 }
 0x9c2   :  { %v710_v8 = vmul.f32 %v4683_v4, %v708_v6 }
 0x9c4   :  { %712 = vrot.lane.b32.xlu1 %v710_v8, %s4971_s9 }
 0xa35   :  { %v802_v9 = vpop.f32.mrb[6].mxu0 }
 0xa36   :  { %v803_v10 = vadd.f32 %v5142_v40, %v802_v9  ;;  %v713_v11 = vpop.permute.xlu1 %712  ;;  %v3952_v12 = vpop.f32.mrb[7].mxu0 }
 0xa37   :  { %v715_v13 = vadd.f32 %v713_v11, %v699_v59 }
 0xa38   :  { %813 = vrot.lane.b32.xlu0 %v803_v10, %s4970_s4  ;;  %v3570_v16 = vmul.f32 -1.442695, %v803_v10 }
 0xa39   :  { %4684 = vtanh.f32 %v715_v13 }
 0xa3a   :  { %4686 = vpow2.f32 %v3570_v16 }
 0xa43   :  { %v4685_v14 = vpop.eup %4684 }
 0xa44   :  { %v717_v15 = vsub.f32 %v517_v54, %v4685_v14  ;;  %v4687_v17 = vpop.eup %4686 }
 0xa45   :  { %v809_v18 = vadd.f32 1.0, %v4687_v17 }
 0xa46   :  { %719 = vrot.lane.b32.xlu1 %v717_v15, %s4972_s10 }
 0xa47   :  { %4688 = vrcp.f32 %v809_v18  ;;  %v1045_v18 = vld [vmem:[#allocation2 + $0x28] sm:$0xff] }
 0xa51   :  { %v4689_v19 = vpop.eup %4688 }
 0xaaa   :  { %v814_v20 = vpop.permute.xlu0 %813 }
 0xaab   :  { %v816_v21 = vmul.f32 %v4689_v19, %v814_v20 }
 0xaad   :  { %818 = vrot.lane.b32.xlu0 %v816_v21, %s4971_s9 }
 0xab8   :  { %v720_v22 = vpop.permute.xlu1 %719 }
 0xab9   :  { %v722_v24 = vmul.f32 %v4683_v4, %v720_v22 }
 0xabb   :  { %724 = vrot.lane.b32.xlu1 %v722_v24, %s4970_s4 }
 0xb1f   :  { %v819_v26 = vpop.permute.xlu0 %818 }
 0xb20   :  { %v821_v27 = vadd.f32 %v819_v26, %v803_v10 }
 0xb22   :  { %4690 = vtanh.f32 %v821_v27 }
 0xb2c   :  { %v4691_v29 = vpop.eup %4690 }
 0xb2d   :  { %v725_v30 = vpop.permute.xlu1 %724  ;;  %v823_v31 = vsub.f32 %v623_v56, %v4691_v29 }
 0xb2e   :  { %v727_v32 = vadd.f32 %v4685_v14, %v725_v30 }
 0xb2f   :  { %825 = vrot.lane.b32.xlu0 %v823_v31, %s4972_s10 }
 0xb30   :  { %3962 = vmatmul.mubr.msk.f32.vlgmr.msra.gmra.mrb[6].mxu1 %vm104_vm1, %v727_v32 }
 0xb31   :  { %4411 = vmatpush3.bf16.msra.mxu1 %v5106_v23  ;;  %3980 = vmatprep.mubr.msk.f32.mxu1 %vm4968_vm0, %v4969_v1 }
 0xb32   :  { %4412 = vmatprep.subr.bf16.mxu1 %v4967_v0 }
 0xb35   :  { %4414 = vmatpush3.bf16.msra.mxu1 %v5109_v25 }
 0xb36   :  { %4415 = vmatprep.subr.bf16.mxu1 %v4967_v0 }
 0xb39   :  { %4417 = vmatpush3.bf16.msra.mxu1 %v5113_v28 }
 0xb3a   :  { %4418 = vmatprep.subr.bf16.mxu1 %v4967_v0 }
 0xb3d   :  { %4420 = vmatpush3.bf16.msra.mxu1 %v5119_v33 }
 0xb3e   :  { %4439 = vmatprep.subr.bf16.mxu1 %v4967_v0 }
 0xba1   :  { %v826_v34 = vpop.permute.xlu0 %825 }
 0xba2   :  { %v828_v35 = vmul.f32 %v4689_v19, %v826_v34 }
 0xba4   :  { %830 = vrot.lane.b32.xlu0 %v828_v35, %s4970_s4 }
 0xc03   :  { %v905_v36 = vpop.f32.mrb[6].mxu1 }
 0xc04   :  { %v3963_v37 = vpop.f32.mrb[7].mxu1  ;;  %v909_v42 = vadd.f32 %v905_v36, %v835_v41 }
 0xc06   :  { %v3572_v43 = vmul.f32 -1.442695, %v909_v42 }
 0xc08   :  { %4692 = vpow2.f32 %v3572_v43 }
 0xc12   :  { %v4693_v44 = vpop.eup %4692 }
 0xc13   :  { %v913_v45 = vadd.f32 1.0, %v4693_v44 }
 0xc15   :  { %4694 = vrcp.f32 %v913_v45 }
 0xc16   :  { %v831_v38 = vpop.permute.xlu0 %830 }
 0xc17   :  { %v833_v39 = vadd.f32 %v4691_v29, %v831_v38 }
 0xc19   :  { %939 = vrot.lane.b32.xlu0 %v833_v39, %s4970_s4 }
 0xc1d   :  { %917 = vrot.lane.b32.xlu0 %v909_v42, %s4970_s4 }
 0xc1f   :  { %v4695_v48 = vpop.eup %4694 }
 0xc8b   :  { %v940_v46 = vpop.permute.xlu0 %939 }
 0xc8c   :  { %v942_v47 = vsel %vm104_vm1, %v727_v32, %v940_v46 }
 0xc8d   :  { %3981 = vmatmul.mubr.msk.f32.vlgmr.msra.gmra.mrb[8].mxu1 %vm312_vm2, %v942_v47 }
 0xc8e   :  { %4441 = vmatpush3.bf16.msra.mxu1 %v5089_v5  ;;  %4021 = vmatprep.mubr.msk.f32.mxu1 %vm4968_vm0, %v4969_v1 }
 0xc8f   :  { %v918_v49 = vpop.permute.xlu0 %917  ;;  %4442 = vmatprep.subr.bf16.mxu1 %v4967_v0 }
 0xc90   :  { %v920_v50 = vmul.f32 %v4695_v48, %v918_v49 }
 0xc92   :  { %922 = vrot.lane.b32.xlu0 %v920_v50, %s4971_s9  ;;  %4444 = vmatpush3.bf16.msra.mxu1 %v5092_v7 }
 0xc93   :  { %4445 = vmatprep.subr.bf16.mxu1 %v4967_v0 }
 0xd04   :  { %v923_v51 = vpop.permute.xlu0 %922 }
 0xd05   :  { %v925_v52 = vadd.f32 %v923_v51, %v909_v42 }
 0xd07   :  { %4696 = vtanh.f32 %v925_v52 }
 0xd11   :  { %v4697_v53 = vpop.eup %4696 }
 0xd12   :  { %v927_v54 = vsub.f32 %v727_v32, %v4697_v53 }
 0xd14   :  { %929 = vrot.lane.b32.xlu0 %v927_v54, %s4972_s10 }
 0xd60   :  { %v1012_v55 = vpop.f32.mrb[8].mxu1 }
 0xd61   :  { %v1013_v56 = vadd.f32 %v5142_v40, %v1012_v55  ;;  %v3982_v57 = vpop.f32.mrb[9].mxu1 }
 0xd63   :  { %1023 = vrot.lane.b32.xlu1 %v1013_v56, %s4970_s4  ;;  %v3574_v60 = vmul.f32 -1.442695, %v1013_v56 }
 0xd65   :  { %4698 = vpow2.f32 %v3574_v60  ;;  %v1255_v60 = vld [vmem:[#allocation2 + $0x30] sm:$0xff] }
 0xd6f   :  { %v4699_v61 = vpop.eup %4698 }
 0xd70   :  { %v1019_v62 = vadd.f32 1.0, %v4699_v61 }
 0xd72   :  { %4700 = vrcp.f32 %v1019_v62 }
 0xd7c   :  { %v4701_v63 = vpop.eup %4700 }
 0xd86   :  { %v930_v58 = vpop.permute.xlu0 %929 }
 0xd87   :  { %v932_v59 = vmul.f32 %v4695_v48, %v930_v58 }
 0xd89   :  { %934 = vrot.lane.b32.xlu0 %v932_v59, %s4970_s4 }
 0xdd5   :  { %v1024_v2 = vpop.permute.xlu1 %1023 }
 0xdd6   :  { %v1026_v3 = vmul.f32 %v4701_v63, %v1024_v2 }
 0xdd8   :  { %1028 = vrot.lane.b32.xlu1 %v1026_v3, %s4971_s9 }
 0xdfb   :  { %v935_v4 = vpop.permute.xlu0 %934 }
 0xdfc   :  { %v937_v6 = vadd.f32 %v4697_v53, %v935_v4 }
 0xdfe   :  { %3992 = vmatmul.mubr.msk.f32.vlgmr.msra.gmra.mrb[8].mxu0 %vm104_vm1, %v937_v6 }
 0xdff   :  { %4429 = vmatpush3.bf16.msra.mxu0 %v5106_v23  ;;  %4010 = vmatprep.mubr.msk.f32.mxu0 %vm4968_vm0, %v4969_v1 }
 0xe00   :  { %4430 = vmatprep.subr.bf16.mxu0 %v4967_v0 }
 0xe03   :  { %4432 = vmatpush3.bf16.msra.mxu0 %v5109_v25 }
 0xe04   :  { %4433 = vmatprep.subr.bf16.mxu0 %v4967_v0 }
 0xe07   :  { %4435 = vmatpush3.bf16.msra.mxu0 %v5113_v28 }
 0xe08   :  { %4436 = vmatprep.subr.bf16.mxu0 %v4967_v0 }
 0xe0b   :  { %4438 = vmatpush3.bf16.msra.mxu0 %v5119_v33 }
 0xe0c   :  { %4457 = vmatprep.subr.bf16.mxu0 %v4967_v0 }
 0xe4a   :  { %v1029_v8 = vpop.permute.xlu1 %1028 }
 0xe4b   :  { %v1031_v9 = vadd.f32 %v1029_v8, %v1013_v56 }
 0xe4d   :  { %4702 = vtanh.f32 %v1031_v9 }
 0xe57   :  { %v4703_v10 = vpop.eup %4702 }
 0xe58   :  { %v1033_v11 = vsub.f32 %v833_v39, %v4703_v10 }
 0xe5a   :  { %1035 = vrot.lane.b32.xlu1 %v1033_v11, %s4972_s10 }
 0xecc   :  { %v1036_v12 = vpop.permute.xlu1 %1035 }
 0xecd   :  { %v1038_v13 = vmul.f32 %v4701_v63, %v1036_v12 }
 0xecf   :  { %1040 = vrot.lane.b32.xlu1 %v1038_v13, %s4970_s4 }
 0xed1   :  { %v1115_v14 = vpop.f32.mrb[8].mxu0 }
 0xed2   :  { %v3993_v15 = vpop.f32.mrb[9].mxu0  ;;  %v1119_v19 = vadd.f32 %v1115_v14, %v1045_v18 }
 0xed4   :  { %v3576_v20 = vmul.f32 -1.442695, %v1119_v19 }
 0xed6   :  { %4704 = vpow2.f32 %v3576_v20 }
 0xee0   :  { %v4705_v21 = vpop.eup %4704 }
 0xee1   :  { %v1123_v22 = vadd.f32 1.0, %v4705_v21 }
 0xee3   :  { %4706 = vrcp.f32 %v1123_v22 }
 0xeed   :  { %v4707_v27 = vpop.eup %4706 }
 0xf41   :  { %v1041_v16 = vpop.permute.xlu1 %1040 }
 0xf42   :  { %v1043_v17 = vadd.f32 %v4703_v10, %v1041_v16 }
 0xf44   :  { %1149 = vrot.lane.b32.xlu1 %v1043_v17, %s4970_s4 }
 0xf48   :  { %1127 = vrot.lane.b32.xlu1 %v1119_v19, %s4970_s4 }
 0xfb6   :  { %v1150_v24 = vpop.permute.xlu1 %1149 }
 0xfb7   :  { %v1152_v26 = vsel %vm104_vm1, %v937_v6, %v1150_v24 }
 0xfb8   :  { %4011 = vmatmul.mubr.msk.f32.vlgmr.msra.gmra.mrb[10].mxu0 %vm312_vm2, %v1152_v26 }
 0xfb9   :  { %4459 = vmatpush3.bf16.msra.mxu0 %v5089_v5  ;;  %4051 = vmatprep.mubr.msk.f32.mxu0 %vm4968_vm0, %v4969_v1 }
 0xfba   :  { %v1128_v29 = vpop.permute.xlu1 %1127  ;;  %4460 = vmatprep.subr.bf16.mxu0 %v4967_v0 }
 0xfbb   :  { %v1130_v30 = vmul.f32 %v4707_v27, %v1128_v29 }
 0xfbd   :  { %1132 = vrot.lane.b32.xlu1 %v1130_v30, %s4971_s9  ;;  %4462 = vmatpush3.bf16.msra.mxu0 %v5092_v7 }
 0xfbe   :  { %4463 = vmatprep.subr.bf16.mxu0 %v4967_v0 }
0x102f   :  { %v1133_v31 = vpop.permute.xlu1 %1132 }
0x1030   :  { %v1135_v32 = vadd.f32 %v1133_v31, %v1119_v19 }
0x1032   :  { %4708 = vtanh.f32 %v1135_v32 }
0x103c   :  { %v4709_v34 = vpop.eup %4708 }
0x103d   :  { %v1137_v35 = vsub.f32 %v937_v6, %v4709_v34 }
0x103f   :  { %1139 = vrot.lane.b32.xlu1 %v1137_v35, %s4972_s10 }
0x108b   :  { %v1222_v36 = vpop.f32.mrb[10].mxu0 }
0x108c   :  { %v1223_v37 = vadd.f32 %v5142_v40, %v1222_v36  ;;  %v4012_v38 = vpop.f32.mrb[11].mxu0 }
0x108e   :  { %1233 = vrot.lane.b32.xlu0 %v1223_v37, %s4970_s4  ;;  %v3578_v42 = vmul.f32 -1.442695, %v1223_v37 }
0x1090   :  { %4710 = vpow2.f32 %v3578_v42  ;;  %v1465_v42 = vld [vmem:[#allocation2 + $0x38] sm:$0xff] }
0x109a   :  { %v4711_v43 = vpop.eup %4710 }
0x109b   :  { %v1229_v44 = vadd.f32 1.0, %v4711_v43 }
0x109d   :  { %4712 = vrcp.f32 %v1229_v44 }
0x10a7   :  { %v4713_v45 = vpop.eup %4712 }
0x10b1   :  { %v1140_v39 = vpop.permute.xlu1 %1139 }
0x10b2   :  { %v1142_v41 = vmul.f32 %v4707_v27, %v1140_v39 }
0x10b4   :  { %1144 = vrot.lane.b32.xlu1 %v1142_v41, %s4970_s4 }
0x1100   :  { %v1234_v46 = vpop.permute.xlu0 %1233 }
0x1101   :  { %v1236_v47 = vmul.f32 %v4713_v45, %v1234_v46 }
0x1103   :  { %1238 = vrot.lane.b32.xlu0 %v1236_v47, %s4971_s9 }
0x1126   :  { %v1145_v48 = vpop.permute.xlu1 %1144 }
0x1127   :  { %v1147_v49 = vadd.f32 %v4709_v34, %v1145_v48 }
0x1129   :  { %4022 = vmatmul.mubr.msk.f32.vlgmr.msra.gmra.mrb[10].mxu1 %vm104_vm1, %v1147_v49 }
0x112a   :  { %4447 = vmatpush3.bf16.msra.mxu1 %v5106_v23  ;;  %4040 = vmatprep.mubr.msk.f32.mxu1 %vm4968_vm0, %v4969_v1 }
0x112b   :  { %4448 = vmatprep.subr.bf16.mxu1 %v4967_v0 }
0x112e   :  { %4450 = vmatpush3.bf16.msra.mxu1 %v5109_v25 }
0x112f   :  { %4451 = vmatprep.subr.bf16.mxu1 %v4967_v0 }
0x1132   :  { %4453 = vmatpush3.bf16.msra.mxu1 %v5113_v28 }
0x1133   :  { %4454 = vmatprep.subr.bf16.mxu1 %v4967_v0 }
0x1136   :  { %4456 = vmatpush3.bf16.msra.mxu1 %v5119_v33 }
0x1137   :  { %4475 = vmatprep.subr.bf16.mxu1 %v4967_v0 }
0x1175   :  { %v1239_v50 = vpop.permute.xlu0 %1238 }
0x1176   :  { %v1241_v51 = vadd.f32 %v1239_v50, %v1223_v37 }
0x1178   :  { %4714 = vtanh.f32 %v1241_v51 }
0x1182   :  { %v4715_v52 = vpop.eup %4714 }
0x1183   :  { %v1243_v53 = vsub.f32 %v1043_v17, %v4715_v52 }
0x1185   :  { %1245 = vrot.lane.b32.xlu0 %v1243_v53, %s4972_s10 }
0x11f7   :  { %v1246_v54 = vpop.permute.xlu0 %1245 }
0x11f8   :  { %v1248_v55 = vmul.f32 %v4713_v45, %v1246_v54 }
0x11fa   :  { %1250 = vrot.lane.b32.xlu0 %v1248_v55, %s4970_s4 }
0x11fc   :  { %v1325_v56 = vpop.f32.mrb[10].mxu1 }
0x11fd   :  { %v4023_v57 = vpop.f32.mrb[11].mxu1  ;;  %v1329_v61 = vadd.f32 %v1325_v56, %v1255_v60 }
0x11ff   :  { %v3580_v62 = vmul.f32 -1.442695, %v1329_v61 }
0x1201   :  { %4716 = vpow2.f32 %v3580_v62 }
0x120b   :  { %v4717_v63 = vpop.eup %4716 }
0x120c   :  { %v1333_v2 = vadd.f32 1.0, %v4717_v63 }
0x120e   :  { %4718 = vrcp.f32 %v1333_v2 }
0x1218   :  { %v4719_v6 = vpop.eup %4718 }
0x126c   :  { %v1251_v58 = vpop.permute.xlu0 %1250 }
0x126d   :  { %v1253_v59 = vadd.f32 %v4715_v52, %v1251_v58 }
0x126f   :  { %1359 = vrot.lane.b32.xlu0 %v1253_v59, %s4970_s4 }
0x1273   :  { %1337 = vrot.lane.b32.xlu0 %v1329_v61, %s4970_s4 }
0x12e1   :  { %v1360_v3 = vpop.permute.xlu0 %1359 }
0x12e2   :  { %v1362_v4 = vsel %vm104_vm1, %v1147_v49, %v1360_v3 }
0x12e3   :  { %4041 = vmatmul.mubr.msk.f32.vlgmr.msra.gmra.mrb[12].mxu1 %vm312_vm2, %v1362_v4 }
0x12e4   :  { %4477 = vmatpush3.bf16.msra.mxu1 %v5089_v5  ;;  %4081 = vmatprep.mubr.msk.f32.mxu1 %vm4968_vm0, %v4969_v1 }
0x12e5   :  { %v1338_v8 = vpop.permute.xlu0 %1337  ;;  %4478 = vmatprep.subr.bf16.mxu1 %v4967_v0 }
0x12e6   :  { %v1340_v9 = vmul.f32 %v4719_v6, %v1338_v8 }
0x12e8   :  { %1342 = vrot.lane.b32.xlu0 %v1340_v9, %s4971_s9  ;;  %4480 = vmatpush3.bf16.msra.mxu1 %v5092_v7 }
0x12e9   :  { %4481 = vmatprep.subr.bf16.mxu1 %v4967_v0 }
0x135a   :  { %v1343_v10 = vpop.permute.xlu0 %1342 }
0x135b   :  { %v1345_v11 = vadd.f32 %v1343_v10, %v1329_v61 }
0x135d   :  { %4720 = vtanh.f32 %v1345_v11 }
0x1367   :  { %v4721_v12 = vpop.eup %4720 }
0x1368   :  { %v1347_v13 = vsub.f32 %v1147_v49, %v4721_v12 }
0x136a   :  { %1349 = vrot.lane.b32.xlu0 %v1347_v13, %s4972_s10 }
0x13b6   :  { %v1432_v14 = vpop.f32.mrb[12].mxu1 }
0x13b7   :  { %v1433_v15 = vadd.f32 %v5142_v40, %v1432_v14  ;;  %v4042_v16 = vpop.f32.mrb[13].mxu1 }
0x13b9   :  { %1443 = vrot.lane.b32.xlu1 %v1433_v15, %s4970_s4  ;;  %v3582_v19 = vmul.f32 -1.442695, %v1433_v15 }
0x13bb   :  { %4722 = vpow2.f32 %v3582_v19  ;;  %v1675_v19 = vld [vmem:[#allocation2 + $0x40] sm:$0xff] }
0x13c5   :  { %v4723_v20 = vpop.eup %4722 }
0x13c6   :  { %v1439_v21 = vadd.f32 1.0, %v4723_v20 }
0x13c8   :  { %4724 = vrcp.f32 %v1439_v21 }
0x13d2   :  { %v4725_v22 = vpop.eup %4724 }
0x13dc   :  { %v1350_v17 = vpop.permute.xlu0 %1349 }
0x13dd   :  { %v1352_v18 = vmul.f32 %v4719_v6, %v1350_v17 }
0x13df   :  { %1354 = vrot.lane.b32.xlu0 %v1352_v18, %s4970_s4 }
0x142b   :  { %v1444_v24 = vpop.permute.xlu1 %1443 }
0x142c   :  { %v1446_v26 = vmul.f32 %v4725_v22, %v1444_v24 }
0x142e   :  { %1448 = vrot.lane.b32.xlu1 %v1446_v26, %s4971_s9 }
0x1451   :  { %v1355_v27 = vpop.permute.xlu0 %1354 }
0x1452   :  { %v1357_v29 = vadd.f32 %v4721_v12, %v1355_v27 }
0x1454   :  { %4052 = vmatmul.mubr.msk.f32.vlgmr.msra.gmra.mrb[12].mxu0 %vm104_vm1, %v1357_v29 }
0x1455   :  { %4465 = vmatpush3.bf16.msra.mxu0 %v5106_v23  ;;  %4070 = vmatprep.mubr.msk.f32.mxu0 %vm4968_vm0, %v4969_v1 }
0x1456   :  { %4466 = vmatprep.subr.bf16.mxu0 %v4967_v0 }
0x1459   :  { %4468 = vmatpush3.bf16.msra.mxu0 %v5109_v25 }
0x145a   :  { %4469 = vmatprep.subr.bf16.mxu0 %v4967_v0 }
0x145d   :  { %4471 = vmatpush3.bf16.msra.mxu0 %v5113_v28 }
0x145e   :  { %4472 = vmatprep.subr.bf16.mxu0 %v4967_v0 }
0x1461   :  { %4474 = vmatpush3.bf16.msra.mxu0 %v5119_v33 }
0x1462   :  { %4493 = vmatprep.subr.bf16.mxu0 %v4967_v0 }
0x14a0   :  { %v1449_v30 = vpop.permute.xlu1 %1448 }
0x14a1   :  { %v1451_v31 = vadd.f32 %v1449_v30, %v1433_v15 }
0x14a3   :  { %4726 = vtanh.f32 %v1451_v31 }
0x14ad   :  { %v4727_v32 = vpop.eup %4726 }
0x14ae   :  { %v1453_v34 = vsub.f32 %v1253_v59, %v4727_v32 }
0x14b0   :  { %1455 = vrot.lane.b32.xlu1 %v1453_v34, %s4972_s10 }
0x1522   :  { %v1456_v35 = vpop.permute.xlu1 %1455 }
0x1523   :  { %v1458_v36 = vmul.f32 %v4725_v22, %v1456_v35 }
0x1525   :  { %1460 = vrot.lane.b32.xlu1 %v1458_v36, %s4970_s4 }
0x1527   :  { %v1535_v37 = vpop.f32.mrb[12].mxu0 }
0x1528   :  { %v4053_v38 = vpop.f32.mrb[13].mxu0  ;;  %v1539_v43 = vadd.f32 %v1535_v37, %v1465_v42 }
0x152a   :  { %v3584_v44 = vmul.f32 -1.442695, %v1539_v43 }
0x152c   :  { %4728 = vpow2.f32 %v3584_v44 }
0x1536   :  { %v4729_v45 = vpop.eup %4728 }
0x1537   :  { %v1543_v46 = vadd.f32 1.0, %v4729_v45 }
0x1539   :  { %4730 = vrcp.f32 %v1543_v46 }
0x1543   :  { %v4731_v49 = vpop.eup %4730 }
0x1597   :  { %v1461_v39 = vpop.permute.xlu1 %1460 }
0x1598   :  { %v1463_v41 = vadd.f32 %v4727_v32, %v1461_v39 }
0x159a   :  { %1569 = vrot.lane.b32.xlu1 %v1463_v41, %s4970_s4 }
0x159e   :  { %1547 = vrot.lane.b32.xlu1 %v1539_v43, %s4970_s4 }
0x160c   :  { %v1570_v47 = vpop.permute.xlu1 %1569 }
0x160d   :  { %v1572_v48 = vsel %vm104_vm1, %v1357_v29, %v1570_v47 }
0x160e   :  { %4071 = vmatmul.mubr.msk.f32.vlgmr.msra.gmra.mrb[14].mxu0 %vm312_vm2, %v1572_v48 }
0x160f   :  { %4495 = vmatpush3.bf16.msra.mxu0 %v5089_v5  ;;  %4111 = vmatprep.mubr.msk.f32.mxu0 %vm4968_vm0, %v4969_v1 }
0x1610   :  { %v1548_v50 = vpop.permute.xlu1 %1547  ;;  %4496 = vmatprep.subr.bf16.mxu0 %v4967_v0 }
0x1611   :  { %v1550_v51 = vmul.f32 %v4731_v49, %v1548_v50 }
0x1613   :  { %1552 = vrot.lane.b32.xlu1 %v1550_v51, %s4971_s9  ;;  %4498 = vmatpush3.bf16.msra.mxu0 %v5092_v7 }
0x1614   :  { %4499 = vmatprep.subr.bf16.mxu0 %v4967_v0 }
0x1685   :  { %v1553_v52 = vpop.permute.xlu1 %1552 }
0x1686   :  { %v1555_v53 = vadd.f32 %v1553_v52, %v1539_v43 }
0x1688   :  { %4732 = vtanh.f32 %v1555_v53 }
0x1692   :  { %v4733_v54 = vpop.eup %4732 }
0x1693   :  { %v1557_v55 = vsub.f32 %v1357_v29, %v4733_v54 }
0x1695   :  { %1559 = vrot.lane.b32.xlu1 %v1557_v55, %s4972_s10 }
0x16e1   :  { %v1642_v56 = vpop.f32.mrb[14].mxu0 }
0x16e2   :  { %v1643_v57 = vadd.f32 %v5142_v40, %v1642_v56  ;;  %v4072_v58 = vpop.f32.mrb[15].mxu0 }
0x16e4   :  { %1653 = vrot.lane.b32.xlu0 %v1643_v57, %s4970_s4  ;;  %v3586_v61 = vmul.f32 -1.442695, %v1643_v57 }
0x16e6   :  { %4734 = vpow2.f32 %v3586_v61 }
0x16f0   :  { %v4735_v62 = vpop.eup %4734 }
0x16f1   :  { %v1649_v63 = vadd.f32 1.0, %v4735_v62 }
0x16f3   :  { %4736 = vrcp.f32 %v1649_v63 }
0x16fd   :  { %v4737_v2 = vpop.eup %4736 }
0x1707   :  { %v1560_v59 = vpop.permute.xlu1 %1559 }
0x1708   :  { %v1562_v60 = vmul.f32 %v4731_v49, %v1560_v59 }
0x170a   :  { %1564 = vrot.lane.b32.xlu1 %v1562_v60, %s4970_s4  ;;  %v1885_v60 = vld [vmem:[#allocation2 + $0x48] sm:$0xff] }
0x1756   :  { %v1654_v3 = vpop.permute.xlu0 %1653 }
0x1757   :  { %v1656_v4 = vmul.f32 %v4737_v2, %v1654_v3 }
0x1759   :  { %1658 = vrot.lane.b32.xlu0 %v1656_v4, %s4971_s9 }
0x177c   :  { %v1565_v6 = vpop.permute.xlu1 %1564 }
0x177d   :  { %v1567_v8 = vadd.f32 %v4733_v54, %v1565_v6 }
0x177f   :  { %4082 = vmatmul.mubr.msk.f32.vlgmr.msra.gmra.mrb[14].mxu1 %vm104_vm1, %v1567_v8 }
0x1780   :  { %4483 = vmatpush3.bf16.msra.mxu1 %v5106_v23  ;;  %4100 = vmatprep.mubr.msk.f32.mxu1 %vm4968_vm0, %v4969_v1 }
0x1781   :  { %4484 = vmatprep.subr.bf16.mxu1 %v4967_v0 }
0x1784   :  { %4486 = vmatpush3.bf16.msra.mxu1 %v5109_v25 }
0x1785   :  { %4487 = vmatprep.subr.bf16.mxu1 %v4967_v0 }
0x1788   :  { %4489 = vmatpush3.bf16.msra.mxu1 %v5113_v28 }
0x1789   :  { %4490 = vmatprep.subr.bf16.mxu1 %v4967_v0 }
0x178c   :  { %4492 = vmatpush3.bf16.msra.mxu1 %v5119_v33 }
0x178d   :  { %4511 = vmatprep.subr.bf16.mxu1 %v4967_v0 }
0x17cb   :  { %v1659_v9 = vpop.permute.xlu0 %1658 }
0x17cc   :  { %v1661_v10 = vadd.f32 %v1659_v9, %v1643_v57 }
0x17ce   :  { %4738 = vtanh.f32 %v1661_v10 }
0x17d8   :  { %v4739_v11 = vpop.eup %4738 }
0x17d9   :  { %v1663_v12 = vsub.f32 %v1463_v41, %v4739_v11 }
0x17db   :  { %1665 = vrot.lane.b32.xlu0 %v1663_v12, %s4972_s10 }
0x184d   :  { %v1666_v13 = vpop.permute.xlu0 %1665 }
0x184e   :  { %v1668_v14 = vmul.f32 %v4737_v2, %v1666_v13 }
0x1850   :  { %1670 = vrot.lane.b32.xlu0 %v1668_v14, %s4970_s4 }
0x1852   :  { %v1745_v15 = vpop.f32.mrb[14].mxu1 }
0x1853   :  { %v4083_v16 = vpop.f32.mrb[15].mxu1  ;;  %v1749_v20 = vadd.f32 %v1745_v15, %v1675_v19  ;;  %v5382_v15 = vld [vmem:[%s5595_s3] ss:$0 sm:$0xff] }
0x1855   :  { %v3588_v21 = vmul.f32 -1.442695, %v1749_v20 }
0x1857   :  { %4740 = vpow2.f32 %v3588_v21 }
0x1861   :  { %v4741_v22 = vpop.eup %4740 }
0x1862   :  { %v1753_v24 = vadd.f32 1.0, %v4741_v22 }
0x1864   :  { %4742 = vrcp.f32 %v1753_v24 }
0x186e   :  { %v4743_v29 = vpop.eup %4742 }
0x18c2   :  { %v1671_v17 = vpop.permute.xlu0 %1670 }
0x18c3   :  { %v1673_v18 = vadd.f32 %v4739_v11, %v1671_v17 }
0x18c5   :  { %1779 = vrot.lane.b32.xlu0 %v1673_v18, %s4970_s4 }
0x18c9   :  { %1757 = vrot.lane.b32.xlu0 %v1749_v20, %s4970_s4 }
0x1937   :  { %v1780_v26 = vpop.permute.xlu0 %1779 }
0x1938   :  { %v1782_v27 = vsel %vm104_vm1, %v1567_v8, %v1780_v26 }
0x1939   :  { %4101 = vmatmul.mubr.msk.f32.vlgmr.msra.gmra.mrb[16].mxu1 %vm312_vm2, %v1782_v27 }
0x193a   :  { %4513 = vmatpush3.bf16.msra.mxu1 %v5089_v5  ;;  %4141 = vmatprep.mubr.msk.f32.mxu1 %vm4968_vm0, %v4969_v1 }
0x193b   :  { %v1758_v30 = vpop.permute.xlu0 %1757  ;;  %4514 = vmatprep.subr.bf16.mxu1 %v4967_v0 }
0x193c   :  { %v1760_v31 = vmul.f32 %v4743_v29, %v1758_v30 }
0x193e   :  { %1762 = vrot.lane.b32.xlu0 %v1760_v31, %s4971_s9  ;;  %4516 = vmatpush3.bf16.msra.mxu1 %v5092_v7 }
0x193f   :  { %4517 = vmatprep.subr.bf16.mxu1 %v4967_v0 }
0x19b0   :  { %v1763_v32 = vpop.permute.xlu0 %1762 }
0x19b1   :  { %v1765_v34 = vadd.f32 %v1763_v32, %v1749_v20 }
0x19b3   :  { %4744 = vtanh.f32 %v1765_v34 }
0x19bd   :  { %v4745_v35 = vpop.eup %4744 }
0x19be   :  { %v1767_v36 = vsub.f32 %v1567_v8, %v4745_v35 }
0x19c0   :  { %1769 = vrot.lane.b32.xlu0 %v1767_v36, %s4972_s10 }
0x1a0c   :  { %v1852_v37 = vpop.f32.mrb[16].mxu1 }
0x1a0d   :  { %v1853_v38 = vadd.f32 %v5142_v40, %v1852_v37  ;;  %v4102_v39 = vpop.f32.mrb[17].mxu1 }
0x1a0f   :  { %1863 = vrot.lane.b32.xlu1 %v1853_v38, %s4970_s4  ;;  %v3590_v43 = vmul.f32 -1.442695, %v1853_v38 }
0x1a11   :  { %4746 = vpow2.f32 %v3590_v43  ;;  %v2095_v43 = vld [vmem:[#allocation2 + $0x50] sm:$0xff] }
0x1a1b   :  { %v4747_v44 = vpop.eup %4746 }
0x1a1c   :  { %v1859_v45 = vadd.f32 1.0, %v4747_v44 }
0x1a1e   :  { %4748 = vrcp.f32 %v1859_v45 }
0x1a28   :  { %v4749_v46 = vpop.eup %4748 }
0x1a32   :  { %v1770_v41 = vpop.permute.xlu0 %1769 }
0x1a33   :  { %v1772_v42 = vmul.f32 %v4743_v29, %v1770_v41 }
0x1a35   :  { %1774 = vrot.lane.b32.xlu0 %v1772_v42, %s4970_s4 }
0x1a81   :  { %v1864_v47 = vpop.permute.xlu1 %1863 }
0x1a82   :  { %v1866_v48 = vmul.f32 %v4749_v46, %v1864_v47 }
0x1a84   :  { %1868 = vrot.lane.b32.xlu1 %v1866_v48, %s4971_s9 }
0x1aa7   :  { %v1775_v49 = vpop.permute.xlu0 %1774 }
0x1aa8   :  { %v1777_v50 = vadd.f32 %v4745_v35, %v1775_v49 }
0x1aaa   :  { %4112 = vmatmul.mubr.msk.f32.vlgmr.msra.gmra.mrb[16].mxu0 %vm104_vm1, %v1777_v50 }
0x1aab   :  { %4501 = vmatpush3.bf16.msra.mxu0 %v5106_v23  ;;  %4130 = vmatprep.mubr.msk.f32.mxu0 %vm4968_vm0, %v4969_v1 }
0x1aac   :  { %4502 = vmatprep.subr.bf16.mxu0 %v4967_v0 }
0x1aaf   :  { %4504 = vmatpush3.bf16.msra.mxu0 %v5109_v25 }
0x1ab0   :  { %4505 = vmatprep.subr.bf16.mxu0 %v4967_v0 }
0x1ab3   :  { %4507 = vmatpush3.bf16.msra.mxu0 %v5113_v28 }
0x1ab4   :  { %4508 = vmatprep.subr.bf16.mxu0 %v4967_v0 }
0x1ab7   :  { %4510 = vmatpush3.bf16.msra.mxu0 %v5119_v33 }
0x1ab8   :  { %4529 = vmatprep.subr.bf16.mxu0 %v4967_v0 }
0x1af6   :  { %v1869_v40 = vpop.permute.xlu1 %1868 }
0x1af7   :  { %v1871_v51 = vadd.f32 %v1869_v40, %v1853_v38 }
0x1af9   :  { %4750 = vtanh.f32 %v1871_v51 }
0x1b03   :  { %v4751_v52 = vpop.eup %4750 }
0x1b04   :  { %v1873_v53 = vsub.f32 %v1673_v18, %v4751_v52 }
0x1b06   :  { %1875 = vrot.lane.b32.xlu1 %v1873_v53, %s4972_s10 }
0x1b78   :  { %v1876_v54 = vpop.permute.xlu1 %1875 }
0x1b79   :  { %v1878_v55 = vmul.f32 %v4749_v46, %v1876_v54 }
0x1b7b   :  { %1880 = vrot.lane.b32.xlu1 %v1878_v55, %s4970_s4 }
0x1b7d   :  { %v1955_v56 = vpop.f32.mrb[16].mxu0 }
0x1b7e   :  { %v4113_v57 = vpop.f32.mrb[17].mxu0  ;;  %v1959_v61 = vadd.f32 %v1955_v56, %v1885_v60 }
0x1b80   :  { %v3592_v62 = vmul.f32 -1.442695, %v1959_v61 }
0x1b82   :  { %4752 = vpow2.f32 %v3592_v62 }
0x1b8c   :  { %v4753_v63 = vpop.eup %4752 }
0x1b8d   :  { %v1963_v2 = vadd.f32 1.0, %v4753_v63 }
0x1b8f   :  { %4754 = vrcp.f32 %v1963_v2 }
0x1b99   :  { %v4755_v6 = vpop.eup %4754 }
0x1bed   :  { %v1881_v58 = vpop.permute.xlu1 %1880 }
0x1bee   :  { %v1883_v59 = vadd.f32 %v4751_v52, %v1881_v58 }
0x1bf0   :  { %1989 = vrot.lane.b32.xlu1 %v1883_v59, %s4970_s4 }
0x1bf4   :  { %1967 = vrot.lane.b32.xlu1 %v1959_v61, %s4970_s4 }
0x1c62   :  { %v1990_v3 = vpop.permute.xlu1 %1989 }
0x1c63   :  { %v1992_v4 = vsel %vm104_vm1, %v1777_v50, %v1990_v3 }
0x1c64   :  { %4131 = vmatmul.mubr.msk.f32.vlgmr.msra.gmra.mrb[18].mxu0 %vm312_vm2, %v1992_v4 }
0x1c65   :  { %4531 = vmatpush3.bf16.msra.mxu0 %v5089_v5  ;;  %4171 = vmatprep.mubr.msk.f32.mxu0 %vm4968_vm0, %v4969_v1 }
0x1c66   :  { %v1968_v8 = vpop.permute.xlu1 %1967  ;;  %4532 = vmatprep.subr.bf16.mxu0 %v4967_v0 }
0x1c67   :  { %v1970_v9 = vmul.f32 %v4755_v6, %v1968_v8 }
0x1c69   :  { %1972 = vrot.lane.b32.xlu1 %v1970_v9, %s4971_s9  ;;  %4534 = vmatpush3.bf16.msra.mxu0 %v5092_v7 }
0x1c6a   :  { %4535 = vmatprep.subr.bf16.mxu0 %v4967_v0 }
0x1cdb   :  { %v1973_v10 = vpop.permute.xlu1 %1972 }
0x1cdc   :  { %v1975_v11 = vadd.f32 %v1973_v10, %v1959_v61 }
0x1cde   :  { %4756 = vtanh.f32 %v1975_v11 }
0x1ce8   :  { %v4757_v12 = vpop.eup %4756 }
0x1ce9   :  { %v1977_v13 = vsub.f32 %v1777_v50, %v4757_v12 }
0x1ceb   :  { %1979 = vrot.lane.b32.xlu1 %v1977_v13, %s4972_s10 }
0x1d37   :  { %v2062_v14 = vpop.f32.mrb[18].mxu0 }
0x1d38   :  { %v2063_v16 = vadd.f32 %v5382_v15, %v2062_v14  ;;  %v4132_v17 = vpop.f32.mrb[19].mxu0 }
0x1d3a   :  { %2073 = vrot.lane.b32.xlu0 %v2063_v16, %s4970_s4  ;;  %v3594_v20 = vmul.f32 -1.442695, %v2063_v16 }
0x1d3c   :  { %4758 = vpow2.f32 %v3594_v20  ;;  %v2305_v20 = vld [vmem:[#allocation2 + $0x58] sm:$0xff] }
0x1d46   :  { %v4759_v21 = vpop.eup %4758 }
0x1d47   :  { %v2069_v22 = vadd.f32 1.0, %v4759_v21 }
0x1d49   :  { %4760 = vrcp.f32 %v2069_v22 }
0x1d53   :  { %v4761_v24 = vpop.eup %4760 }
0x1d5d   :  { %v1980_v18 = vpop.permute.xlu1 %1979 }
0x1d5e   :  { %v1982_v19 = vmul.f32 %v4755_v6, %v1980_v18 }
0x1d60   :  { %1984 = vrot.lane.b32.xlu1 %v1982_v19, %s4970_s4 }
0x1dac   :  { %v2074_v26 = vpop.permute.xlu0 %2073 }
0x1dad   :  { %v2076_v27 = vmul.f32 %v4761_v24, %v2074_v26 }
0x1daf   :  { %2078 = vrot.lane.b32.xlu0 %v2076_v27, %s4971_s9 }
0x1dd2   :  { %v1985_v29 = vpop.permute.xlu1 %1984 }
0x1dd3   :  { %v1987_v30 = vadd.f32 %v4757_v12, %v1985_v29 }
0x1dd5   :  { %4142 = vmatmul.mubr.msk.f32.vlgmr.msra.gmra.mrb[18].mxu1 %vm104_vm1, %v1987_v30 }
0x1dd6   :  { %4519 = vmatpush3.bf16.msra.mxu1 %v5106_v23  ;;  %4160 = vmatprep.mubr.msk.f32.mxu1 %vm4968_vm0, %v4969_v1 }
0x1dd7   :  { %4520 = vmatprep.subr.bf16.mxu1 %v4967_v0 }
0x1dda   :  { %4522 = vmatpush3.bf16.msra.mxu1 %v5109_v25 }
0x1ddb   :  { %4523 = vmatprep.subr.bf16.mxu1 %v4967_v0 }
0x1dde   :  { %4525 = vmatpush3.bf16.msra.mxu1 %v5113_v28 }
0x1ddf   :  { %4526 = vmatprep.subr.bf16.mxu1 %v4967_v0 }
0x1de2   :  { %4528 = vmatpush3.bf16.msra.mxu1 %v5119_v33 }
0x1de3   :  { %4547 = vmatprep.subr.bf16.mxu1 %v4967_v0 }
0x1e21   :  { %v2079_v31 = vpop.permute.xlu0 %2078 }
0x1e22   :  { %v2081_v32 = vadd.f32 %v2079_v31, %v2063_v16 }
0x1e24   :  { %4762 = vtanh.f32 %v2081_v32 }
0x1e2e   :  { %v4763_v34 = vpop.eup %4762 }
0x1e2f   :  { %v2083_v35 = vsub.f32 %v1883_v59, %v4763_v34 }
0x1e31   :  { %2085 = vrot.lane.b32.xlu0 %v2083_v35, %s4972_s10 }
0x1ea3   :  { %v2086_v36 = vpop.permute.xlu0 %2085 }
0x1ea4   :  { %v2088_v37 = vmul.f32 %v4761_v24, %v2086_v36 }
0x1ea6   :  { %2090 = vrot.lane.b32.xlu0 %v2088_v37, %s4970_s4 }
0x1ea8   :  { %v2165_v38 = vpop.f32.mrb[18].mxu1 }
0x1ea9   :  { %v4143_v39 = vpop.f32.mrb[19].mxu1  ;;  %v2169_v44 = vadd.f32 %v2165_v38, %v2095_v43 }
0x1eab   :  { %v3596_v45 = vmul.f32 -1.442695, %v2169_v44 }
0x1ead   :  { %4764 = vpow2.f32 %v3596_v45 }
0x1eb7   :  { %v4765_v46 = vpop.eup %4764 }
0x1eb8   :  { %v2173_v47 = vadd.f32 1.0, %v4765_v46 }
0x1eba   :  { %4766 = vrcp.f32 %v2173_v47 }
0x1ec4   :  { %v4767_v50 = vpop.eup %4766 }
0x1f18   :  { %v2091_v41 = vpop.permute.xlu0 %2090 }
0x1f19   :  { %v2093_v42 = vadd.f32 %v4763_v34, %v2091_v41 }
0x1f1b   :  { %2199 = vrot.lane.b32.xlu0 %v2093_v42, %s4970_s4 }
0x1f1f   :  { %2177 = vrot.lane.b32.xlu0 %v2169_v44, %s4970_s4 }
0x1f8d   :  { %v2200_v48 = vpop.permute.xlu0 %2199 }
0x1f8e   :  { %v2202_v49 = vsel %vm104_vm1, %v1987_v30, %v2200_v48 }
0x1f8f   :  { %4161 = vmatmul.mubr.msk.f32.vlgmr.msra.gmra.mrb[20].mxu1 %vm312_vm2, %v2202_v49 }
0x1f90   :  { %4549 = vmatpush3.bf16.msra.mxu1 %v5089_v5  ;;  %4201 = vmatprep.mubr.msk.f32.mxu1 %vm4968_vm0, %v4969_v1 }
0x1f91   :  { %v2178_v40 = vpop.permute.xlu0 %2177  ;;  %4550 = vmatprep.subr.bf16.mxu1 %v4967_v0 }
0x1f92   :  { %v2180_v51 = vmul.f32 %v4767_v50, %v2178_v40 }
0x1f94   :  { %2182 = vrot.lane.b32.xlu0 %v2180_v51, %s4971_s9  ;;  %4552 = vmatpush3.bf16.msra.mxu1 %v5092_v7 }
0x1f95   :  { %4553 = vmatprep.subr.bf16.mxu1 %v4967_v0 }
0x2006   :  { %v2183_v52 = vpop.permute.xlu0 %2182 }
0x2007   :  { %v2185_v53 = vadd.f32 %v2183_v52, %v2169_v44 }
0x2009   :  { %4768 = vtanh.f32 %v2185_v53 }
0x2013   :  { %v4769_v54 = vpop.eup %4768 }
0x2014   :  { %v2187_v55 = vsub.f32 %v1987_v30, %v4769_v54 }
0x2016   :  { %2189 = vrot.lane.b32.xlu0 %v2187_v55, %s4972_s10 }
0x2062   :  { %v2272_v56 = vpop.f32.mrb[20].mxu1 }
0x2063   :  { %v2273_v57 = vadd.f32 %v5382_v15, %v2272_v56  ;;  %v4162_v58 = vpop.f32.mrb[21].mxu1 }
0x2065   :  { %2283 = vrot.lane.b32.xlu1 %v2273_v57, %s4970_s4  ;;  %v3598_v61 = vmul.f32 -1.442695, %v2273_v57 }
0x2067   :  { %4770 = vpow2.f32 %v3598_v61  ;;  %v2515_v61 = vld [vmem:[#allocation2 + $0x60] sm:$0xff] }
0x2071   :  { %v4771_v62 = vpop.eup %4770 }
0x2072   :  { %v2279_v63 = vadd.f32 1.0, %v4771_v62 }
0x2074   :  { %4772 = vrcp.f32 %v2279_v63 }
0x207e   :  { %v4773_v2 = vpop.eup %4772 }
0x2088   :  { %v2190_v59 = vpop.permute.xlu0 %2189 }
0x2089   :  { %v2192_v60 = vmul.f32 %v4767_v50, %v2190_v59 }
0x208b   :  { %2194 = vrot.lane.b32.xlu0 %v2192_v60, %s4970_s4 }
0x20d7   :  { %v2284_v3 = vpop.permute.xlu1 %2283 }
0x20d8   :  { %v2286_v4 = vmul.f32 %v4773_v2, %v2284_v3 }
0x20da   :  { %2288 = vrot.lane.b32.xlu1 %v2286_v4, %s4971_s9 }
0x20fd   :  { %v2195_v6 = vpop.permute.xlu0 %2194 }
0x20fe   :  { %v2197_v8 = vadd.f32 %v4769_v54, %v2195_v6 }
0x2100   :  { %4172 = vmatmul.mubr.msk.f32.vlgmr.msra.gmra.mrb[20].mxu0 %vm104_vm1, %v2197_v8 }
0x2101   :  { %4537 = vmatpush3.bf16.msra.mxu0 %v5106_v23  ;;  %4190 = vmatprep.mubr.msk.f32.mxu0 %vm4968_vm0, %v4969_v1 }
0x2102   :  { %4538 = vmatprep.subr.bf16.mxu0 %v4967_v0 }
0x2105   :  { %4540 = vmatpush3.bf16.msra.mxu0 %v5109_v25 }
0x2106   :  { %4541 = vmatprep.subr.bf16.mxu0 %v4967_v0 }
0x2109   :  { %4543 = vmatpush3.bf16.msra.mxu0 %v5113_v28 }
0x210a   :  { %4544 = vmatprep.subr.bf16.mxu0 %v4967_v0 }
0x210d   :  { %4546 = vmatpush3.bf16.msra.mxu0 %v5119_v33 }
0x210e   :  { %4565 = vmatprep.subr.bf16.mxu0 %v4967_v0 }
0x214c   :  { %v2289_v9 = vpop.permute.xlu1 %2288 }
0x214d   :  { %v2291_v10 = vadd.f32 %v2289_v9, %v2273_v57 }
0x214f   :  { %4774 = vtanh.f32 %v2291_v10 }
0x2159   :  { %v4775_v11 = vpop.eup %4774 }
0x215a   :  { %v2293_v12 = vsub.f32 %v2093_v42, %v4775_v11 }
0x215c   :  { %2295 = vrot.lane.b32.xlu1 %v2293_v12, %s4972_s10 }
0x21ce   :  { %v2296_v13 = vpop.permute.xlu1 %2295 }
0x21cf   :  { %v2298_v14 = vmul.f32 %v4773_v2, %v2296_v13 }
0x21d1   :  { %2300 = vrot.lane.b32.xlu1 %v2298_v14, %s4970_s4 }
0x21d3   :  { %v2375_v16 = vpop.f32.mrb[20].mxu0 }
0x21d4   :  { %v4173_v17 = vpop.f32.mrb[21].mxu0  ;;  %v2379_v21 = vadd.f32 %v2375_v16, %v2305_v20 }
0x21d6   :  { %v3600_v22 = vmul.f32 -1.442695, %v2379_v21 }
0x21d8   :  { %4776 = vpow2.f32 %v3600_v22 }
0x21e2   :  { %v4777_v24 = vpop.eup %4776 }
0x21e3   :  { %v2383_v26 = vadd.f32 1.0, %v4777_v24 }
0x21e5   :  { %4778 = vrcp.f32 %v2383_v26 }
0x21ef   :  { %v4779_v30 = vpop.eup %4778 }
0x2243   :  { %v2301_v18 = vpop.permute.xlu1 %2300 }
0x2244   :  { %v2303_v19 = vadd.f32 %v4775_v11, %v2301_v18 }
0x2246   :  { %2409 = vrot.lane.b32.xlu1 %v2303_v19, %s4970_s4 }
0x224a   :  { %2387 = vrot.lane.b32.xlu1 %v2379_v21, %s4970_s4 }
0x22b8   :  { %v2410_v27 = vpop.permute.xlu1 %2409 }
0x22b9   :  { %v2412_v29 = vsel %vm104_vm1, %v2197_v8, %v2410_v27 }
0x22ba   :  { %4191 = vmatmul.mubr.msk.f32.vlgmr.msra.gmra.mrb[22].mxu0 %vm312_vm2, %v2412_v29 }
0x22bb   :  { %4567 = vmatpush3.bf16.msra.mxu0 %v5089_v5  ;;  %4231 = vmatprep.mubr.msk.f32.mxu0 %vm4968_vm0, %v4969_v1 }
0x22bc   :  { %v2388_v31 = vpop.permute.xlu1 %2387  ;;  %4568 = vmatprep.subr.bf16.mxu0 %v4967_v0 }
0x22bd   :  { %v2390_v32 = vmul.f32 %v4779_v30, %v2388_v31 }
0x22bf   :  { %2392 = vrot.lane.b32.xlu1 %v2390_v32, %s4971_s9  ;;  %4570 = vmatpush3.bf16.msra.mxu0 %v5092_v7 }
0x22c0   :  { %4571 = vmatprep.subr.bf16.mxu0 %v4967_v0 }
0x2331   :  { %v2393_v34 = vpop.permute.xlu1 %2392 }
0x2332   :  { %v2395_v35 = vadd.f32 %v2393_v34, %v2379_v21 }
0x2334   :  { %4780 = vtanh.f32 %v2395_v35 }
0x233e   :  { %v4781_v36 = vpop.eup %4780 }
0x233f   :  { %v2397_v37 = vsub.f32 %v2197_v8, %v4781_v36 }
0x2341   :  { %2399 = vrot.lane.b32.xlu1 %v2397_v37, %s4972_s10 }
0x238d   :  { %v2482_v38 = vpop.f32.mrb[22].mxu0 }
0x238e   :  { %v2483_v39 = vadd.f32 %v5382_v15, %v2482_v38  ;;  %v4192_v41 = vpop.f32.mrb[23].mxu0 }
0x2390   :  { %2493 = vrot.lane.b32.xlu0 %v2483_v39, %s4970_s4  ;;  %v3602_v44 = vmul.f32 -1.442695, %v2483_v39 }
0x2392   :  { %4782 = vpow2.f32 %v3602_v44  ;;  %v2725_v44 = vld [vmem:[#allocation2 + $0x68] sm:$0xff] }
0x239c   :  { %v4783_v45 = vpop.eup %4782 }
0x239d   :  { %v2489_v46 = vadd.f32 1.0, %v4783_v45 }
0x239f   :  { %4784 = vrcp.f32 %v2489_v46 }
0x23a9   :  { %v4785_v47 = vpop.eup %4784 }
0x23b3   :  { %v2400_v42 = vpop.permute.xlu1 %2399 }
0x23b4   :  { %v2402_v43 = vmul.f32 %v4779_v30, %v2400_v42 }
0x23b6   :  { %2404 = vrot.lane.b32.xlu1 %v2402_v43, %s4970_s4 }
0x2402   :  { %v2494_v48 = vpop.permute.xlu0 %2493 }
0x2403   :  { %v2496_v49 = vmul.f32 %v4785_v47, %v2494_v48 }
0x2405   :  { %2498 = vrot.lane.b32.xlu0 %v2496_v49, %s4971_s9 }
0x2428   :  { %v2405_v50 = vpop.permute.xlu1 %2404 }
0x2429   :  { %v2407_v40 = vadd.f32 %v4781_v36, %v2405_v50 }
0x242b   :  { %4202 = vmatmul.mubr.msk.f32.vlgmr.msra.gmra.mrb[22].mxu1 %vm104_vm1, %v2407_v40 }
0x242c   :  { %4555 = vmatpush3.bf16.msra.mxu1 %v5106_v23  ;;  %4220 = vmatprep.mubr.msk.f32.mxu1 %vm4968_vm0, %v4969_v1 }
0x242d   :  { %4556 = vmatprep.subr.bf16.mxu1 %v4967_v0 }
0x2430   :  { %4558 = vmatpush3.bf16.msra.mxu1 %v5109_v25 }
0x2431   :  { %4559 = vmatprep.subr.bf16.mxu1 %v4967_v0 }
0x2434   :  { %4561 = vmatpush3.bf16.msra.mxu1 %v5113_v28 }
0x2435   :  { %4562 = vmatprep.subr.bf16.mxu1 %v4967_v0 }
0x2438   :  { %4564 = vmatpush3.bf16.msra.mxu1 %v5119_v33 }
0x2439   :  { %4583 = vmatprep.subr.bf16.mxu1 %v4967_v0 }
0x2477   :  { %v2499_v51 = vpop.permute.xlu0 %2498 }
0x2478   :  { %v2501_v52 = vadd.f32 %v2499_v51, %v2483_v39 }
0x247a   :  { %4786 = vtanh.f32 %v2501_v52 }
0x2484   :  { %v4787_v53 = vpop.eup %4786 }
0x2485   :  { %v2503_v54 = vsub.f32 %v2303_v19, %v4787_v53 }
0x2487   :  { %2505 = vrot.lane.b32.xlu0 %v2503_v54, %s4972_s10 }
0x24f9   :  { %v2506_v55 = vpop.permute.xlu0 %2505 }
0x24fa   :  { %v2508_v56 = vmul.f32 %v4785_v47, %v2506_v55 }
0x24fc   :  { %2510 = vrot.lane.b32.xlu0 %v2508_v56, %s4970_s4 }
0x24fe   :  { %v2585_v57 = vpop.f32.mrb[22].mxu1 }
0x24ff   :  { %v4203_v58 = vpop.f32.mrb[23].mxu1  ;;  %v2589_v62 = vadd.f32 %v2585_v57, %v2515_v61 }
0x2501   :  { %v3604_v63 = vmul.f32 -1.442695, %v2589_v62 }
0x2503   :  { %4788 = vpow2.f32 %v3604_v63 }
0x250d   :  { %v4789_v2 = vpop.eup %4788 }
0x250e   :  { %v2593_v3 = vadd.f32 1.0, %v4789_v2 }
0x2510   :  { %4790 = vrcp.f32 %v2593_v3 }
0x251a   :  { %v4791_v8 = vpop.eup %4790 }
0x256e   :  { %v2511_v59 = vpop.permute.xlu0 %2510 }
0x256f   :  { %v2513_v60 = vadd.f32 %v4787_v53, %v2511_v59 }
0x2571   :  { %2619 = vrot.lane.b32.xlu0 %v2513_v60, %s4970_s4 }
0x2575   :  { %2597 = vrot.lane.b32.xlu0 %v2589_v62, %s4970_s4 }
0x25e3   :  { %v2620_v4 = vpop.permute.xlu0 %2619 }
0x25e4   :  { %v2622_v6 = vsel %vm104_vm1, %v2407_v40, %v2620_v4 }
0x25e5   :  { %4221 = vmatmul.mubr.msk.f32.vlgmr.msra.gmra.mrb[24].mxu1 %vm312_vm2, %v2622_v6 }
0x25e6   :  { %4585 = vmatpush3.bf16.msra.mxu1 %v5089_v5  ;;  %4261 = vmatprep.mubr.msk.f32.mxu1 %vm4968_vm0, %v4969_v1 }
0x25e7   :  { %v2598_v9 = vpop.permute.xlu0 %2597  ;;  %4586 = vmatprep.subr.bf16.mxu1 %v4967_v0 }
0x25e8   :  { %v2600_v10 = vmul.f32 %v4791_v8, %v2598_v9 }
0x25ea   :  { %2602 = vrot.lane.b32.xlu0 %v2600_v10, %s4971_s9  ;;  %4588 = vmatpush3.bf16.msra.mxu1 %v5092_v7 }
0x25eb   :  { %4589 = vmatprep.subr.bf16.mxu1 %v4967_v0 }
0x265c   :  { %v2603_v11 = vpop.permute.xlu0 %2602 }
0x265d   :  { %v2605_v12 = vadd.f32 %v2603_v11, %v2589_v62 }
0x265f   :  { %4792 = vtanh.f32 %v2605_v12 }
0x2669   :  { %v4793_v13 = vpop.eup %4792 }
0x266a   :  { %v2607_v14 = vsub.f32 %v2407_v40, %v4793_v13 }
0x266c   :  { %2609 = vrot.lane.b32.xlu0 %v2607_v14, %s4972_s10 }
0x26b8   :  { %v2692_v16 = vpop.f32.mrb[24].mxu1 }
0x26b9   :  { %v2693_v17 = vadd.f32 %v5382_v15, %v2692_v16  ;;  %v4222_v18 = vpop.f32.mrb[25].mxu1 }
0x26bb   :  { %2703 = vrot.lane.b32.xlu1 %v2693_v17, %s4970_s4  ;;  %v3606_v21 = vmul.f32 -1.442695, %v2693_v17 }
0x26bd   :  { %4794 = vpow2.f32 %v3606_v21 }
0x26c7   :  { %v4795_v22 = vpop.eup %4794 }
0x26c8   :  { %v2699_v24 = vadd.f32 1.0, %v4795_v22 }
0x26ca   :  { %4796 = vrcp.f32 %v2699_v24 }
0x26d4   :  { %v4797_v26 = vpop.eup %4796 }
0x26de   :  { %v2610_v19 = vpop.permute.xlu0 %2609 }
0x26df   :  { %v2612_v20 = vmul.f32 %v4791_v8, %v2610_v19  ;;  %v2935_v19 = vld [vmem:[#allocation2 + $0x70] sm:$0xff] }
0x26e1   :  { %2614 = vrot.lane.b32.xlu0 %v2612_v20, %s4970_s4 }
0x272d   :  { %v2704_v27 = vpop.permute.xlu1 %2703 }
0x272e   :  { %v2706_v29 = vmul.f32 %v4797_v26, %v2704_v27 }
0x2730   :  { %2708 = vrot.lane.b32.xlu1 %v2706_v29, %s4971_s9 }
0x2753   :  { %v2615_v30 = vpop.permute.xlu0 %2614 }
0x2754   :  { %v2617_v31 = vadd.f32 %v4793_v13, %v2615_v30 }
0x2756   :  { %4232 = vmatmul.mubr.msk.f32.vlgmr.msra.gmra.mrb[24].mxu0 %vm104_vm1, %v2617_v31 }
0x2757   :  { %4573 = vmatpush3.bf16.msra.mxu0 %v5106_v23  ;;  %4250 = vmatprep.mubr.msk.f32.mxu0 %vm4968_vm0, %v4969_v1 }
0x2758   :  { %4574 = vmatprep.subr.bf16.mxu0 %v4967_v0 }
0x275b   :  { %4576 = vmatpush3.bf16.msra.mxu0 %v5109_v25 }
0x275c   :  { %4577 = vmatprep.subr.bf16.mxu0 %v4967_v0 }
0x275f   :  { %4579 = vmatpush3.bf16.msra.mxu0 %v5113_v28 }
0x2760   :  { %4580 = vmatprep.subr.bf16.mxu0 %v4967_v0 }
0x2763   :  { %4582 = vmatpush3.bf16.msra.mxu0 %v5119_v33 }
0x2764   :  { %4601 = vmatprep.subr.bf16.mxu0 %v4967_v0 }
0x27a2   :  { %v2709_v32 = vpop.permute.xlu1 %2708 }
0x27a3   :  { %v2711_v34 = vadd.f32 %v2709_v32, %v2693_v17 }
0x27a5   :  { %4798 = vtanh.f32 %v2711_v34 }
0x27af   :  { %v4799_v35 = vpop.eup %4798 }
0x27b0   :  { %v2713_v36 = vsub.f32 %v2513_v60, %v4799_v35 }
0x27b2   :  { %2715 = vrot.lane.b32.xlu1 %v2713_v36, %s4972_s10 }
0x2824   :  { %v2716_v37 = vpop.permute.xlu1 %2715 }
0x2825   :  { %v2718_v38 = vmul.f32 %v4797_v26, %v2716_v37 }
0x2827   :  { %2720 = vrot.lane.b32.xlu1 %v2718_v38, %s4970_s4 }
0x2829   :  { %v2795_v39 = vpop.f32.mrb[24].mxu0 }
0x282a   :  { %v4233_v41 = vpop.f32.mrb[25].mxu0  ;;  %v2799_v45 = vadd.f32 %v2795_v39, %v2725_v44 }
0x282c   :  { %v3608_v46 = vmul.f32 -1.442695, %v2799_v45 }
0x282e   :  { %4800 = vpow2.f32 %v3608_v46 }
0x2838   :  { %v4801_v47 = vpop.eup %4800 }
0x2839   :  { %v2803_v48 = vadd.f32 1.0, %v4801_v47 }
0x283b   :  { %4802 = vrcp.f32 %v2803_v48 }
0x2845   :  { %v4803_v40 = vpop.eup %4802 }
0x2899   :  { %v2721_v42 = vpop.permute.xlu1 %2720 }
0x289a   :  { %v2723_v43 = vadd.f32 %v4799_v35, %v2721_v42 }
0x289c   :  { %2829 = vrot.lane.b32.xlu1 %v2723_v43, %s4970_s4 }
0x28a0   :  { %2807 = vrot.lane.b32.xlu1 %v2799_v45, %s4970_s4 }
0x290e   :  { %v2830_v49 = vpop.permute.xlu1 %2829 }
0x290f   :  { %v2832_v50 = vsel %vm104_vm1, %v2617_v31, %v2830_v49 }
0x2910   :  { %4251 = vmatmul.mubr.msk.f32.vlgmr.msra.gmra.mrb[26].mxu0 %vm312_vm2, %v2832_v50 }
0x2911   :  { %4603 = vmatpush3.bf16.msra.mxu0 %v5089_v5  ;;  %4291 = vmatprep.mubr.msk.f32.mxu0 %vm4968_vm0, %v4969_v1 }
0x2912   :  { %v2808_v51 = vpop.permute.xlu1 %2807  ;;  %4604 = vmatprep.subr.bf16.mxu0 %v4967_v0 }
0x2913   :  { %v2810_v52 = vmul.f32 %v4803_v40, %v2808_v51 }
0x2915   :  { %2812 = vrot.lane.b32.xlu1 %v2810_v52, %s4971_s9  ;;  %4606 = vmatpush3.bf16.msra.mxu0 %v5092_v7 }
0x2916   :  { %4607 = vmatprep.subr.bf16.mxu0 %v4967_v0 }
0x2987   :  { %v2813_v53 = vpop.permute.xlu1 %2812 }
0x2988   :  { %v2815_v54 = vadd.f32 %v2813_v53, %v2799_v45 }
0x298a   :  { %4804 = vtanh.f32 %v2815_v54 }
0x2994   :  { %v4805_v55 = vpop.eup %4804 }
0x2995   :  { %v2817_v56 = vsub.f32 %v2617_v31, %v4805_v55 }
0x2997   :  { %2819 = vrot.lane.b32.xlu1 %v2817_v56, %s4972_s10 }
0x29e3   :  { %v2902_v5 = vpop.f32.mrb[26].mxu0 }
0x29e4   :  { %v2903_v57 = vadd.f32 %v5382_v15, %v2902_v5  ;;  %v4252_v58 = vpop.f32.mrb[27].mxu0  ;;  %v3145_v5 = vld [vmem:[#allocation2 + $0x78] sm:$0xff] }
0x29e6   :  { %2913 = vrot.lane.b32.xlu0 %v2903_v57, %s4970_s4  ;;  %v3610_v7 = vmul.f32 -1.442695, %v2903_v57 }
0x29e8   :  { %4806 = vpow2.f32 %v3610_v7 }
0x29f2   :  { %v4807_v61 = vpop.eup %4806 }
0x29f3   :  { %v2909_v62 = vadd.f32 1.0, %v4807_v61 }
0x29f5   :  { %4808 = vrcp.f32 %v2909_v62 }
0x29ff   :  { %v4809_v63 = vpop.eup %4808 }
0x2a09   :  { %v2820_v59 = vpop.permute.xlu1 %2819 }
0x2a0a   :  { %v2822_v60 = vmul.f32 %v4803_v40, %v2820_v59 }
0x2a0c   :  { %2824 = vrot.lane.b32.xlu1 %v2822_v60, %s4970_s4 }
0x2a58   :  { %v2914_v2 = vpop.permute.xlu0 %2913 }
0x2a59   :  { %v2916_v3 = vmul.f32 %v4809_v63, %v2914_v2 }
0x2a5b   :  { %2918 = vrot.lane.b32.xlu0 %v2916_v3, %s4971_s9 }
0x2a7e   :  { %v2825_v4 = vpop.permute.xlu1 %2824 }
0x2a7f   :  { %v2827_v6 = vadd.f32 %v4805_v55, %v2825_v4 }
0x2a81   :  { %4262 = vmatmul.mubr.msk.f32.vlgmr.msra.gmra.mrb[26].mxu1 %vm104_vm1, %v2827_v6 }
0x2a82   :  { %4591 = vmatpush3.bf16.msra.mxu1 %v5106_v23  ;;  %4280 = vmatprep.mubr.msk.f32.mxu1 %vm4968_vm0, %v4969_v1 }
0x2a83   :  { %4592 = vmatprep.subr.bf16.mxu1 %v4967_v0 }
0x2a86   :  { %4594 = vmatpush3.bf16.msra.mxu1 %v5109_v25 }
0x2a87   :  { %4595 = vmatprep.subr.bf16.mxu1 %v4967_v0 }
0x2a8a   :  { %4597 = vmatpush3.bf16.msra.mxu1 %v5113_v28 }
0x2a8b   :  { %4598 = vmatprep.subr.bf16.mxu1 %v4967_v0 }
0x2a8e   :  { %4600 = vmatpush3.bf16.msra.mxu1 %v5119_v33 }
0x2a8f   :  { %4619 = vmatprep.subr.bf16.mxu1 %v4967_v0 }
0x2acd   :  { %v2919_v8 = vpop.permute.xlu0 %2918 }
0x2ace   :  { %v2921_v9 = vadd.f32 %v2919_v8, %v2903_v57 }
0x2ad0   :  { %4810 = vtanh.f32 %v2921_v9 }
0x2ada   :  { %v4811_v10 = vpop.eup %4810 }
0x2adb   :  { %v2923_v11 = vsub.f32 %v2723_v43, %v4811_v10 }
0x2add   :  { %2925 = vrot.lane.b32.xlu0 %v2923_v11, %s4972_s10 }
0x2b4f   :  { %v2926_v12 = vpop.permute.xlu0 %2925 }
0x2b50   :  { %v2928_v13 = vmul.f32 %v4809_v63, %v2926_v12 }
0x2b52   :  { %2930 = vrot.lane.b32.xlu0 %v2928_v13, %s4970_s4 }
0x2b54   :  { %v3005_v14 = vpop.f32.mrb[26].mxu1 }
0x2b55   :  { %v4263_v16 = vpop.f32.mrb[27].mxu1  ;;  %v3009_v20 = vadd.f32 %v3005_v14, %v2935_v19 }
0x2b57   :  { %v3612_v21 = vmul.f32 -1.442695, %v3009_v20 }
0x2b59   :  { %4812 = vpow2.f32 %v3612_v21 }
0x2b63   :  { %v4813_v22 = vpop.eup %4812 }
0x2b64   :  { %v3013_v24 = vadd.f32 1.0, %v4813_v22 }
0x2b66   :  { %4814 = vrcp.f32 %v3013_v24 }
0x2b70   :  { %v4815_v29 = vpop.eup %4814 }
0x2bc4   :  { %v2931_v17 = vpop.permute.xlu0 %2930 }
0x2bc5   :  { %v5517_v18 = vadd.f32 %v4811_v10, %v2931_v17 }
0x2bc7   :  { %3039 = vrot.lane.b32.xlu0 %v5517_v18, %s4970_s4 }
0x2bcb   :  { %3017 = vrot.lane.b32.xlu0 %v3009_v20, %s4970_s4 }
0x2c39   :  { %v3040_v26 = vpop.permute.xlu0 %3039 }
0x2c3a   :  { %v3042_v27 = vsel %vm104_vm1, %v2827_v6, %v3040_v26 }
0x2c3b   :  { %4281 = vmatmul.mubr.msk.f32.vlgmr.msra.gmra.mrb[28].mxu1 %vm312_vm2, %v3042_v27 }
0x2c3c   :  { %4621 = vmatpush3.bf16.msra.mxu1 %v5106_v23  ;;  %4329 = vmatprep.mubr.msk.f32.mxu1 %vm4968_vm0, %v4969_v1 }
0x2c3d   :  { %v3018_v30 = vpop.permute.xlu0 %3017  ;;  %4622 = vmatprep.subr.bf16.mxu1 %v4967_v0 }
0x2c3e   :  { %v3020_v31 = vmul.f32 %v4815_v29, %v3018_v30 }
0x2c40   :  { %3022 = vrot.lane.b32.xlu0 %v3020_v31, %s4971_s9  ;;  %4624 = vmatpush3.bf16.msra.mxu1 %v5109_v25 }
0x2c41   :  { %4625 = vmatprep.subr.bf16.mxu1 %v4967_v0 }
0x2c44   :  { %4627 = vmatpush3.bf16.msra.mxu1 %v5113_v28 }
0x2c45   :  { %4628 = vmatprep.subr.bf16.mxu1 %v4967_v0 }
0x2c48   :  { %4630 = vmatpush3.bf16.msra.mxu1 %v5119_v33 }
0x2cb2   :  { %v3023_v32 = vpop.permute.xlu0 %3022 }
0x2cb3   :  { %v3025_v34 = vadd.f32 %v3023_v32, %v3009_v20 }
0x2cb5   :  { %4816 = vtanh.f32 %v3025_v34 }
0x2cbf   :  { %v4817_v35 = vpop.eup %4816 }
0x2cc0   :  { %v3027_v36 = vsub.f32 %v2827_v6, %v4817_v35 }
0x2cc2   :  { %3029 = vrot.lane.b32.xlu0 %v3027_v36, %s4972_s10 }
0x2d0e   :  { %v3112_v37 = vpop.f32.mrb[28].mxu1 }
0x2d0f   :  { %v3113_v38 = vadd.f32 %v5382_v15, %v3112_v37  ;;  %v4282_v39 = vpop.f32.mrb[29].mxu1 }
0x2d11   :  { %3123 = vrot.lane.b32.xlu1 %v3113_v38, %s4970_s4  ;;  %v3614_v43 = vmul.f32 -1.442695, %v3113_v38 }
0x2d13   :  { %4818 = vpow2.f32 %v3614_v43 }
0x2d1d   :  { %v4819_v44 = vpop.eup %4818 }
0x2d1e   :  { %v3119_v45 = vadd.f32 1.0, %v4819_v44 }
0x2d20   :  { %4820 = vrcp.f32 %v3119_v45 }
0x2d2a   :  { %v4821_v46 = vpop.eup %4820 }
0x2d34   :  { %v3030_v41 = vpop.permute.xlu0 %3029 }
0x2d35   :  { %v3032_v42 = vmul.f32 %v4815_v29, %v3030_v41 }
0x2d37   :  { %3034 = vrot.lane.b32.xlu0 %v3032_v42, %s4970_s4 }
0x2d83   :  { %v3124_v47 = vpop.permute.xlu1 %3123 }
0x2d84   :  { %v3126_v48 = vmul.f32 %v4821_v46, %v3124_v47  ;;  %v98_v47 = vld [vmem:[#allocation8] sm:$0xff] }
0x2d86   :  { %3128 = vrot.lane.b32.xlu1 %v3126_v48, %s4971_s9  ;;  %v99_v48 = vld [vmem:[#allocation8 + $0x8] sm:$0xff] }
0x2da9   :  { %v3035_v49 = vpop.permute.xlu0 %3034 }
0x2daa   :  { %v3037_v50 = vadd.f32 %v4817_v35, %v3035_v49  ;;  %v100_v49 = vld [vmem:[#allocation8 + $0x10] sm:$0xff] }
0x2dac   :  { %4292 = vmatmul.mubr.msk.f32.vlgmr.msra.gmra.mrb[28].mxu0 %vm104_vm1, %v3037_v50 }
0x2dad   :  { %4609 = vmatpush3.bf16.msra.mxu0 %v5106_v23  ;;  %4310 = vmatprep.mubr.msk.f32.mxu0 %vm4968_vm0, %v4969_v1 }
0x2dae   :  { %4610 = vmatprep.subr.bf16.mxu0 %v4967_v0 }
0x2db1   :  { %4612 = vmatpush3.bf16.msra.mxu0 %v5109_v25 }
0x2db2   :  { %4613 = vmatprep.subr.bf16.mxu0 %v4967_v0 }
0x2db5   :  { %4615 = vmatpush3.bf16.msra.mxu0 %v5113_v28 }
0x2db6   :  { %4616 = vmatprep.subr.bf16.mxu0 %v4967_v0 }
0x2db9   :  { %4618 = vmatpush3.bf16.msra.mxu0 %v5119_v33 }
0x2dba   :  { %4631 = vmatprep.subr.bf16.mxu0 %v4967_v0 }
0x2df8   :  { %v3129_v40 = vpop.permute.xlu1 %3128 }
0x2df9   :  { %v3131_v51 = vadd.f32 %v3129_v40, %v3113_v38 }
0x2dfb   :  { %4822 = vtanh.f32 %v3131_v51 }
0x2e05   :  { %v4823_v23 = vpop.eup %4822 }
0x2e06   :  { %v3133_v52 = vsub.f32 %v5517_v18, %v4823_v23 }
0x2e08   :  { %3135 = vrot.lane.b32.xlu1 %v3133_v52, %s4972_s10 }
0x2e7a   :  { %v3136_v53 = vpop.permute.xlu1 %3135 }
0x2e7b   :  { %v3138_v25 = vmul.f32 %v4821_v46, %v3136_v53 }
0x2e7d   :  { %3140 = vrot.lane.b32.xlu1 %v3138_v25, %s4970_s4 }
0x2e7f   :  { %v3215_v54 = vpop.f32.mrb[28].mxu0 }
0x2e80   :  { %v4293_v28 = vpop.f32.mrb[29].mxu0  ;;  %v3219_v33 = vadd.f32 %v3215_v54, %v3145_v5 }
0x2e81   :  { %v3621_v28 = vld [vmem:[%s5597_s5] ss:$0 sm:$0xff] }
0x2e82   :  { %v3616_v57 = vmul.f32 -1.442695, %v3219_v33 }
0x2e84   :  { %4824 = vpow2.f32 %v3616_v57 }
0x2e8e   :  { %v4825_v58 = vpop.eup %4824 }
0x2e8f   :  { %v3223_v59 = vadd.f32 1.0, %v4825_v58 }
0x2e91   :  { %4826 = vrcp.f32 %v3223_v59 }
0x2e9b   :  { %v4827_v61 = vpop.eup %4826 }
0x2eef   :  { %v3141_v55 = vpop.permute.xlu1 %3140 }
0x2ef0   :  { %v3143_v56 = vadd.f32 %v4823_v23, %v3141_v55 }
0x2ef2   :  { %3249 = vrot.lane.b32.xlu1 %v3143_v56, %s4970_s4 }
0x2ef6   :  { %3227 = vrot.lane.b32.xlu1 %v3219_v33, %s4970_s4 }
0x2f64   :  { %v3250_v60 = vpop.permute.xlu1 %3249 }
0x2f65   :  { %v3252_v7 = vsel %vm104_vm1, %v3037_v50, %v3250_v60 }
0x2f66   :  { %4311 = vmatmul.mubr.msk.f32.vlgmr.msra.gmra.mrb[30].mxu0 %vm312_vm2, %v3252_v7 }
0x2f67   :  { %4340 = vmatprep.mubr.msk.f32.mxu0 %vm4968_vm0, %v4969_v1 }
0x2f68   :  { %v3228_v62 = vpop.permute.xlu1 %3227 }
0x2f69   :  { %v3230_v63 = vmul.f32 %v4827_v61, %v3228_v62 }
0x2f6b   :  { %3232 = vrot.lane.b32.xlu1 %v3230_v63, %s4971_s9 }
0x2fdd   :  { %v3233_v2 = vpop.permute.xlu1 %3232 }
0x2fde   :  { %v3235_v3 = vadd.f32 %v3233_v2, %v3219_v33 }
0x2fe0   :  { %4828 = vtanh.f32 %v3235_v3 }
0x2fea   :  { %v4829_v4 = vpop.eup %4828 }
0x2feb   :  { %v3237_v6 = vsub.f32 %v3037_v50, %v4829_v4  ;;  %v101_v50 = vld [vmem:[#allocation8 + $0x18] sm:$0xff] }
0x2fec   :  { %v4635_v40 = vpack.c.bf16 %v101_v50, %v100_v49 }
0x2fed   :  { %3239 = vrot.lane.b32.xlu1 %v3237_v6, %s4972_s10 }
0x3039   :  { %v3322_v8 = vpop.f32.mrb[30].mxu0 }
0x303a   :  { %v3323_v9 = vadd.f32 %v5382_v15, %v3322_v8  ;;  %v4312_v10 = vpop.f32.mrb[31].mxu0 }
0x303c   :  { %3333 = vrot.lane.b32.xlu0 %v3323_v9, %s4970_s4  ;;  %v3618_v12 = vmul.f32 -1.442695, %v3323_v9 }
0x303e   :  { %4830 = vpow2.f32 %v3618_v12 }
0x3048   :  { %v4831_v13 = vpop.eup %4830 }
0x3049   :  { %v3329_v14 = vadd.f32 1.0, %v4831_v13 }
0x304b   :  { %4832 = vrcp.f32 %v3329_v14 }
0x3055   :  { %v4833_v16 = vpop.eup %4832 }
0x305f   :  { %v3240_v11 = vpop.permute.xlu1 %3239 }
0x3060   :  { %v3242_v1 = vmul.f32 %v4827_v61, %v3240_v11 }
0x3062   :  { %3244 = vrot.lane.b32.xlu1 %v3242_v1, %s4970_s4 }
0x30ae   :  { %v3334_v17 = vpop.permute.xlu0 %3333 }
0x30af   :  { %v3336_v18 = vmul.f32 %v4833_v16, %v3334_v17 }
0x30b1   :  { %3338 = vrot.lane.b32.xlu0 %v3336_v18, %s4971_s9 }
0x30d4   :  { %v3245_v30 = vpop.permute.xlu1 %3244 }
0x30d5   :  { %v3247_v31 = vadd.f32 %v4829_v4, %v3245_v30 }
0x3123   :  { %v3339_v19 = vpop.permute.xlu0 %3338 }
0x3124   :  { %v3341_v20 = vadd.f32 %v3339_v19, %v3323_v9 }
0x3126   :  { %4834 = vtanh.f32 %v3341_v20 }
0x3130   :  { %v4835_v21 = vpop.eup %4834 }
0x3131   :  { %v3343_v22 = vsub.f32 %v3143_v56, %v4835_v21 }
0x3133   :  { %3345 = vrot.lane.b32.xlu0 %v3343_v22, %s4972_s10 }
0x31a5   :  { %v3346_v24 = vpop.permute.xlu0 %3345 }
0x31a6   :  { %v3348_v26 = vmul.f32 %v4833_v16, %v3346_v24 }
0x31a8   :  { %3350 = vrot.lane.b32.xlu0 %v3348_v26, %s4970_s4 }
0x321a   :  { %v3351_v27 = vpop.permute.xlu0 %3350 }
0x321b   :  { %v3353_v29 = vadd.f32 %v4835_v21, %v3351_v27 }
0x321d   :  { %3355 = vrot.lane.b32.xlu0 %v3353_v29, %s4970_s4 }
0x328f   :  { %v3356_v32 = vpop.permute.xlu0 %3355 }
0x3290   :  { %v3358_v34 = vsel %vm104_vm1, %v3247_v31, %v3356_v32 }
0x3291   :  { %4330 = vmatmul.mubr.msk.f32.vlgmr.msra.gmra.mrb[30].mxu1 %vm312_vm2, %v3358_v34 }
0x3364   :  { %v3428_v35 = vpop.f32.mrb[30].mxu1 }
0x3365   :  { %v3429_v36 = vadd.f32 %v5382_v15, %v3428_v35  ;;  %v4331_v37 = vpop.f32.mrb[31].mxu1  ;;  %v4632_v15 = vpack.c.bf16 %v99_v48, %v98_v47 }
0x3367   :  { %3439 = vrot.lane.b32.xlu1 %v3429_v36, %s4970_s4  ;;  %v3620_v38 = vmul.f32 -1.442695, %v3429_v36  ;;  %4633 = vmatpush3.bf16.msra.mxu0 %v4632_v15 }
0x3368   :  { %4634 = vmatprep.subr.bf16.mxu0 %v4967_v0 }
0x3369   :  { %4836 = vpow2.f32 %v3620_v38 }
0x336b   :  { %4636 = vmatpush3.bf16.msra.mxu0 %v4635_v40 }
0x3373   :  { %v4837_v39 = vpop.eup %4836 }
0x3374   :  { %v3435_v41 = vadd.f32 1.0, %v4837_v39 }
0x3376   :  { %4838 = vrcp.f32 %v3435_v41 }
0x3380   :  { %v4839_v42 = vpop.eup %4838 }
0x33d9   :  { %v3440_v43 = vpop.permute.xlu1 %3439 }
0x33da   :  { %v3442_v44 = vmul.f32 %v4839_v42, %v3440_v43 }
0x33dc   :  { %3444 = vrot.lane.b32.xlu0 %v3442_v44, %s4971_s9 }
0x344e   :  { %v3445_v45 = vpop.permute.xlu0 %3444 }
0x344f   :  { %v3447_v46 = vadd.f32 %v3445_v45, %v3429_v36 }
0x3451   :  { %4840 = vtanh.f32 %v3447_v46 }
0x345b   :  { %v4841_v51 = vpop.eup %4840 }
0x345c   :  { %v3449_v23 = vsub.f32 %v3353_v29, %v4841_v51 }
0x345e   :  { %3451 = vrot.lane.b32.xlu1 %v3449_v23, %s4972_s10 }
0x34d0   :  { %v3452_v52 = vpop.permute.xlu1 %3451 }
0x34d1   :  { %v3454_v53 = vmul.f32 %v4839_v42, %v3452_v52 }
0x34d3   :  { %3456 = vrot.lane.b32.xlu0 %v3454_v53, %s4970_s4 }
0x3545   :  { %v3457_v25 = vpop.permute.xlu0 %3456 }
0x3546   :  { %v3459_v54 = vadd.f32 %v4841_v51, %v3457_v25 }
0x3548   :  { %4341 = vmatmul.mubr.msk.f32.vlgmr.msra.gmra.mrb[32].mxu0 %vm104_vm1, %v3459_v54 }
0x361b   :  { %v3535_v0 = vpop.f32.mrb[32].mxu0 }
0x361c   :  { %v3536_v55 = vadd.f32 %v3621_v28, %v3535_v0  ;;  %v4342_v56 = vpop.f32.mrb[33].mxu0 }
0x361e   :  { %3539 = vst [vmem:[#allocation10] sm:$0xff] %v3536_v55 }
0x361f   :  { %4942 = shalt.err (!%p4939_p8)
}
0x3620   :  { %s4943_s8 = scalar_lea.hbm %s5598_s6, 128 }
0x3621   :  { %p4944_p9 = scmp.ne.s32.totalorder %s5598_s6, %s4943_s8  ;;  %p4947_p10 = scmp.lt.u32.totalorder %s4943_s8, %s5598_s6 }
0x3623   :  { %p4949_p11 = pnand %p4947_p10, %p4944_p9 }
0x3625   :  { %4952 = shalt.err (!%p4949_p11)
}
0x3626   :  { %3549 = dma.vmem_to_hbm [thread:$0]  %s3547_s28, 128, %s5598_s6, [#allocation4]  }
0x3627   :  { %4959 = dma.done.wait [#allocation4], 128  }
0x3628   :  { %4960 = vsyncadd [#allocation4], 4294967168 }
0x3629   :  { %3553 = vsyncpa [#allocation3], 1 }
0x362a   :  { %3554 = vsyncpa [#allocation6], 1 }
0x362b   :  { %3555 = vsyncpa [#allocation9], 1 }
0x362c   :  { %3556 = vsyncpa [#allocation4], 1 }

</bundles_post_ra>
